<compile_context>
chip_gen: v7x
topology: tpu7x:2x2x1
jax: 0.10.0
libtpu: 0.0.40
codegen_flags: <defaults>
</compile_context>

<pallas_src>
import functools

import jax
import jax.numpy as jnp
from jax.experimental import pallas as pl
from jax.experimental.pallas import tpu as pltpu


# ----------------------------------------------------------------------------
# Helpers
# ----------------------------------------------------------------------------
def round_up(x, m):
    return (x + m - 1) // m * m


def pad2d(x, rows, cols, value=0):
    """Pad a 2-D array up to (rows, cols); no-op (no copy) if already aligned."""
    r, c = x.shape
    if r == rows and c == cols:
        return x
    return jnp.pad(x, ((0, rows - r), (0, cols - c)), constant_values=value)


class KeyGen:
    def __init__(self, key):
        self.key = key

    def __call__(self):
        self.key, sub = jax.random.split(self.key)
        return sub


def _stable_sigmoid(y):
    # sigmoid(y) = 0.5 * tanh(y/2) + 0.5 -> one EUP transcendental, no
    # overflow-prone exp / divide.
    return 0.5 * jnp.tanh(0.5 * y) + 0.5


# ----------------------------------------------------------------------------
# Pallas kernels
# ----------------------------------------------------------------------------
def _mm_epilogue(y, bias, res, act, out_dtype):
    y = y + bias
    if res is not None:
        y = y + res.astype(jnp.float32)
    if act == "relu":
        y = jnp.maximum(y, 0.0)
    elif act == "sigmoid":
        y = _stable_sigmoid(y)
    return y.astype(out_dtype)


def _mm_kernel_single(*refs, act, has_res):
    """Single K step: out = act(x @ w + bias [+ res]); no scratch accumulator."""
    if has_res:
        x_ref, w_ref, b_ref, r_ref, o_ref = refs
    else:
        x_ref, w_ref, b_ref, o_ref = refs
        r_ref = None
    y = jnp.dot(x_ref[...], w_ref[...], preferred_element_type=jnp.float32)
    o_ref[...] = _mm_epilogue(
        y, b_ref[...], None if r_ref is None else r_ref[...], act, o_ref.dtype
    )


def _mm_kernel_multi(*refs, act, has_res):
    """K-tiled: acc (f32 VMEM scratch) accumulation, epilogue at last K step."""
    if has_res:
        x_ref, w_ref, b_ref, r_ref, o_ref, acc_ref = refs
    else:
        x_ref, w_ref, b_ref, o_ref, acc_ref = refs
        r_ref = None

    k = pl.program_id(2)

    @pl.when(k == 0)
    def _init():
        acc_ref[...] = jnp.zeros_like(acc_ref)

    acc_ref[...] += jnp.dot(
        x_ref[...], w_ref[...], preferred_element_type=jnp.float32
    )

    @pl.when(k == pl.num_programs(2) - 1)
    def _finalize():
        o_ref[...] = _mm_epilogue(
            acc_ref[...], b_ref[...],
            None if r_ref is None else r_ref[...], act, o_ref.dtype
        )


def _decoder_kernel(x_ref, w_ref, b_ref, o_ref):
    """Fused AdaptiveAvgPool2d((1,1)) + flatten + Linear + sigmoid."""
    pooled = jnp.mean(x_ref[...].astype(jnp.float32), axis=1)          # (N, C)
    y = jnp.dot(pooled.astype(jnp.bfloat16), w_ref[...],
                preferred_element_type=jnp.float32)
    y = y + b_ref[...]
    o_ref[...] = _stable_sigmoid(y)


# ----------------------------------------------------------------------------
# Pallas wrappers
# ----------------------------------------------------------------------------
def fused_matmul(x, w, bias, res=None, act="none", out_dtype=jnp.bfloat16):
    """out = act(x @ w + bias [+ res]).

    x:(M,K) and w:(K,N) are cast to bf16 for the MXU (w already has the BN
    scale folded in f32); accumulation is f32; epilogue (bias / residual /
    activation) runs in f32 and stores `out_dtype`.
    """
    M, K = x.shape
    N = w.shape[1]

    # --- tile selection -----------------------------------------------------
    # Prefer 256-wide tiles only when that still leaves >= 2 blocks on the
    # parallel axis (v7x: 2 TensorCores); else stay at the v5e-native 128.
    Mp128 = round_up(M, 128)
    if Mp128 >= 512:
        TM, Mp = 256, round_up(M, 256)
    else:
        TM, Mp = 128, Mp128

    Np128 = round_up(N, 128)
    if Np128 >= 512:
        TN, Np = 256, round_up(N, 256)
    else:
        TN, Np = 128, Np128

    # K: never pad beyond the next multiple of 128; TK must divide Kp.
    Kp = round_up(K, 128)
    TK = Kp
    MAX_TK = 2048
    if TK > MAX_TK:
        t = MAX_TK
        while t >= 128 and Kp % t != 0:
            t -= 128
        TK = max(t, 128)
    n_k = Kp // TK
    single_k = n_k == 1

    # --- operand padding (no-op copies when already aligned) ----------------
    xp = pad2d(x.astype(jnp.bfloat16), Mp, Kp)
    wp = pad2d(w.astype(jnp.bfloat16), Kp, Np)
    bp = pad2d(bias.reshape(1, N).astype(jnp.float32), 1, Np)

    has_res = res is not None

    if single_k:
        grid = (Mp // TM, Np // TN)
        in_specs = [
            pl.BlockSpec((TM, TK), lambda i, j: (i, 0)),
            pl.BlockSpec((TK, TN), lambda i, j: (0, j)),
            pl.BlockSpec((1, TN), lambda i, j: (0, j)),
        ]
        out_spec = pl.BlockSpec((TM, TN), lambda i, j: (i, j))
        res_spec = pl.BlockSpec((TM, TN), lambda i, j: (i, j))
        kernel = functools.partial(_mm_kernel_single, act=act, has_res=has_res)
        scratch = []
        dim_sem = ("parallel", "parallel")
    else:
        grid = (Mp // TM, Np // TN, n_k)
        in_specs = [
            pl.BlockSpec((TM, TK), lambda i, j, k: (i, k)),
            pl.BlockSpec((TK, TN), lambda i, j, k: (k, j)),
            pl.BlockSpec((1, TN), lambda i, j, k: (0, j)),
        ]
        out_spec = pl.BlockSpec((TM, TN), lambda i, j, k: (i, j))
        res_spec = pl.BlockSpec((TM, TN), lambda i, j, k: (i, j))
        kernel = functools.partial(_mm_kernel_multi, act=act, has_res=has_res)
        scratch = [pltpu.VMEM((TM, TN), jnp.float32)]
        dim_sem = ("parallel", "parallel", "arbitrary")

    inputs = [xp, wp, bp]
    if has_res:
        inputs.append(pad2d(res.astype(jnp.bfloat16), Mp, Np))
        in_specs.append(res_spec)

    out_bytes = jnp.dtype(out_dtype).itemsize
    bytes_accessed = (
        Mp * Kp * 2 + Kp * Np * 2 + Np * 4
        + (Mp * Np * 2 if has_res else 0)
        + Mp * Np * out_bytes
    )
    cost = pl.CostEstimate(
        flops=2 * Mp * Kp * Np,
        transcendentals=0,
        bytes_accessed=bytes_accessed,
    )

    # VMEM budget derived from the double-buffered footprint; 48 MiB cap keeps
    # headroom on v7x (64 MiB physical), well under v5e/v6e's 128 MiB.
    footprint = (
        2 * (TM * TK * 2 + TK * TN * 2 + TN * 4
             + (TM * TN * 2 if has_res else 0))
        + 2 * TM * TN * out_bytes
        + (0 if single_k else TM * TN * 4)
    )
    vmem_limit = int(min(48 * 1024 * 1024, max(2 * footprint, 16 * 1024 * 1024)))

    out = pl.pallas_call(
        kernel,
        out_shape=jax.ShapeDtypeStruct((Mp, Np), out_dtype),
        grid=grid,
        in_specs=in_specs,
        out_specs=out_spec,
        scratch_shapes=scratch,
        compiler_params=pltpu.CompilerParams(
            dimension_semantics=dim_sem,
            vmem_limit_bytes=vmem_limit,
        ),
        cost_estimate=cost,
    )(*inputs)

    if Mp == M and Np == N:
        return out
    return out[:M, :N]


def im2col(x, kh, kw, stride, pad):
    """x: NHWC (bf16) -> patches (N, Ho, Wo, kh*kw*C); feature order (kh,kw,C).
    TODO(synk): XLA-materialized; see module docstring for the fusion plan."""
    if pad > 0:
        x = jnp.pad(x, ((0, 0), (pad, pad), (pad, pad), (0, 0)))
    N, Hp, Wp, C = x.shape
    Ho = (Hp - kh) // stride + 1
    Wo = (Wp - kw) // stride + 1
    if kh == 1 and kw == 1:
        return x[:, ::stride, ::stride, :], Ho, Wo
    cols = []
    for i in range(kh):
        for j in range(kw):
            cols.append(x[:, i:i + stride * Ho:stride, j:j + stride * Wo:stride, :])
    return jnp.concatenate(cols, axis=-1), Ho, Wo


def fold_bn(bn, eps=1e-5):
    scale = bn["gamma"] / jnp.sqrt(bn["var"] + eps)
    bias = bn["beta"] - bn["mean"] * scale
    return scale, bias


def conv_bn_act(x, w, bn, stride, pad, act="none", res=None):
    """x: NHWC bf16, w: PyTorch layout (Cout, Cin, kh, kw) f32.  BN scale is
    folded into the f32 weights before the bf16 cast; returns NHWC bf16."""
    Cout, Cin, kh, kw = w.shape
    patches, Ho, Wo = im2col(x, kh, kw, stride, pad)
    Nb = x.shape[0]
    pm = patches.reshape(Nb * Ho * Wo, kh * kw * Cin)
    scale, bias = fold_bn(bn)
    wm = jnp.transpose(w, (2, 3, 1, 0)).reshape(kh * kw * Cin, Cout) * scale[None, :]
    resm = None if res is None else res.reshape(Nb * Ho * Wo, Cout)
    out = fused_matmul(pm, wm, bias, resm, act)
    return out.reshape(Nb, Ho, Wo, Cout)


def maxpool2d(x, k=3, stride=2, pad=1):
    """nn.MaxPool2d(3, 2, 1) on NHWC: plain jnp.maximum tree over the k*k taps
    (mem-bound op; XLA glue by design per the perf review)."""
    xp = jnp.pad(x, ((0, 0), (pad, pad), (pad, pad), (0, 0)),
                 constant_values=-jnp.inf)
    N, Hp, Wp, C = xp.shape
    Ho = (Hp - k) // stride + 1
    Wo = (Wp - k) // stride + 1
    out = None
    for i in range(k):
        for j in range(k):
            tap = xp[:, i:i + stride * Ho:stride, j:j + stride * Wo:stride, :]
            out = tap if out is None else jnp.maximum(out, tap)
    return out


def decoder_forward(x, fc_w, fc_b):
    """Fused AdaptiveAvgPool2d((1,1)) + flatten + Linear + sigmoid.
    x: NHWC bf16, fc_w: (n_classes, C) f32, fc_b: (n_classes,) f32."""
    Nb, H, W, C = x.shape
    HW = H * W
    nc = fc_w.shape[0]
    Nbp = round_up(Nb, 8)
    Cp = round_up(C, 128)
    ncp = round_up(nc, 128)

    xr = x.reshape(Nb, HW, C)
    if Nbp != Nb or Cp != C:
        xr = jnp.pad(xr, ((0, Nbp - Nb), (0, 0), (0, Cp - C)))
    wt = pad2d(fc_w.T.astype(jnp.bfloat16), Cp, ncp)
    bp = pad2d(fc_b.reshape(1, nc).astype(jnp.float32), 1, ncp)

    # TODO(synk): single-grid-point call; batch/n_classes are tiny here, so a
    # batch-parallel grid (for v7x's second TensorCore) is left out.
    out = pl.pallas_call(
        _decoder_kernel,
        out_shape=jax.ShapeDtypeStruct((Nbp, ncp), jnp.float32),
        grid=(1,),
        in_specs=[
            pl.BlockSpec((Nbp, HW, Cp), lambda i: (0, 0, 0)),
            pl.BlockSpec((Cp, ncp), lambda i: (0, 0)),
            pl.BlockSpec((1, ncp), lambda i: (0, 0)),
        ],
        out_specs=pl.BlockSpec((Nbp, ncp), lambda i: (0, 0)),
        compiler_params=pltpu.CompilerParams(
            dimension_semantics=("arbitrary",),
            vmem_limit_bytes=32 * 1024 * 1024,
        ),
    )(xr, wt, bp)
    return out[:Nb, :nc]


# ----------------------------------------------------------------------------
# Parameter construction (matches the PyTorch module shapes)
# ----------------------------------------------------------------------------
def init_conv(key, cout, cin, kh, kw):
    fan_in = cin * kh * kw
    return jax.random.normal(key, (cout, cin, kh, kw), jnp.float32) / jnp.sqrt(
        jnp.float32(fan_in)
    )


def init_bn(keygen, c):
    return dict(
        gamma=1.0 + 0.1 * jax.random.normal(keygen(), (c,), jnp.float32),
        beta=0.1 * jax.random.normal(keygen(), (c,), jnp.float32),
        mean=0.1 * jax.random.normal(keygen(), (c,), jnp.float32),
        var=jax.random.uniform(keygen(), (c,), jnp.float32, 0.5, 1.5),
    )


def init_basic_block(keygen, cin, cout, downsampling):
    p = {
        "downsampling": downsampling,
        "conv1_w": init_conv(keygen(), cout, cin, 3, 3),
        "bn1": init_bn(keygen, cout),
        "conv2_w": init_conv(keygen(), cout, cout, 3, 3),
        "bn2": init_bn(keygen, cout),
    }
    if cin != cout:  # should_apply_shortcut (expansion == 1)
        p["sc_w"] = init_conv(keygen(), cout, cin, 1, 1)
        p["sc_bn"] = init_bn(keygen, cout)
    return p


def build_params(key, in_channels, n_classes, blocks_sizes, deepths):
    kg = KeyGen(key)
    params = {
        "gate_w": init_conv(kg(), blocks_sizes[0], in_channels, 7, 7),
        "gate_bn": init_bn(kg, blocks_sizes[0]),
        "layers": [],
    }
    layer_io = [(blocks_sizes[0], blocks_sizes[0])] + list(
        zip(blocks_sizes, blocks_sizes[1:])
    )
    for (cin, cout), n in zip(layer_io, deepths):
        downsampling = 2 if cin != cout else 1
        blocks = [init_basic_block(kg, cin, cout, downsampling)]
        for _ in range(n - 1):
            blocks.append(init_basic_block(kg, cout, cout, 1))
        params["layers"].append(blocks)
    feat = blocks_sizes[-1]
    params["fc_w"] = jax.random.normal(kg(), (n_classes, feat), jnp.float32) / jnp.sqrt(
        jnp.float32(feat)
    )
    params["fc_b"] = 0.1 * jax.random.normal(kg(), (n_classes,), jnp.float32)
    return params


# ----------------------------------------------------------------------------
# Forward pass
# ----------------------------------------------------------------------------
def basic_block_forward(x, p):
    ds = p["downsampling"]
    if "sc_w" in p:  # should_apply_shortcut
        residual = conv_bn_act(x, p["sc_w"], p["sc_bn"], stride=ds, pad=0, act="none")
    else:
        residual = x
    y = conv_bn_act(x, p["conv1_w"], p["bn1"], stride=ds, pad=1, act="relu")
    # second conv_bn + residual add; no activation after the add (ResidualBlock).
    y = conv_bn_act(y, p["conv2_w"], p["bn2"], stride=1, pad=1, act="none",
                    res=residual)
    return y


def resnet_forward(x_nchw, params):
    # NCHW -> NHWC, bf16 activations throughout (f32 accumulation in-kernel).
    x = jnp.transpose(x_nchw, (0, 2, 3, 1)).astype(jnp.bfloat16)
    # gate: conv7x7 s2 p3 -> BN -> ReLU -> MaxPool 3x3 s2 p1
    x = conv_bn_act(x, params["gate_w"], params["gate_bn"], stride=2, pad=3,
                    act="relu")
    x = maxpool2d(x, k=3, stride=2, pad=1)
    # encoder layers
    for layer in params["layers"]:
        for blk in layer:
            x = basic_block_forward(x, blk)
    # decoder: global avg pool -> flatten -> linear -> sigmoid (fused kernel)
    return decoder_forward(x, params["fc_w"], params["fc_b"])  # (N, n_classes)


# ----------------------------------------------------------------------------
if __name__ == "__main__":
    # Small config consistent with the module's constructor kwargs.
    in_channels = 3
    n_classes = 10
    blocks_sizes = [8, 16, 32, 64]
    deepths = [1, 1, 1, 1]

    key = jax.random.PRNGKey(0)
    k_params, k_x = jax.random.split(key)
    params = build_params(k_params, in_channels, n_classes, blocks_sizes, deepths)

    x = jax.random.normal(k_x, (2, in_channels, 32, 32), jnp.float32)  # NCHW

    forward = jax.jit(lambda inp: resnet_forward(inp, params))
    out = forward(x)
    out = jax.block_until_ready(out)

    assert out.shape == (2, n_classes), out.shape
    assert bool(jnp.all(jnp.isfinite(out)))
    assert bool(jnp.all((out >= 0.0) & (out <= 1.0)))  # sigmoid range
    print("KERNEL_OK")
</pallas_src>

<mosaic_0001>
module attributes {stable_mosaic.version = 11 : i64} {
  func.func @_mm_kernel_single(%arg0: i32, %arg1: i32, %arg2: memref<256x256xbf16, #tpu.memory_space<vmem>>, %arg3: memref<256x128xbf16, #tpu.memory_space<vmem>>, %arg4: memref<1x128xf32, #tpu.memory_space<vmem>>, %arg5: memref<256x128xbf16, #tpu.memory_space<vmem>>) attributes {dimension_semantics = [#tpu.dimension_semantics<parallel>, #tpu.dimension_semantics<parallel>], iteration_bounds = array<i64: 2, 1>, scalar_prefetch = 0 : i64, scratch_operands = 0 : i64, tpu.core_type = #tpu.core_type<tc>, window_params = [{transform_indices = @transform_0, window_bounds = array<i64: 256, 256>}, {transform_indices = @transform_1, window_bounds = array<i64: 256, 128>}, {transform_indices = @transform_2, window_bounds = array<i64: 1, 128>}, {transform_indices = @transform_3, window_bounds = array<i64: 256, 128>}]} {
    %c0 = arith.constant 0 : index
    %c0_0 = arith.constant 0 : index
    %0 = vector.load %arg2[%c0, %c0_0] : memref<256x256xbf16, #tpu.memory_space<vmem>>, vector<256x256xbf16>
    %c0_1 = arith.constant 0 : index
    %c0_2 = arith.constant 0 : index
    %1 = vector.load %arg3[%c0_1, %c0_2] : memref<256x128xbf16, #tpu.memory_space<vmem>>, vector<256x128xbf16>
    %cst = arith.constant dense<0.000000e+00> : vector<256x128xf32>
    %2 = tpu.matmul %0, %1, %cst {dimension_numbers = #tpu.dot_dimension_numbers<[1], [0], [0], [1], [0, 0, 1, 1], [], []>} : vector<256x256xbf16>, vector<256x128xbf16>, vector<256x128xf32> -> vector<256x128xf32>
    %c0_3 = arith.constant 0 : index
    %c0_4 = arith.constant 0 : index
    %3 = vector.load %arg4[%c0_3, %c0_4] : memref<1x128xf32, #tpu.memory_space<vmem>>, vector<1x128xf32>
    %4 = vector.broadcast %3 : vector<1x128xf32> to vector<256x128xf32>
    %5 = arith.addf %2, %4 : vector<256x128xf32>
    %cst_5 = arith.constant 0.000000e+00 : f32
    %6 = vector.broadcast %cst_5 : f32 to vector<256x128xf32>
    %7 = arith.maximumf %5, %6 : vector<256x128xf32>
    %8 = arith.truncf %7 : vector<256x128xf32> to vector<256x128xbf16>
    %c0_6 = arith.constant 0 : index
    %c0_7 = arith.constant 0 : index
    %9 = vector.load %arg5[%c0_6, %c0_7] : memref<256x128xbf16, #tpu.memory_space<vmem>>, vector<256x128xbf16>
    tpu.vector_store %arg5[%c0_6, %c0_7], %8 {strides = array<i32>} : memref<256x128xbf16, #tpu.memory_space<vmem>>, vector<256x128xbf16>,
    return
  }
  func.func @transform_0(%arg0: i32, %arg1: i32) -> (i32, i32) {
    %c0_i32 = arith.constant 0 : i32
    %c0_i32_0 = arith.constant 0 : i32
    return %arg0, %c0_i32 : i32, i32
  }
  func.func @transform_1(%arg0: i32, %arg1: i32) -> (i32, i32) {
    %c0_i32 = arith.constant 0 : i32
    %c0_i32_0 = arith.constant 0 : i32
    return %c0_i32, %arg1 : i32, i32
  }
  func.func @transform_2(%arg0: i32, %arg1: i32) -> (i32, i32) {
    %c0_i32 = arith.constant 0 : i32
    %c0_i32_0 = arith.constant 0 : i32
    return %c0_i32, %arg1 : i32, i32
  }
  func.func @transform_3(%arg0: i32, %arg1: i32) -> (i32, i32) {
    %c0_i32 = arith.constant 0 : i32
    return %arg0, %arg1 : i32, i32
  }
}

module attributes {stable_mosaic.version = 11 : i64} {
  func.func @_mm_kernel_single(%arg0: i32, %arg1: i32, %arg2: memref<128x128xbf16, #tpu.memory_space<vmem>>, %arg3: memref<128x128xbf16, #tpu.memory_space<vmem>>, %arg4: memref<1x128xf32, #tpu.memory_space<vmem>>, %arg5: memref<128x128xbf16, #tpu.memory_space<vmem>>) attributes {dimension_semantics = [#tpu.dimension_semantics<parallel>, #tpu.dimension_semantics<parallel>], iteration_bounds = array<i64: 1, 1>, scalar_prefetch = 0 : i64, scratch_operands = 0 : i64, tpu.core_type = #tpu.core_type<tc>, window_params = [{transform_indices = @transform_0, window_bounds = array<i64: 128, 128>}, {transform_indices = @transform_1, window_bounds = array<i64: 128, 128>}, {transform_indices = @transform_2, window_bounds = array<i64: 1, 128>}, {transform_indices = @transform_3, window_bounds = array<i64: 128, 128>}]} {
    %c0 = arith.constant 0 : index
    %c0_0 = arith.constant 0 : index
    %0 = vector.load %arg2[%c0, %c0_0] : memref<128x128xbf16, #tpu.memory_space<vmem>>, vector<128x128xbf16>
    %c0_1 = arith.constant 0 : index
    %c0_2 = arith.constant 0 : index
    %1 = vector.load %arg3[%c0_1, %c0_2] : memref<128x128xbf16, #tpu.memory_space<vmem>>, vector<128x128xbf16>
    %cst = arith.constant dense<0.000000e+00> : vector<128x128xf32>
    %2 = tpu.matmul %0, %1, %cst {dimension_numbers = #tpu.dot_dimension_numbers<[1], [0], [0], [1], [0, 0, 1, 1], [], []>} : vector<128x128xbf16>, vector<128x128xbf16>, vector<128x128xf32> -> vector<128x128xf32>
    %c0_3 = arith.constant 0 : index
    %c0_4 = arith.constant 0 : index
    %3 = vector.load %arg4[%c0_3, %c0_4] : memref<1x128xf32, #tpu.memory_space<vmem>>, vector<1x128xf32>
    %4 = vector.broadcast %3 : vector<1x128xf32> to vector<128x128xf32>
    %5 = arith.addf %2, %4 : vector<128x128xf32>
    %cst_5 = arith.constant 0.000000e+00 : f32
    %6 = vector.broadcast %cst_5 : f32 to vector<128x128xf32>
    %7 = arith.maximumf %5, %6 : vector<128x128xf32>
    %8 = arith.truncf %7 : vector<128x128xf32> to vector<128x128xbf16>
    %c0_6 = arith.constant 0 : index
    %c0_7 = arith.constant 0 : index
    %9 = vector.load %arg5[%c0_6, %c0_7] : memref<128x128xbf16, #tpu.memory_space<vmem>>, vector<128x128xbf16>
    tpu.vector_store %arg5[%c0_6, %c0_7], %8 {strides = array<i32>} : memref<128x128xbf16, #tpu.memory_space<vmem>>, vector<128x128xbf16>,
    return
  }
  func.func @transform_0(%arg0: i32, %arg1: i32) -> (i32, i32) {
    %c0_i32 = arith.constant 0 : i32
    %c0_i32_0 = arith.constant 0 : i32
    return %arg0, %c0_i32 : i32, i32
  }
  func.func @transform_1(%arg0: i32, %arg1: i32) -> (i32, i32) {
    %c0_i32 = arith.constant 0 : i32
    %c0_i32_0 = arith.constant 0 : i32
    return %c0_i32, %arg1 : i32, i32
  }
  func.func @transform_2(%arg0: i32, %arg1: i32) -> (i32, i32) {
    %c0_i32 = arith.constant 0 : i32
    %c0_i32_0 = arith.constant 0 : i32
    return %c0_i32, %arg1 : i32, i32
  }
  func.func @transform_3(%arg0: i32, %arg1: i32) -> (i32, i32) {
    %c0_i32 = arith.constant 0 : i32
    return %arg0, %arg1 : i32, i32
  }
}

module attributes {stable_mosaic.version = 11 : i64} {
  func.func @_mm_kernel_single(%arg0: i32, %arg1: i32, %arg2: memref<128x128xbf16, #tpu.memory_space<vmem>>, %arg3: memref<128x128xbf16, #tpu.memory_space<vmem>>, %arg4: memref<1x128xf32, #tpu.memory_space<vmem>>, %arg5: memref<128x128xbf16, #tpu.memory_space<vmem>>, %arg6: memref<128x128xbf16, #tpu.memory_space<vmem>>) attributes {dimension_semantics = [#tpu.dimension_semantics<parallel>, #tpu.dimension_semantics<parallel>], iteration_bounds = array<i64: 1, 1>, scalar_prefetch = 0 : i64, scratch_operands = 0 : i64, tpu.core_type = #tpu.core_type<tc>, window_params = [{transform_indices = @transform_0, window_bounds = array<i64: 128, 128>}, {transform_indices = @transform_1, window_bounds = array<i64: 128, 128>}, {transform_indices = @transform_2, window_bounds = array<i64: 1, 128>}, {transform_indices = @transform_3, window_bounds = array<i64: 128, 128>}, {transform_indices = @transform_4, window_bounds = array<i64: 128, 128>}]} {
    %c0 = arith.constant 0 : index
    %c0_0 = arith.constant 0 : index
    %0 = vector.load %arg2[%c0, %c0_0] : memref<128x128xbf16, #tpu.memory_space<vmem>>, vector<128x128xbf16>
    %c0_1 = arith.constant 0 : index
    %c0_2 = arith.constant 0 : index
    %1 = vector.load %arg3[%c0_1, %c0_2] : memref<128x128xbf16, #tpu.memory_space<vmem>>, vector<128x128xbf16>
    %cst = arith.constant dense<0.000000e+00> : vector<128x128xf32>
    %2 = tpu.matmul %0, %1, %cst {dimension_numbers = #tpu.dot_dimension_numbers<[1], [0], [0], [1], [0, 0, 1, 1], [], []>} : vector<128x128xbf16>, vector<128x128xbf16>, vector<128x128xf32> -> vector<128x128xf32>
    %c0_3 = arith.constant 0 : index
    %c0_4 = arith.constant 0 : index
    %3 = vector.load %arg4[%c0_3, %c0_4] : memref<1x128xf32, #tpu.memory_space<vmem>>, vector<1x128xf32>
    %c0_5 = arith.constant 0 : index
    %c0_6 = arith.constant 0 : index
    %4 = vector.load %arg5[%c0_5, %c0_6] : memref<128x128xbf16, #tpu.memory_space<vmem>>, vector<128x128xbf16>
    %5 = vector.broadcast %3 : vector<1x128xf32> to vector<128x128xf32>
    %6 = arith.addf %2, %5 : vector<128x128xf32>
    %7 = arith.extf %4 : vector<128x128xbf16> to vector<128x128xf32>
    %8 = arith.addf %6, %7 : vector<128x128xf32>
    %9 = arith.truncf %8 : vector<128x128xf32> to vector<128x128xbf16>
    %c0_7 = arith.constant 0 : index
    %c0_8 = arith.constant 0 : index
    %10 = vector.load %arg6[%c0_7, %c0_8] : memref<128x128xbf16, #tpu.memory_space<vmem>>, vector<128x128xbf16>
    tpu.vector_store %arg6[%c0_7, %c0_8], %9 {strides = array<i32>} : memref<128x128xbf16, #tpu.memory_space<vmem>>, vector<128x128xbf16>,
    return
  }
  func.func @transform_0(%arg0: i32, %arg1: i32) -> (i32, i32) {
    %c0_i32 = arith.constant 0 : i32
    %c0_i32_0 = arith.constant 0 : i32
    return %arg0, %c0_i32 : i32, i32
  }
  func.func @transform_1(%arg0: i32, %arg1: i32) -> (i32, i32) {
    %c0_i32 = arith.constant 0 : i32
    %c0_i32_0 = arith.constant 0 : i32
    return %c0_i32, %arg1 : i32, i32
  }
  func.func @transform_2(%arg0: i32, %arg1: i32) -> (i32, i32) {
    %c0_i32 = arith.constant 0 : i32
    %c0_i32_0 = arith.constant 0 : i32
    return %c0_i32, %arg1 : i32, i32
  }
  func.func @transform_3(%arg0: i32, %arg1: i32) -> (i32, i32) {
    %c0_i32 = arith.constant 0 : i32
    return %arg0, %arg1 : i32, i32
  }
  func.func @transform_4(%arg0: i32, %arg1: i32) -> (i32, i32) {
    %c0_i32 = arith.constant 0 : i32
    return %arg0, %arg1 : i32, i32
  }
}

module attributes {stable_mosaic.version = 11 : i64} {
  func.func @_mm_kernel_single(%arg0: i32, %arg1: i32, %arg2: memref<128x128xbf16, #tpu.memory_space<vmem>>, %arg3: memref<128x128xbf16, #tpu.memory_space<vmem>>, %arg4: memref<1x128xf32, #tpu.memory_space<vmem>>, %arg5: memref<128x128xbf16, #tpu.memory_space<vmem>>) attributes {dimension_semantics = [#tpu.dimension_semantics<parallel>, #tpu.dimension_semantics<parallel>], iteration_bounds = array<i64: 1, 1>, scalar_prefetch = 0 : i64, scratch_operands = 0 : i64, tpu.core_type = #tpu.core_type<tc>, window_params = [{transform_indices = @transform_0, window_bounds = array<i64: 128, 128>}, {transform_indices = @transform_1, window_bounds = array<i64: 128, 128>}, {transform_indices = @transform_2, window_bounds = array<i64: 1, 128>}, {transform_indices = @transform_3, window_bounds = array<i64: 128, 128>}]} {
    %c0 = arith.constant 0 : index
    %c0_0 = arith.constant 0 : index
    %0 = vector.load %arg2[%c0, %c0_0] : memref<128x128xbf16, #tpu.memory_space<vmem>>, vector<128x128xbf16>
    %c0_1 = arith.constant 0 : index
    %c0_2 = arith.constant 0 : index
    %1 = vector.load %arg3[%c0_1, %c0_2] : memref<128x128xbf16, #tpu.memory_space<vmem>>, vector<128x128xbf16>
    %cst = arith.constant dense<0.000000e+00> : vector<128x128xf32>
    %2 = tpu.matmul %0, %1, %cst {dimension_numbers = #tpu.dot_dimension_numbers<[1], [0], [0], [1], [0, 0, 1, 1], [], []>} : vector<128x128xbf16>, vector<128x128xbf16>, vector<128x128xf32> -> vector<128x128xf32>
    %c0_3 = arith.constant 0 : index
    %c0_4 = arith.constant 0 : index
    %3 = vector.load %arg4[%c0_3, %c0_4] : memref<1x128xf32, #tpu.memory_space<vmem>>, vector<1x128xf32>
    %4 = vector.broadcast %3 : vector<1x128xf32> to vector<128x128xf32>
    %5 = arith.addf %2, %4 : vector<128x128xf32>
    %6 = arith.truncf %5 : vector<128x128xf32> to vector<128x128xbf16>
    %c0_5 = arith.constant 0 : index
    %c0_6 = arith.constant 0 : index
    %7 = vector.load %arg5[%c0_5, %c0_6] : memref<128x128xbf16, #tpu.memory_space<vmem>>, vector<128x128xbf16>
    tpu.vector_store %arg5[%c0_5, %c0_6], %6 {strides = array<i32>} : memref<128x128xbf16, #tpu.memory_space<vmem>>, vector<128x128xbf16>,
    return
  }
  func.func @transform_0(%arg0: i32, %arg1: i32) -> (i32, i32) {
    %c0_i32 = arith.constant 0 : i32
    %c0_i32_0 = arith.constant 0 : i32
    return %arg0, %c0_i32 : i32, i32
  }
  func.func @transform_1(%arg0: i32, %arg1: i32) -> (i32, i32) {
    %c0_i32 = arith.constant 0 : i32
    %c0_i32_0 = arith.constant 0 : i32
    return %c0_i32, %arg1 : i32, i32
  }
  func.func @transform_2(%arg0: i32, %arg1: i32) -> (i32, i32) {
    %c0_i32 = arith.constant 0 : i32
    %c0_i32_0 = arith.constant 0 : i32
    return %c0_i32, %arg1 : i32, i32
  }
  func.func @transform_3(%arg0: i32, %arg1: i32) -> (i32, i32) {
    %c0_i32 = arith.constant 0 : i32
    return %arg0, %arg1 : i32, i32
  }
}

module attributes {stable_mosaic.version = 11 : i64} {
  func.func @_mm_kernel_single(%arg0: i32, %arg1: i32, %arg2: memref<128x256xbf16, #tpu.memory_space<vmem>>, %arg3: memref<256x128xbf16, #tpu.memory_space<vmem>>, %arg4: memref<1x128xf32, #tpu.memory_space<vmem>>, %arg5: memref<128x128xbf16, #tpu.memory_space<vmem>>, %arg6: memref<128x128xbf16, #tpu.memory_space<vmem>>) attributes {dimension_semantics = [#tpu.dimension_semantics<parallel>, #tpu.dimension_semantics<parallel>], iteration_bounds = array<i64: 1, 1>, scalar_prefetch = 0 : i64, scratch_operands = 0 : i64, tpu.core_type = #tpu.core_type<tc>, window_params = [{transform_indices = @transform_0, window_bounds = array<i64: 128, 256>}, {transform_indices = @transform_1, window_bounds = array<i64: 256, 128>}, {transform_indices = @transform_2, window_bounds = array<i64: 1, 128>}, {transform_indices = @transform_3, window_bounds = array<i64: 128, 128>}, {transform_indices = @transform_4, window_bounds = array<i64: 128, 128>}]} {
    %c0 = arith.constant 0 : index
    %c0_0 = arith.constant 0 : index
    %0 = vector.load %arg2[%c0, %c0_0] : memref<128x256xbf16, #tpu.memory_space<vmem>>, vector<128x256xbf16>
    %c0_1 = arith.constant 0 : index
    %c0_2 = arith.constant 0 : index
    %1 = vector.load %arg3[%c0_1, %c0_2] : memref<256x128xbf16, #tpu.memory_space<vmem>>, vector<256x128xbf16>
    %cst = arith.constant dense<0.000000e+00> : vector<128x128xf32>
    %2 = tpu.matmul %0, %1, %cst {dimension_numbers = #tpu.dot_dimension_numbers<[1], [0], [0], [1], [0, 0, 1, 1], [], []>} : vector<128x256xbf16>, vector<256x128xbf16>, vector<128x128xf32> -> vector<128x128xf32>
    %c0_3 = arith.constant 0 : index
    %c0_4 = arith.constant 0 : index
    %3 = vector.load %arg4[%c0_3, %c0_4] : memref<1x128xf32, #tpu.memory_space<vmem>>, vector<1x128xf32>
    %c0_5 = arith.constant 0 : index
    %c0_6 = arith.constant 0 : index
    %4 = vector.load %arg5[%c0_5, %c0_6] : memref<128x128xbf16, #tpu.memory_space<vmem>>, vector<128x128xbf16>
    %5 = vector.broadcast %3 : vector<1x128xf32> to vector<128x128xf32>
    %6 = arith.addf %2, %5 : vector<128x128xf32>
    %7 = arith.extf %4 : vector<128x128xbf16> to vector<128x128xf32>
    %8 = arith.addf %6, %7 : vector<128x128xf32>
    %9 = arith.truncf %8 : vector<128x128xf32> to vector<128x128xbf16>
    %c0_7 = arith.constant 0 : index
    %c0_8 = arith.constant 0 : index
    %10 = vector.load %arg6[%c0_7, %c0_8] : memref<128x128xbf16, #tpu.memory_space<vmem>>, vector<128x128xbf16>
    tpu.vector_store %arg6[%c0_7, %c0_8], %9 {strides = array<i32>} : memref<128x128xbf16, #tpu.memory_space<vmem>>, vector<128x128xbf16>,
    return
  }
  func.func @transform_0(%arg0: i32, %arg1: i32) -> (i32, i32) {
    %c0_i32 = arith.constant 0 : i32
    %c0_i32_0 = arith.constant 0 : i32
    return %arg0, %c0_i32 : i32, i32
  }
  func.func @transform_1(%arg0: i32, %arg1: i32) -> (i32, i32) {
    %c0_i32 = arith.constant 0 : i32
    %c0_i32_0 = arith.constant 0 : i32
    return %c0_i32, %arg1 : i32, i32
  }
  func.func @transform_2(%arg0: i32, %arg1: i32) -> (i32, i32) {
    %c0_i32 = arith.constant 0 : i32
    %c0_i32_0 = arith.constant 0 : i32
    return %c0_i32, %arg1 : i32, i32
  }
  func.func @transform_3(%arg0: i32, %arg1: i32) -> (i32, i32) {
    %c0_i32 = arith.constant 0 : i32
    return %arg0, %arg1 : i32, i32
  }
  func.func @transform_4(%arg0: i32, %arg1: i32) -> (i32, i32) {
    %c0_i32 = arith.constant 0 : i32
    return %arg0, %arg1 : i32, i32
  }
}

module attributes {stable_mosaic.version = 11 : i64} {
  func.func @_mm_kernel_single(%arg0: i32, %arg1: i32, %arg2: memref<128x256xbf16, #tpu.memory_space<vmem>>, %arg3: memref<256x128xbf16, #tpu.memory_space<vmem>>, %arg4: memref<1x128xf32, #tpu.memory_space<vmem>>, %arg5: memref<128x128xbf16, #tpu.memory_space<vmem>>) attributes {dimension_semantics = [#tpu.dimension_semantics<parallel>, #tpu.dimension_semantics<parallel>], iteration_bounds = array<i64: 1, 1>, scalar_prefetch = 0 : i64, scratch_operands = 0 : i64, tpu.core_type = #tpu.core_type<tc>, window_params = [{transform_indices = @transform_0, window_bounds = array<i64: 128, 256>}, {transform_indices = @transform_1, window_bounds = array<i64: 256, 128>}, {transform_indices = @transform_2, window_bounds = array<i64: 1, 128>}, {transform_indices = @transform_3, window_bounds = array<i64: 128, 128>}]} {
    %c0 = arith.constant 0 : index
    %c0_0 = arith.constant 0 : index
    %0 = vector.load %arg2[%c0, %c0_0] : memref<128x256xbf16, #tpu.memory_space<vmem>>, vector<128x256xbf16>
    %c0_1 = arith.constant 0 : index
    %c0_2 = arith.constant 0 : index
    %1 = vector.load %arg3[%c0_1, %c0_2] : memref<256x128xbf16, #tpu.memory_space<vmem>>, vector<256x128xbf16>
    %cst = arith.constant dense<0.000000e+00> : vector<128x128xf32>
    %2 = tpu.matmul %0, %1, %cst {dimension_numbers = #tpu.dot_dimension_numbers<[1], [0], [0], [1], [0, 0, 1, 1], [], []>} : vector<128x256xbf16>, vector<256x128xbf16>, vector<128x128xf32> -> vector<128x128xf32>
    %c0_3 = arith.constant 0 : index
    %c0_4 = arith.constant 0 : index
    %3 = vector.load %arg4[%c0_3, %c0_4] : memref<1x128xf32, #tpu.memory_space<vmem>>, vector<1x128xf32>
    %4 = vector.broadcast %3 : vector<1x128xf32> to vector<128x128xf32>
    %5 = arith.addf %2, %4 : vector<128x128xf32>
    %cst_5 = arith.constant 0.000000e+00 : f32
    %6 = vector.broadcast %cst_5 : f32 to vector<128x128xf32>
    %7 = arith.maximumf %5, %6 : vector<128x128xf32>
    %8 = arith.truncf %7 : vector<128x128xf32> to vector<128x128xbf16>
    %c0_6 = arith.constant 0 : index
    %c0_7 = arith.constant 0 : index
    %9 = vector.load %arg5[%c0_6, %c0_7] : memref<128x128xbf16, #tpu.memory_space<vmem>>, vector<128x128xbf16>
    tpu.vector_store %arg5[%c0_6, %c0_7], %8 {strides = array<i32>} : memref<128x128xbf16, #tpu.memory_space<vmem>>, vector<128x128xbf16>,
    return
  }
  func.func @transform_0(%arg0: i32, %arg1: i32) -> (i32, i32) {
    %c0_i32 = arith.constant 0 : i32
    %c0_i32_0 = arith.constant 0 : i32
    return %arg0, %c0_i32 : i32, i32
  }
  func.func @transform_1(%arg0: i32, %arg1: i32) -> (i32, i32) {
    %c0_i32 = arith.constant 0 : i32
    %c0_i32_0 = arith.constant 0 : i32
    return %c0_i32, %arg1 : i32, i32
  }
  func.func @transform_2(%arg0: i32, %arg1: i32) -> (i32, i32) {
    %c0_i32 = arith.constant 0 : i32
    %c0_i32_0 = arith.constant 0 : i32
    return %c0_i32, %arg1 : i32, i32
  }
  func.func @transform_3(%arg0: i32, %arg1: i32) -> (i32, i32) {
    %c0_i32 = arith.constant 0 : i32
    return %arg0, %arg1 : i32, i32
  }
}

module attributes {stable_mosaic.version = 11 : i64} {
  func.func @_mm_kernel_single(%arg0: i32, %arg1: i32, %arg2: memref<128x384xbf16, #tpu.memory_space<vmem>>, %arg3: memref<384x128xbf16, #tpu.memory_space<vmem>>, %arg4: memref<1x128xf32, #tpu.memory_space<vmem>>, %arg5: memref<128x128xbf16, #tpu.memory_space<vmem>>) attributes {dimension_semantics = [#tpu.dimension_semantics<parallel>, #tpu.dimension_semantics<parallel>], iteration_bounds = array<i64: 1, 1>, scalar_prefetch = 0 : i64, scratch_operands = 0 : i64, tpu.core_type = #tpu.core_type<tc>, window_params = [{transform_indices = @transform_0, window_bounds = array<i64: 128, 384>}, {transform_indices = @transform_1, window_bounds = array<i64: 384, 128>}, {transform_indices = @transform_2, window_bounds = array<i64: 1, 128>}, {transform_indices = @transform_3, window_bounds = array<i64: 128, 128>}]} {
    %c0 = arith.constant 0 : index
    %c0_0 = arith.constant 0 : index
    %0 = vector.load %arg2[%c0, %c0_0] : memref<128x384xbf16, #tpu.memory_space<vmem>>, vector<128x384xbf16>
    %c0_1 = arith.constant 0 : index
    %c0_2 = arith.constant 0 : index
    %1 = vector.load %arg3[%c0_1, %c0_2] : memref<384x128xbf16, #tpu.memory_space<vmem>>, vector<384x128xbf16>
    %cst = arith.constant dense<0.000000e+00> : vector<128x128xf32>
    %2 = tpu.matmul %0, %1, %cst {dimension_numbers = #tpu.dot_dimension_numbers<[1], [0], [0], [1], [0, 0, 1, 1], [], []>} : vector<128x384xbf16>, vector<384x128xbf16>, vector<128x128xf32> -> vector<128x128xf32>
    %c0_3 = arith.constant 0 : index
    %c0_4 = arith.constant 0 : index
    %3 = vector.load %arg4[%c0_3, %c0_4] : memref<1x128xf32, #tpu.memory_space<vmem>>, vector<1x128xf32>
    %4 = vector.broadcast %3 : vector<1x128xf32> to vector<128x128xf32>
    %5 = arith.addf %2, %4 : vector<128x128xf32>
    %cst_5 = arith.constant 0.000000e+00 : f32
    %6 = vector.broadcast %cst_5 : f32 to vector<128x128xf32>
    %7 = arith.maximumf %5, %6 : vector<128x128xf32>
    %8 = arith.truncf %7 : vector<128x128xf32> to vector<128x128xbf16>
    %c0_6 = arith.constant 0 : index
    %c0_7 = arith.constant 0 : index
    %9 = vector.load %arg5[%c0_6, %c0_7] : memref<128x128xbf16, #tpu.memory_space<vmem>>, vector<128x128xbf16>
    tpu.vector_store %arg5[%c0_6, %c0_7], %8 {strides = array<i32>} : memref<128x128xbf16, #tpu.memory_space<vmem>>, vector<128x128xbf16>,
    return
  }
  func.func @transform_0(%arg0: i32, %arg1: i32) -> (i32, i32) {
    %c0_i32 = arith.constant 0 : i32
    %c0_i32_0 = arith.constant 0 : i32
    return %arg0, %c0_i32 : i32, i32
  }
  func.func @transform_1(%arg0: i32, %arg1: i32) -> (i32, i32) {
    %c0_i32 = arith.constant 0 : i32
    %c0_i32_0 = arith.constant 0 : i32
    return %c0_i32, %arg1 : i32, i32
  }
  func.func @transform_2(%arg0: i32, %arg1: i32) -> (i32, i32) {
    %c0_i32 = arith.constant 0 : i32
    %c0_i32_0 = arith.constant 0 : i32
    return %c0_i32, %arg1 : i32, i32
  }
  func.func @transform_3(%arg0: i32, %arg1: i32) -> (i32, i32) {
    %c0_i32 = arith.constant 0 : i32
    return %arg0, %arg1 : i32, i32
  }
}

module attributes {stable_mosaic.version = 11 : i64} {
  func.func @_mm_kernel_single(%arg0: i32, %arg1: i32, %arg2: memref<128x384xbf16, #tpu.memory_space<vmem>>, %arg3: memref<384x128xbf16, #tpu.memory_space<vmem>>, %arg4: memref<1x128xf32, #tpu.memory_space<vmem>>, %arg5: memref<128x128xbf16, #tpu.memory_space<vmem>>, %arg6: memref<128x128xbf16, #tpu.memory_space<vmem>>) attributes {dimension_semantics = [#tpu.dimension_semantics<parallel>, #tpu.dimension_semantics<parallel>], iteration_bounds = array<i64: 1, 1>, scalar_prefetch = 0 : i64, scratch_operands = 0 : i64, tpu.core_type = #tpu.core_type<tc>, window_params = [{transform_indices = @transform_0, window_bounds = array<i64: 128, 384>}, {transform_indices = @transform_1, window_bounds = array<i64: 384, 128>}, {transform_indices = @transform_2, window_bounds = array<i64: 1, 128>}, {transform_indices = @transform_3, window_bounds = array<i64: 128, 128>}, {transform_indices = @transform_4, window_bounds = array<i64: 128, 128>}]} {
    %c0 = arith.constant 0 : index
    %c0_0 = arith.constant 0 : index
    %0 = vector.load %arg2[%c0, %c0_0] : memref<128x384xbf16, #tpu.memory_space<vmem>>, vector<128x384xbf16>
    %c0_1 = arith.constant 0 : index
    %c0_2 = arith.constant 0 : index
    %1 = vector.load %arg3[%c0_1, %c0_2] : memref<384x128xbf16, #tpu.memory_space<vmem>>, vector<384x128xbf16>
    %cst = arith.constant dense<0.000000e+00> : vector<128x128xf32>
    %2 = tpu.matmul %0, %1, %cst {dimension_numbers = #tpu.dot_dimension_numbers<[1], [0], [0], [1], [0, 0, 1, 1], [], []>} : vector<128x384xbf16>, vector<384x128xbf16>, vector<128x128xf32> -> vector<128x128xf32>
    %c0_3 = arith.constant 0 : index
    %c0_4 = arith.constant 0 : index
    %3 = vector.load %arg4[%c0_3, %c0_4] : memref<1x128xf32, #tpu.memory_space<vmem>>, vector<1x128xf32>
    %c0_5 = arith.constant 0 : index
    %c0_6 = arith.constant 0 : index
    %4 = vector.load %arg5[%c0_5, %c0_6] : memref<128x128xbf16, #tpu.memory_space<vmem>>, vector<128x128xbf16>
    %5 = vector.broadcast %3 : vector<1x128xf32> to vector<128x128xf32>
    %6 = arith.addf %2, %5 : vector<128x128xf32>
    %7 = arith.extf %4 : vector<128x128xbf16> to vector<128x128xf32>
    %8 = arith.addf %6, %7 : vector<128x128xf32>
    %9 = arith.truncf %8 : vector<128x128xf32> to vector<128x128xbf16>
    %c0_7 = arith.constant 0 : index
    %c0_8 = arith.constant 0 : index
    %10 = vector.load %arg6[%c0_7, %c0_8] : memref<128x128xbf16, #tpu.memory_space<vmem>>, vector<128x128xbf16>
    tpu.vector_store %arg6[%c0_7, %c0_8], %9 {strides = array<i32>} : memref<128x128xbf16, #tpu.memory_space<vmem>>, vector<128x128xbf16>,
    return
  }
  func.func @transform_0(%arg0: i32, %arg1: i32) -> (i32, i32) {
    %c0_i32 = arith.constant 0 : i32
    %c0_i32_0 = arith.constant 0 : i32
    return %arg0, %c0_i32 : i32, i32
  }
  func.func @transform_1(%arg0: i32, %arg1: i32) -> (i32, i32) {
    %c0_i32 = arith.constant 0 : i32
    %c0_i32_0 = arith.constant 0 : i32
    return %c0_i32, %arg1 : i32, i32
  }
  func.func @transform_2(%arg0: i32, %arg1: i32) -> (i32, i32) {
    %c0_i32 = arith.constant 0 : i32
    %c0_i32_0 = arith.constant 0 : i32
    return %c0_i32, %arg1 : i32, i32
  }
  func.func @transform_3(%arg0: i32, %arg1: i32) -> (i32, i32) {
    %c0_i32 = arith.constant 0 : i32
    return %arg0, %arg1 : i32, i32
  }
  func.func @transform_4(%arg0: i32, %arg1: i32) -> (i32, i32) {
    %c0_i32 = arith.constant 0 : i32
    return %arg0, %arg1 : i32, i32
  }
}

module attributes {stable_mosaic.version = 11 : i64} {
  func.func @_mm_kernel_single(%arg0: i32, %arg1: i32, %arg2: memref<128x640xbf16, #tpu.memory_space<vmem>>, %arg3: memref<640x128xbf16, #tpu.memory_space<vmem>>, %arg4: memref<1x128xf32, #tpu.memory_space<vmem>>, %arg5: memref<128x128xbf16, #tpu.memory_space<vmem>>, %arg6: memref<128x128xbf16, #tpu.memory_space<vmem>>) attributes {dimension_semantics = [#tpu.dimension_semantics<parallel>, #tpu.dimension_semantics<parallel>], iteration_bounds = array<i64: 1, 1>, scalar_prefetch = 0 : i64, scratch_operands = 0 : i64, tpu.core_type = #tpu.core_type<tc>, window_params = [{transform_indices = @transform_0, window_bounds = array<i64: 128, 640>}, {transform_indices = @transform_1, window_bounds = array<i64: 640, 128>}, {transform_indices = @transform_2, window_bounds = array<i64: 1, 128>}, {transform_indices = @transform_3, window_bounds = array<i64: 128, 128>}, {transform_indices = @transform_4, window_bounds = array<i64: 128, 128>}]} {
    %c0 = arith.constant 0 : index
    %c0_0 = arith.constant 0 : index
    %0 = vector.load %arg2[%c0, %c0_0] : memref<128x640xbf16, #tpu.memory_space<vmem>>, vector<128x640xbf16>
    %c0_1 = arith.constant 0 : index
    %c0_2 = arith.constant 0 : index
    %1 = vector.load %arg3[%c0_1, %c0_2] : memref<640x128xbf16, #tpu.memory_space<vmem>>, vector<640x128xbf16>
    %cst = arith.constant dense<0.000000e+00> : vector<128x128xf32>
    %2 = tpu.matmul %0, %1, %cst {dimension_numbers = #tpu.dot_dimension_numbers<[1], [0], [0], [1], [0, 0, 1, 1], [], []>} : vector<128x640xbf16>, vector<640x128xbf16>, vector<128x128xf32> -> vector<128x128xf32>
    %c0_3 = arith.constant 0 : index
    %c0_4 = arith.constant 0 : index
    %3 = vector.load %arg4[%c0_3, %c0_4] : memref<1x128xf32, #tpu.memory_space<vmem>>, vector<1x128xf32>
    %c0_5 = arith.constant 0 : index
    %c0_6 = arith.constant 0 : index
    %4 = vector.load %arg5[%c0_5, %c0_6] : memref<128x128xbf16, #tpu.memory_space<vmem>>, vector<128x128xbf16>
    %5 = vector.broadcast %3 : vector<1x128xf32> to vector<128x128xf32>
    %6 = arith.addf %2, %5 : vector<128x128xf32>
    %7 = arith.extf %4 : vector<128x128xbf16> to vector<128x128xf32>
    %8 = arith.addf %6, %7 : vector<128x128xf32>
    %9 = arith.truncf %8 : vector<128x128xf32> to vector<128x128xbf16>
    %c0_7 = arith.constant 0 : index
    %c0_8 = arith.constant 0 : index
    %10 = vector.load %arg6[%c0_7, %c0_8] : memref<128x128xbf16, #tpu.memory_space<vmem>>, vector<128x128xbf16>
    tpu.vector_store %arg6[%c0_7, %c0_8], %9 {strides = array<i32>} : memref<128x128xbf16, #tpu.memory_space<vmem>>, vector<128x128xbf16>,
    return
  }
  func.func @transform_0(%arg0: i32, %arg1: i32) -> (i32, i32) {
    %c0_i32 = arith.constant 0 : i32
    %c0_i32_0 = arith.constant 0 : i32
    return %arg0, %c0_i32 : i32, i32
  }
  func.func @transform_1(%arg0: i32, %arg1: i32) -> (i32, i32) {
    %c0_i32 = arith.constant 0 : i32
    %c0_i32_0 = arith.constant 0 : i32
    return %c0_i32, %arg1 : i32, i32
  }
  func.func @transform_2(%arg0: i32, %arg1: i32) -> (i32, i32) {
    %c0_i32 = arith.constant 0 : i32
    %c0_i32_0 = arith.constant 0 : i32
    return %c0_i32, %arg1 : i32, i32
  }
  func.func @transform_3(%arg0: i32, %arg1: i32) -> (i32, i32) {
    %c0_i32 = arith.constant 0 : i32
    return %arg0, %arg1 : i32, i32
  }
  func.func @transform_4(%arg0: i32, %arg1: i32) -> (i32, i32) {
    %c0_i32 = arith.constant 0 : i32
    return %arg0, %arg1 : i32, i32
  }
}

module attributes {stable_mosaic.version = 11 : i64} {
  func.func @_decoder_kernel(%arg0: i32, %arg1: memref<8x1x128xbf16, #tpu.memory_space<vmem>>, %arg2: memref<128x128xbf16, #tpu.memory_space<vmem>>, %arg3: memref<1x128xf32, #tpu.memory_space<vmem>>, %arg4: memref<8x128xf32, #tpu.memory_space<vmem>>) attributes {dimension_semantics = [#tpu.dimension_semantics<arbitrary>], iteration_bounds = array<i64: 1>, scalar_prefetch = 0 : i64, scratch_operands = 0 : i64, tpu.core_type = #tpu.core_type<tc>, window_params = [{pipeline_mode = #tpu.pipeline_mode<synchronous>, transform_indices = @transform_0, window_bounds = array<i64: 8, 1, 128>}, {pipeline_mode = #tpu.pipeline_mode<synchronous>, transform_indices = @transform_1, window_bounds = array<i64: 128, 128>}, {pipeline_mode = #tpu.pipeline_mode<synchronous>, transform_indices = @transform_2, window_bounds = array<i64: 1, 128>}, {pipeline_mode = #tpu.pipeline_mode<synchronous>, transform_indices = @transform_3, window_bounds = array<i64: 8, 128>}]} {
    %c0 = arith.constant 0 : index
    %c0_0 = arith.constant 0 : index
    %c0_1 = arith.constant 0 : index
    %0 = vector.load %arg1[%c0, %c0_0, %c0_1] : memref<8x1x128xbf16, #tpu.memory_space<vmem>>, vector<8x1x128xbf16>
    %1 = arith.extf %0 : vector<8x1x128xbf16> to vector<8x1x128xf32>
    %cst = arith.constant dense<0.000000e+00> : vector<8x128xf32>
    %2 = vector.multi_reduction <add>, %1, %cst [1] : vector<8x1x128xf32> to vector<8x128xf32>
    %cst_2 = arith.constant 1.000000e+00 : f32
    %3 = vector.broadcast %cst_2 : f32 to vector<8x128xf32>
    %4 = arith.divf %2, %3 : vector<8x128xf32>
    %5 = arith.truncf %4 : vector<8x128xf32> to vector<8x128xbf16>
    %c0_3 = arith.constant 0 : index
    %c0_4 = arith.constant 0 : index
    %6 = vector.load %arg2[%c0_3, %c0_4] : memref<128x128xbf16, #tpu.memory_space<vmem>>, vector<128x128xbf16>
    %cst_5 = arith.constant dense<0.000000e+00> : vector<8x128xf32>
    %7 = tpu.matmul %5, %6, %cst_5 {dimension_numbers = #tpu.dot_dimension_numbers<[1], [0], [0], [1], [0, 0, 1, 1], [], []>} : vector<8x128xbf16>, vector<128x128xbf16>, vector<8x128xf32> -> vector<8x128xf32>
    %c0_6 = arith.constant 0 : index
    %c0_7 = arith.constant 0 : index
    %8 = vector.load %arg3[%c0_6, %c0_7] : memref<1x128xf32, #tpu.memory_space<vmem>>, vector<1x128xf32>
    %9 = vector.broadcast %8 : vector<1x128xf32> to vector<8x128xf32>
    %10 = arith.addf %7, %9 : vector<8x128xf32>
    %cst_8 = arith.constant 5.000000e-01 : f32
    %11 = vector.broadcast %cst_8 : f32 to vector<8x128xf32>
    %12 = arith.mulf %11, %10 : vector<8x128xf32>
    %13 = math.tanh %12 : vector<8x128xf32>
    %cst_9 = arith.constant 5.000000e-01 : f32
    %14 = vector.broadcast %cst_9 : f32 to vector<8x128xf32>
    %15 = arith.mulf %14, %13 : vector<8x128xf32>
    %cst_10 = arith.constant 5.000000e-01 : f32
    %16 = vector.broadcast %cst_10 : f32 to vector<8x128xf32>
    %17 = arith.addf %15, %16 : vector<8x128xf32>
    %c0_11 = arith.constant 0 : index
    %c0_12 = arith.constant 0 : index
    %18 = vector.load %arg4[%c0_11, %c0_12] : memref<8x128xf32, #tpu.memory_space<vmem>>, vector<8x128xf32>
    tpu.vector_store %arg4[%c0_11, %c0_12], %17 {strides = array<i32>} : memref<8x128xf32, #tpu.memory_space<vmem>>, vector<8x128xf32>,
    return
  }
  func.func @transform_0(%arg0: i32) -> (i32, i32, i32) {
    %c0_i32 = arith.constant 0 : i32
    %c0_i32_0 = arith.constant 0 : i32
    %c0_i32_1 = arith.constant 0 : i32
    %c0_i32_2 = arith.constant 0 : i32
    return %c0_i32, %c0_i32_0, %c0_i32_1 : i32, i32, i32
  }
  func.func @transform_1(%arg0: i32) -> (i32, i32) {
    %c0_i32 = arith.constant 0 : i32
    %c0_i32_0 = arith.constant 0 : i32
    %c0_i32_1 = arith.constant 0 : i32
    return %c0_i32, %c0_i32_0 : i32, i32
  }
  func.func @transform_2(%arg0: i32) -> (i32, i32) {
    %c0_i32 = arith.constant 0 : i32
    %c0_i32_0 = arith.constant 0 : i32
    %c0_i32_1 = arith.constant 0 : i32
    return %c0_i32, %c0_i32_0 : i32, i32
  }
  func.func @transform_3(%arg0: i32) -> (i32, i32) {
    %c0_i32 = arith.constant 0 : i32
    %c0_i32_0 = arith.constant 0 : i32
    %c0_i32_1 = arith.constant 0 : i32
    return %c0_i32, %c0_i32_0 : i32, i32
  }
}

</mosaic_0001>

<bundles_post_ra>
// kernel: _lambda_.13
= control target key start
LH: loop header
LB: loop body
LE: loop exit
PB: predicated region body
PF: predicated region fallthrough
CT: control target
= control target key end

     0   :  { %s1494_s12 = smov 0   ;;  %s1496_s13 = smov 0   ;;  %s1668_s0 = inlined_call_operand.vmem [shape: bf16[512,256], index: 0, kind: input, shape index: {}]   ;;  %s1669_s1 = inlined_call_operand.vmem [shape: bf16[256,128], index: 1, kind: input, shape index: {}]   ;;  %s1670_s2 = inlined_call_operand.vmem [shape: f32[1,128], index: 2, kind: input, shape index: {}]   ;;  %s1671_s3 = inlined_call_operand.vmem [shape: bf16[512,128], index: 3, kind: output, shape index: {}]  }
   0x1   :  { %s1498_s14 = smov 0  }
   0x2 LB: > { %s25_s15 = sadd.s32 1, %s1468_s13  ;;  %p1017_p0 = scmp.ge.s32.totalorder %s1472_s14, 1  ;;  %s1472_s14 = sphi %s1498_s14, %s13_s14   ;;  %s1468_s13 = sphi %s1496_s13, %s1673_s13   ;;  %s1464_s12 = sphi %s1494_s12, %s1672_s12  }
   0x3   : > { %p27_p1 = scmp.ge.s32.totalorder %s25_s15, 2  ;;  %p170_p2 = scmp.lt.s32.totalorder %s1472_s14, 3 }
   0x5   : > { %s1675_s15 = smov (%p27_p1, %s25_s15), 0  ;;  %p171_p3 = pnand %p1017_p0, %p170_p2 }
   0x6   : > { %v1386_v0 = vld [vmem:[%s1669_s1 + $0x40] sm:$0xff] (!%p171_p3)   ;;  %s1018_s18 = sshll.u32 (!%p171_p3), %s1464_s12, 5  ;;  %v1388_v2 = vld [vmem:[%s1669_s1 + $0x48] sm:$0xff] (!%p171_p3)   ;;  %v1390_v4 = vld [vmem:[%s1669_s1 + $0x50] sm:$0xff] (!%p171_p3)  }
   0x7   : > { %174 = sbr.rel (%p171_p3) target bundleno = 320 (0x140), region = 32  ;;  %v1387_v1 = vld [vmem:[%s1669_s1] sm:$0xff] (!%p171_p3)   ;;  %1234 = vmatprep.subr.bf16.mxu0 (!%p171_p3), %v1386_v0  ;;  %1346 = vmatprep.subr.bf16.mxu1 (!%p171_p3), %v1386_v0  ;;  %v1389_v3 = vld [vmem:[%s1669_s1 + $0x8] sm:$0xff] (!%p171_p3)   ;;  %p206_p4 = scmp.lt.s32.totalorder (!%p171_p3), %s1018_s18, 63  ;;  %v1391_v5 = vld [vmem:[%s1669_s1 + $0x10] sm:$0xff] (!%p171_p3)  }
   0x8   : > { %1235 = vmatpush3.bf16.msra.mxu0 (!%p171_p3), %v1387_v1  ;;  %1354 = vmatpush3.bf16.msra.mxu1 (!%p171_p3), %v1387_v1  ;;  %v1392_v6 = vld [vmem:[%s1669_s1 + $0x58] sm:$0xff] (!%p171_p3)   ;;  %v1394_v8 = vld [vmem:[%s1669_s1 + $0x60] sm:$0xff] (!%p171_p3)   ;;  %v1396_v10 = vld [vmem:[%s1669_s1 + $0x68] sm:$0xff] (!%p171_p3)  }
   0x9   : > { %1236 = vmatprep.subr.bf16.mxu0 (!%p171_p3), %v1388_v2  ;;  %1347 = vmatprep.subr.bf16.mxu1 (!%p171_p3), %v1388_v2  ;;  %v1393_v7 = vld [vmem:[%s1669_s1 + $0x18] sm:$0xff] (!%p171_p3)   ;;  %v1395_v9 = vld [vmem:[%s1669_s1 + $0x20] sm:$0xff] (!%p171_p3)   ;;  %v1397_v13 = vld [vmem:[%s1669_s1 + $0x28] sm:$0xff] (!%p171_p3)  }
   0xa   : > { %v1398_v14 = vld [vmem:[%s1669_s1 + $0x70] sm:$0xff] (!%p171_p3)   ;;  %v1400_v16 = vld [vmem:[%s1669_s1 + $0x78] sm:$0xff] (!%p171_p3)   ;;  %v1603_v50 = vld [vmem:[%s1670_s2] ss:$0 sm:$0xff] (!%p171_p3) }
   0xb   : > { %v1399_v15 = vld [vmem:[%s1669_s1 + $0x30] sm:$0xff] (!%p171_p3)   ;;  %v1401_v17 = vld [vmem:[%s1669_s1 + $0x38] sm:$0xff] (!%p171_p3)  }
   0xc   : > { %1237 = vmatpush3.bf16.msra.mxu0 (!%p171_p3), %v1389_v3  ;;  %1355 = vmatpush3.bf16.msra.mxu1 (!%p171_p3), %v1389_v3 }
   0xd   : > { %1238 = vmatprep.subr.bf16.mxu0 (!%p171_p3), %v1390_v4  ;;  %1348 = vmatprep.subr.bf16.mxu1 (!%p171_p3), %v1390_v4 }
   0xe   : > { %s1677_s18 = smov (!%p206_p4, %s1018_s18), 63 }
   0xf   : > { %s1106_s6 = sshll.u32 %s1677_s18, 3  ;;  %s1022_s5 = sshll.u32 %s1677_s18, 2 }
  0x10   : > { %1239 = vmatpush3.bf16.msra.mxu0 %v1391_v5  ;;  %1356 = vmatpush3.bf16.msra.mxu1 %v1391_v5  ;;  %s1545_s11 = scalar_lea.vmem %s1668_s0, %s1106_s6  ;;  %s1613_s8 = scalar_lea.vmem %s1671_s3, %s1022_s5 }
  0x11   : > { %1240 = vmatprep.subr.bf16.mxu0 %v1392_v6  ;;  %1349 = vmatprep.subr.bf16.mxu1 %v1392_v6  ;;  %v1404_v11 = vld [vmem:[%s1545_s11 + $0x4] ss:$8 sps:$4 sm:$0xff]   ;;  %v1402_v18 = vld [vmem:[%s1545_s11] ss:$8 sps:$4 sm:$0xff]   ;;  %v1408_v20 = vld [vmem:[%s1545_s11 + $0x14] ss:$8 sps:$4 sm:$0xff]  }
  0x12   : > { %v1407_v12 = vld [vmem:[%s1545_s11 + $0x84] ss:$8 sps:$4 sm:$0xff]   ;;  %588 = vmatprep.mubr.bf16.mxu0 %v1404_v11  ;;  %v1405_v19 = vld [vmem:[%s1545_s11 + $0x80] ss:$8 sps:$4 sm:$0xff]   ;;  %v1410_v21 = vld [vmem:[%s1545_s11 + $0x94] ss:$8 sps:$4 sm:$0xff]  }
  0x13   : > { %652 = vmatprep.mubr.bf16.mxu1 %v1407_v12  ;;  %v1412_v22 = vld [vmem:[%s1545_s11 + $0x10] ss:$8 sps:$4 sm:$0xff]   ;;  %v1414_v24 = vld [vmem:[%s1545_s11 + $0x24] ss:$8 sps:$4 sm:$0xff]   ;;  %v1418_v26 = vld [vmem:[%s1545_s11 + $0x20] ss:$8 sps:$4 sm:$0xff]  }
  0x14   : > { %1241 = vmatpush3.bf16.msra.mxu0 %v1393_v7  ;;  %1357 = vmatpush3.bf16.msra.mxu1 %v1393_v7  ;;  %v1413_v23 = vld [vmem:[%s1545_s11 + $0x90] ss:$8 sps:$4 sm:$0xff]   ;;  %v1416_v25 = vld [vmem:[%s1545_s11 + $0xa4] ss:$8 sps:$4 sm:$0xff]   ;;  %v1419_v27 = vld [vmem:[%s1545_s11 + $0xa0] ss:$8 sps:$4 sm:$0xff]  }
  0x15   : > { %1242 = vmatprep.subr.bf16.mxu0 %v1394_v8  ;;  %1350 = vmatprep.subr.bf16.mxu1 %v1394_v8  ;;  %v1420_v28 = vld [vmem:[%s1545_s11 + $0x34] ss:$8 sps:$4 sm:$0xff]   ;;  %v1424_v30 = vld [vmem:[%s1545_s11 + $0x30] ss:$8 sps:$4 sm:$0xff]   ;;  %v1426_v32 = vld [vmem:[%s1545_s11 + $0x44] ss:$8 sps:$4 sm:$0xff]  }
  0x16   : > { %v1422_v29 = vld [vmem:[%s1545_s11 + $0xb4] ss:$8 sps:$4 sm:$0xff]   ;;  %v1425_v31 = vld [vmem:[%s1545_s11 + $0xb0] ss:$8 sps:$4 sm:$0xff]   ;;  %v1428_v33 = vld [vmem:[%s1545_s11 + $0xc4] ss:$8 sps:$4 sm:$0xff]  }
  0x17   : > { %v1430_v34 = vld [vmem:[%s1545_s11 + $0x40] ss:$8 sps:$4 sm:$0xff]   ;;  %v1432_v36 = vld [vmem:[%s1545_s11 + $0x54] ss:$8 sps:$4 sm:$0xff]   ;;  %v1436_v38 = vld [vmem:[%s1545_s11 + $0x50] ss:$8 sps:$4 sm:$0xff]  }
  0x18   : > { %1243 = vmatpush3.bf16.msra.mxu0 %v1395_v9  ;;  %1358 = vmatpush3.bf16.msra.mxu1 %v1395_v9  ;;  %v1431_v35 = vld [vmem:[%s1545_s11 + $0xc0] ss:$8 sps:$4 sm:$0xff]   ;;  %v1434_v37 = vld [vmem:[%s1545_s11 + $0xd4] ss:$8 sps:$4 sm:$0xff]   ;;  %v1437_v39 = vld [vmem:[%s1545_s11 + $0xd0] ss:$8 sps:$4 sm:$0xff]  }
  0x19   : > { %1244 = vmatprep.subr.bf16.mxu0 %v1396_v10  ;;  %1351 = vmatprep.subr.bf16.mxu1 %v1396_v10  ;;  %v1438_v40 = vld [vmem:[%s1545_s11 + $0x64] ss:$8 sps:$4 sm:$0xff]   ;;  %v1442_v42 = vld [vmem:[%s1545_s11 + $0x60] ss:$8 sps:$4 sm:$0xff]   ;;  %v1444_v44 = vld [vmem:[%s1545_s11 + $0x74] ss:$8 sps:$4 sm:$0xff]  }
  0x1a   : > { %v1440_v41 = vld [vmem:[%s1545_s11 + $0xe4] ss:$8 sps:$4 sm:$0xff]   ;;  %v1443_v43 = vld [vmem:[%s1545_s11 + $0xe0] ss:$8 sps:$4 sm:$0xff]   ;;  %v1446_v45 = vld [vmem:[%s1545_s11 + $0xf4] ss:$8 sps:$4 sm:$0xff]  }
  0x1b   : > { %v1448_v46 = vld [vmem:[%s1545_s11 + $0x70] ss:$8 sps:$4 sm:$0xff]  }
  0x1c   : > { %1245 = vmatpush3.bf16.msra.mxu0 %v1397_v13  ;;  %1359 = vmatpush3.bf16.msra.mxu1 %v1397_v13  ;;  %v1449_v47 = vld [vmem:[%s1545_s11 + $0xf0] ss:$8 sps:$4 sm:$0xff]  }
  0x1d   : > { %1246 = vmatprep.subr.bf16.mxu0 %v1398_v14  ;;  %1352 = vmatprep.subr.bf16.mxu1 %v1398_v14 }
  0x20   : > { %1247 = vmatpush3.bf16.msra.mxu0 %v1399_v15  ;;  %1360 = vmatpush3.bf16.msra.mxu1 %v1399_v15 }
  0x21   : > { %1248 = vmatprep.subr.bf16.mxu0 %v1400_v16  ;;  %1353 = vmatprep.subr.bf16.mxu1 %v1400_v16 }
  0x24   : > { %1249 = vmatpush3.bf16.msra.mxu0 %v1401_v17  ;;  %1361 = vmatpush3.bf16.msra.mxu1 %v1401_v17 }
  0x27   : > { %589 = vmatmul.mubr.bf16.vlgmr.msra.gmra.mrb[0].mxu0 %v1402_v18  ;;  %653 = vmatmul.mubr.bf16.vlgmr.msra.gmra.mrb[0].mxu1 %v1405_v19 }
  0x28   : > { %596 = vmatprep.mubr.bf16.mxu0 %v1408_v20  ;;  %660 = vmatprep.mubr.bf16.mxu1 %v1410_v21 }
  0x2f   : > { %597 = vmatmul.mubr.bf16.gmra.mrb[4].mxu0 %v1412_v22  ;;  %661 = vmatmul.mubr.bf16.gmra.mrb[4].mxu1 %v1413_v23 }
  0x30   : > { %604 = vmatprep.mubr.bf16.mxu0 %v1414_v24  ;;  %668 = vmatprep.mubr.bf16.mxu1 %v1416_v25 }
  0x37   : > { %605 = vmatmul.mubr.bf16.gmra.mrb[8].mxu0 %v1418_v26  ;;  %669 = vmatmul.mubr.bf16.gmra.mrb[8].mxu1 %v1419_v27 }
  0x38   : > { %612 = vmatprep.mubr.bf16.mxu0 %v1420_v28  ;;  %676 = vmatprep.mubr.bf16.mxu1 %v1422_v29 }
  0x3f   : > { %613 = vmatmul.mubr.bf16.gmra.mrb[12].mxu0 %v1424_v30  ;;  %677 = vmatmul.mubr.bf16.gmra.mrb[12].mxu1 %v1425_v31 }
  0x40   : > { %620 = vmatprep.mubr.bf16.mxu0 %v1426_v32  ;;  %684 = vmatprep.mubr.bf16.mxu1 %v1428_v33 }
  0x47   : > { %621 = vmatmul.mubr.bf16.gmra.mrb[16].mxu0 %v1430_v34  ;;  %685 = vmatmul.mubr.bf16.gmra.mrb[16].mxu1 %v1431_v35 }
  0x48   : > { %628 = vmatprep.mubr.bf16.mxu0 %v1432_v36  ;;  %692 = vmatprep.mubr.bf16.mxu1 %v1434_v37 }
  0x4f   : > { %629 = vmatmul.mubr.bf16.gmra.mrb[20].mxu0 %v1436_v38  ;;  %693 = vmatmul.mubr.bf16.gmra.mrb[20].mxu1 %v1437_v39 }
  0x50   : > { %636 = vmatprep.mubr.bf16.mxu0 %v1438_v40  ;;  %700 = vmatprep.mubr.bf16.mxu1 %v1440_v41 }
  0x57   : > { %637 = vmatmul.mubr.bf16.gmra.mrb[24].mxu0 %v1442_v42  ;;  %701 = vmatmul.mubr.bf16.gmra.mrb[24].mxu1 %v1443_v43 }
  0x58   : > { %644 = vmatprep.mubr.bf16.mxu0 %v1444_v44  ;;  %708 = vmatprep.mubr.bf16.mxu1 %v1446_v45 }
  0x5f   : > { %645 = vmatmul.mubr.bf16.gmra.mrb[28].mxu0 %v1448_v46  ;;  %709 = vmatmul.mubr.bf16.gmra.mrb[28].mxu1 %v1449_v47 }
  0xfa   : > { %v1250_v48 = vpop.f32.mrb[0].mxu0  ;;  %v1298_v49 = vpop.f32.mrb[0].mxu1 }
  0xfb   : > { %v1251_v51 = vpop.f32.mrb[1].mxu0  ;;  %v1299_v52 = vpop.f32.mrb[1].mxu1 }
  0xfc   : > { %v1252_v53 = vadd.f32 %v1251_v51, %v1250_v48  ;;  %v1300_v54 = vadd.f32 %v1299_v52, %v1298_v49  ;;  %v1253_v55 = vpop.f32.mrb[2].mxu0  ;;  %v1301_v56 = vpop.f32.mrb[2].mxu1 }
  0xfd   : > { %v1254_v57 = vpop.f32.mrb[3].mxu0  ;;  %v1302_v58 = vpop.f32.mrb[3].mxu1 }
  0xfe   : > { %v591_v59 = vadd.f32 %v1252_v53, %v1603_v50  ;;  %v655_v60 = vadd.f32 %v1300_v54, %v1603_v50  ;;  %v1255_v61 = vadd.f32 %v1254_v57, %v1253_v55  ;;  %v1303_v62 = vadd.f32 %v1302_v58, %v1301_v56 }
 0x100   : > { %v594_v63 = vadd.f32 %v1255_v61, %v1603_v50  ;;  %v658_v0 = vadd.f32 %v1303_v62, %v1603_v50  ;;  %v717_v1 = vmax.f32 %v591_v59, 0.0  ;;  %v733_v2 = vmax.f32 %v655_v60, 0.0 }
 0x102   : > { %v718_v3 = vmax.f32 %v594_v63, 0.0  ;;  %v734_v4 = vmax.f32 %v658_v0, 0.0  ;;  %v1256_v5 = vpop.f32.mrb[4].mxu0  ;;  %v1304_v6 = vpop.f32.mrb[4].mxu1 }
 0x103   : > { %v1257_v7 = vpop.f32.mrb[5].mxu0  ;;  %v1305_v8 = vpop.f32.mrb[5].mxu1 }
 0x104   : > { %v1142_v9 = vpack.c.bf16 %v718_v3, %v717_v1  ;;  %v1182_v10 = vpack.c.bf16 %v734_v4, %v733_v2  ;;  %v1258_v11 = vadd.f32 %v1257_v7, %v1256_v5  ;;  %v1306_v12 = vadd.f32 %v1305_v8, %v1304_v6  ;;  %v1259_v13 = vpop.f32.mrb[6].mxu0  ;;  %v1307_v14 = vpop.f32.mrb[6].mxu1 }
 0x105   : > { %v1260_v15 = vpop.f32.mrb[7].mxu0  ;;  %v1308_v16 = vpop.f32.mrb[7].mxu1 }
 0x106   : > { %1143 = vst [vmem:[%s1613_s8] sm:$0xff] %v1142_v9   ;;  %1226 = vst [vmem:[%s1613_s8 + $0x40] sm:$0xff] %v1182_v10   ;;  %v599_v17 = vadd.f32 %v1258_v11, %v1603_v50  ;;  %v663_v18 = vadd.f32 %v1306_v12, %v1603_v50  ;;  %v1261_v19 = vadd.f32 %v1260_v15, %v1259_v13 }
 0x107   : > { %v1309_v20 = vadd.f32 %v1308_v16, %v1307_v14 }
 0x108   : > { %v602_v21 = vadd.f32 %v1261_v19, %v1603_v50  ;;  %v719_v23 = vmax.f32 %v599_v17, 0.0  ;;  %v735_v24 = vmax.f32 %v663_v18, 0.0 }
 0x109   : > { %v666_v22 = vadd.f32 %v1309_v20, %v1603_v50 }
 0x10a   : > { %v720_v25 = vmax.f32 %v602_v21, 0.0  ;;  %v1262_v27 = vpop.f32.mrb[8].mxu0  ;;  %v1310_v28 = vpop.f32.mrb[8].mxu1 }
 0x10b   : > { %v736_v26 = vmax.f32 %v666_v22, 0.0  ;;  %v1263_v29 = vpop.f32.mrb[9].mxu0  ;;  %v1311_v30 = vpop.f32.mrb[9].mxu1 }
 0x10c   : > { %v1147_v31 = vpack.c.bf16 %v720_v25, %v719_v23  ;;  %v1264_v33 = vadd.f32 %v1263_v29, %v1262_v27  ;;  %v1312_v34 = vadd.f32 %v1311_v30, %v1310_v28  ;;  %v1265_v35 = vpop.f32.mrb[10].mxu0  ;;  %v1313_v36 = vpop.f32.mrb[10].mxu1 }
 0x10d   : > { %v1187_v32 = vpack.c.bf16 %v736_v26, %v735_v24  ;;  %v1266_v37 = vpop.f32.mrb[11].mxu0  ;;  %v1314_v38 = vpop.f32.mrb[11].mxu1 }
 0x10e   : > { %1219 = vst [vmem:[%s1613_s8 + $0x8] sm:$0xff] %v1147_v31   ;;  %v607_v39 = vadd.f32 %v1264_v33, %v1603_v50  ;;  %v671_v40 = vadd.f32 %v1312_v34, %v1603_v50  ;;  %v1267_v41 = vadd.f32 %v1266_v37, %v1265_v35  ;;  %v1315_v42 = vadd.f32 %v1314_v38, %v1313_v36 }
 0x10f   : > { %1227 = vst [vmem:[%s1613_s8 + $0x48] sm:$0xff] %v1187_v32  }
 0x110   : > { %v610_v43 = vadd.f32 %v1267_v41, %v1603_v50  ;;  %v674_v44 = vadd.f32 %v1315_v42, %v1603_v50  ;;  %v721_v45 = vmax.f32 %v607_v39, 0.0  ;;  %v737_v46 = vmax.f32 %v671_v40, 0.0 }
 0x112   : > { %v722_v47 = vmax.f32 %v610_v43, 0.0  ;;  %v738_v48 = vmax.f32 %v674_v44, 0.0  ;;  %v1268_v49 = vpop.f32.mrb[12].mxu0  ;;  %v1316_v51 = vpop.f32.mrb[12].mxu1 }
 0x113   : > { %v1269_v52 = vpop.f32.mrb[13].mxu0  ;;  %v1317_v53 = vpop.f32.mrb[13].mxu1 }
 0x114   : > { %v1152_v54 = vpack.c.bf16 %v722_v47, %v721_v45  ;;  %v1192_v55 = vpack.c.bf16 %v738_v48, %v737_v46  ;;  %v1270_v56 = vadd.f32 %v1269_v52, %v1268_v49  ;;  %v1318_v57 = vadd.f32 %v1317_v53, %v1316_v51  ;;  %v1271_v58 = vpop.f32.mrb[14].mxu0  ;;  %v1319_v59 = vpop.f32.mrb[14].mxu1 }
 0x115   : > { %v1272_v60 = vpop.f32.mrb[15].mxu0  ;;  %v1320_v61 = vpop.f32.mrb[15].mxu1 }
 0x116   : > { %1220 = vst [vmem:[%s1613_s8 + $0x10] sm:$0xff] %v1152_v54   ;;  %1228 = vst [vmem:[%s1613_s8 + $0x50] sm:$0xff] %v1192_v55   ;;  %v615_v62 = vadd.f32 %v1270_v56, %v1603_v50  ;;  %v679_v63 = vadd.f32 %v1318_v57, %v1603_v50  ;;  %v1273_v0 = vadd.f32 %v1272_v60, %v1271_v58 }
 0x117   : > { %v1321_v1 = vadd.f32 %v1320_v61, %v1319_v59 }
 0x118   : > { %v618_v2 = vadd.f32 %v1273_v0, %v1603_v50  ;;  %v723_v4 = vmax.f32 %v615_v62, 0.0  ;;  %v739_v5 = vmax.f32 %v679_v63, 0.0 }
 0x119   : > { %v682_v3 = vadd.f32 %v1321_v1, %v1603_v50 }
 0x11a   : > { %v724_v6 = vmax.f32 %v618_v2, 0.0  ;;  %v1274_v8 = vpop.f32.mrb[16].mxu0  ;;  %v1322_v9 = vpop.f32.mrb[16].mxu1 }
 0x11b   : > { %v740_v7 = vmax.f32 %v682_v3, 0.0  ;;  %v1275_v10 = vpop.f32.mrb[17].mxu0  ;;  %v1323_v11 = vpop.f32.mrb[17].mxu1 }
 0x11c   : > { %v1157_v12 = vpack.c.bf16 %v724_v6, %v723_v4  ;;  %v1276_v14 = vadd.f32 %v1275_v10, %v1274_v8  ;;  %v1324_v15 = vadd.f32 %v1323_v11, %v1322_v9  ;;  %v1277_v16 = vpop.f32.mrb[18].mxu0  ;;  %v1325_v17 = vpop.f32.mrb[18].mxu1 }
 0x11d   : > { %v1197_v13 = vpack.c.bf16 %v740_v7, %v739_v5  ;;  %v1278_v18 = vpop.f32.mrb[19].mxu0  ;;  %v1326_v19 = vpop.f32.mrb[19].mxu1 }
 0x11e   : > { %1221 = vst [vmem:[%s1613_s8 + $0x18] sm:$0xff] %v1157_v12   ;;  %v623_v20 = vadd.f32 %v1276_v14, %v1603_v50  ;;  %v687_v21 = vadd.f32 %v1324_v15, %v1603_v50  ;;  %v1279_v22 = vadd.f32 %v1278_v18, %v1277_v16  ;;  %v1327_v23 = vadd.f32 %v1326_v19, %v1325_v17 }
 0x11f   : > { %1229 = vst [vmem:[%s1613_s8 + $0x58] sm:$0xff] %v1197_v13  }
 0x120   : > { %v626_v24 = vadd.f32 %v1279_v22, %v1603_v50  ;;  %v690_v25 = vadd.f32 %v1327_v23, %v1603_v50  ;;  %v725_v26 = vmax.f32 %v623_v20, 0.0  ;;  %v741_v27 = vmax.f32 %v687_v21, 0.0 }
 0x122   : > { %v726_v28 = vmax.f32 %v626_v24, 0.0  ;;  %v742_v29 = vmax.f32 %v690_v25, 0.0  ;;  %v1280_v30 = vpop.f32.mrb[20].mxu0  ;;  %v1328_v31 = vpop.f32.mrb[20].mxu1 }
 0x123   : > { %v1281_v32 = vpop.f32.mrb[21].mxu0  ;;  %v1329_v33 = vpop.f32.mrb[21].mxu1 }
 0x124   : > { %v1162_v34 = vpack.c.bf16 %v726_v28, %v725_v26  ;;  %v1202_v35 = vpack.c.bf16 %v742_v29, %v741_v27  ;;  %v1282_v36 = vadd.f32 %v1281_v32, %v1280_v30  ;;  %v1330_v37 = vadd.f32 %v1329_v33, %v1328_v31  ;;  %v1283_v38 = vpop.f32.mrb[22].mxu0  ;;  %v1331_v39 = vpop.f32.mrb[22].mxu1 }
 0x125   : > { %v1284_v40 = vpop.f32.mrb[23].mxu0  ;;  %v1332_v41 = vpop.f32.mrb[23].mxu1 }
 0x126   : > { %1222 = vst [vmem:[%s1613_s8 + $0x20] sm:$0xff] %v1162_v34   ;;  %1230 = vst [vmem:[%s1613_s8 + $0x60] sm:$0xff] %v1202_v35   ;;  %v631_v42 = vadd.f32 %v1282_v36, %v1603_v50  ;;  %v695_v43 = vadd.f32 %v1330_v37, %v1603_v50  ;;  %v1285_v44 = vadd.f32 %v1284_v40, %v1283_v38 }
 0x127   : > { %v1333_v45 = vadd.f32 %v1332_v41, %v1331_v39 }
 0x128   : > { %v634_v46 = vadd.f32 %v1285_v44, %v1603_v50  ;;  %v727_v48 = vmax.f32 %v631_v42, 0.0  ;;  %v743_v49 = vmax.f32 %v695_v43, 0.0 }
 0x129   : > { %v698_v47 = vadd.f32 %v1333_v45, %v1603_v50 }
 0x12a   : > { %v728_v51 = vmax.f32 %v634_v46, 0.0  ;;  %v1286_v53 = vpop.f32.mrb[24].mxu0  ;;  %v1334_v54 = vpop.f32.mrb[24].mxu1 }
 0x12b   : > { %v744_v52 = vmax.f32 %v698_v47, 0.0  ;;  %v1287_v55 = vpop.f32.mrb[25].mxu0  ;;  %v1335_v56 = vpop.f32.mrb[25].mxu1 }
 0x12c   : > { %v1167_v57 = vpack.c.bf16 %v728_v51, %v727_v48  ;;  %v1288_v59 = vadd.f32 %v1287_v55, %v1286_v53  ;;  %v1336_v60 = vadd.f32 %v1335_v56, %v1334_v54  ;;  %v1289_v61 = vpop.f32.mrb[26].mxu0  ;;  %v1337_v62 = vpop.f32.mrb[26].mxu1 }
 0x12d   : > { %v1207_v58 = vpack.c.bf16 %v744_v52, %v743_v49  ;;  %v1290_v63 = vpop.f32.mrb[27].mxu0  ;;  %v1338_v0 = vpop.f32.mrb[27].mxu1 }
 0x12e   : > { %1223 = vst [vmem:[%s1613_s8 + $0x28] sm:$0xff] %v1167_v57   ;;  %v639_v1 = vadd.f32 %v1288_v59, %v1603_v50  ;;  %v703_v2 = vadd.f32 %v1336_v60, %v1603_v50  ;;  %v1291_v3 = vadd.f32 %v1290_v63, %v1289_v61  ;;  %v1339_v4 = vadd.f32 %v1338_v0, %v1337_v62 }
 0x12f   : > { %1231 = vst [vmem:[%s1613_s8 + $0x68] sm:$0xff] %v1207_v58  }
 0x130   : > { %v642_v5 = vadd.f32 %v1291_v3, %v1603_v50  ;;  %v706_v6 = vadd.f32 %v1339_v4, %v1603_v50  ;;  %v729_v7 = vmax.f32 %v639_v1, 0.0  ;;  %v745_v8 = vmax.f32 %v703_v2, 0.0 }
 0x132   : > { %v730_v9 = vmax.f32 %v642_v5, 0.0  ;;  %v746_v10 = vmax.f32 %v706_v6, 0.0  ;;  %v1292_v11 = vpop.f32.mrb[28].mxu0  ;;  %v1340_v12 = vpop.f32.mrb[28].mxu1 }
 0x133   : > { %v1293_v13 = vpop.f32.mrb[29].mxu0  ;;  %v1341_v14 = vpop.f32.mrb[29].mxu1 }
 0x134   : > { %v1172_v15 = vpack.c.bf16 %v730_v9, %v729_v7  ;;  %v1212_v16 = vpack.c.bf16 %v746_v10, %v745_v8  ;;  %v1294_v17 = vadd.f32 %v1293_v13, %v1292_v11  ;;  %v1342_v18 = vadd.f32 %v1341_v14, %v1340_v12  ;;  %v1295_v19 = vpop.f32.mrb[30].mxu0  ;;  %v1343_v20 = vpop.f32.mrb[30].mxu1 }
 0x135   : > { %v1296_v21 = vpop.f32.mrb[31].mxu0  ;;  %v1344_v22 = vpop.f32.mrb[31].mxu1 }
 0x136   : > { %1224 = vst [vmem:[%s1613_s8 + $0x30] sm:$0xff] %v1172_v15   ;;  %1232 = vst [vmem:[%s1613_s8 + $0x70] sm:$0xff] %v1212_v16   ;;  %v647_v23 = vadd.f32 %v1294_v17, %v1603_v50  ;;  %v711_v24 = vadd.f32 %v1342_v18, %v1603_v50  ;;  %v1297_v25 = vadd.f32 %v1296_v21, %v1295_v19 }
 0x137   : > { %v1345_v26 = vadd.f32 %v1344_v22, %v1343_v20 }
 0x138   : > { %v650_v27 = vadd.f32 %v1297_v25, %v1603_v50  ;;  %v731_v29 = vmax.f32 %v647_v23, 0.0  ;;  %v747_v30 = vmax.f32 %v711_v24, 0.0 }
 0x139   : > { %v714_v28 = vadd.f32 %v1345_v26, %v1603_v50 }
 0x13a   : > { %v732_v31 = vmax.f32 %v650_v27, 0.0 }
 0x13b   : > { %v748_v32 = vmax.f32 %v714_v28, 0.0 }
 0x13c   : > { %v1177_v33 = vpack.c.bf16 %v732_v31, %v731_v29 }
 0x13d   : > { %v1217_v34 = vpack.c.bf16 %v748_v32, %v747_v30 }
 0x13e   : > { %1225 = vst [vmem:[%s1613_s8 + $0x38] sm:$0xff] %v1177_v33  }
 0x13f   : > { %1233 = vst [vmem:[%s1613_s8 + $0x78] sm:$0xff] %v1217_v34  }
 0x140 PF: > { %s13_s14 = sadd.s32 1, %s1472_s14   ;;  %s1672_s12 = smov %s1468_s13 }
 0x141   : > { %p10_p5 = scmp.ge.s32.totalorder %s13_s14, 4   ;;  %s1673_s13 = smov %s1675_s15 }
 0x143   :  { %12 = sbr.rel (!%p10_p5) target bundleno = 2 (0x2), region = 68 }

// kernel: _lambda_.14
= control target key start
LH: loop header
LB: loop body
LE: loop exit
PB: predicated region body
PF: predicated region fallthrough
CT: control target
= control target key end

     0   :  { %s618_s1 = inlined_call_operand.vmem [shape: bf16[128,128], index: 1, kind: input, shape index: {}]   ;;  %s619_s0 = inlined_call_operand.vmem [shape: bf16[128,128], index: 0, kind: input, shape index: {}]   ;;  %s620_s2 = inlined_call_operand.vmem [shape: f32[1,128], index: 2, kind: input, shape index: {}]   ;;  %s621_s3 = inlined_call_operand.vmem [shape: bf16[128,128], index: 3, kind: output, shape index: {}]  }
   0x1   :  { %v507_v0 = vld [vmem:[%s618_s1] sm:$0xff]   ;;  %v508_v1 = vld [vmem:[%s618_s1 + $0x8] sm:$0xff]   ;;  %v509_v2 = vld [vmem:[%s618_s1 + $0x10] sm:$0xff]  }
   0x2   :  { %459 = vmatprep.subr.bf16.mxu0 %v507_v0  ;;  %491 = vmatprep.subr.bf16.mxu1 %v507_v0  ;;  %v510_v3 = vld [vmem:[%s618_s1 + $0x18] sm:$0xff]   ;;  %v515_v4 = vld [vmem:[%s619_s0] sm:$0xff]   ;;  %v512_v7 = vld [vmem:[%s618_s1 + $0x28] sm:$0xff]  }
   0x3   :  { %460 = vmatpush3.bf16.msra.mxu0 %v507_v0  ;;  %499 = vmatpush3.bf16.msra.mxu1 %v507_v0  ;;  %v516_v5 = vld [vmem:[%s619_s0 + $0x20] sm:$0xff]   ;;  %v513_v8 = vld [vmem:[%s618_s1 + $0x30] sm:$0xff]   ;;  %v514_v9 = vld [vmem:[%s618_s1 + $0x38] sm:$0xff]  }
   0x4   :  { %461 = vmatprep.subr.bf16.mxu0 %v508_v1  ;;  %492 = vmatprep.subr.bf16.mxu1 %v508_v1  ;;  %v511_v6 = vld [vmem:[%s618_s1 + $0x20] sm:$0xff]   ;;  %v517_v10 = vld [vmem:[%s619_s0 + $0x8] sm:$0xff]   ;;  %v519_v12 = vld [vmem:[%s619_s0 + $0x10] sm:$0xff]  }
   0x5   :  { %475 = vmatprep.mubr.bf16.mxu0 %v515_v4  ;;  %483 = vmatprep.mubr.bf16.mxu1 %v516_v5  ;;  %v518_v11 = vld [vmem:[%s619_s0 + $0x28] sm:$0xff]   ;;  %v520_v13 = vld [vmem:[%s619_s0 + $0x30] sm:$0xff]   ;;  %v521_v14 = vld [vmem:[%s619_s0 + $0x18] sm:$0xff]  }
   0x6   :  { %v522_v15 = vld [vmem:[%s619_s0 + $0x38] sm:$0xff]   ;;  %v347_v16 = vld [vmem:[%s620_s2] ss:$0 sm:$0xff] }
   0x7   :  { %462 = vmatpush3.bf16.msra.mxu0 %v508_v1  ;;  %500 = vmatpush3.bf16.msra.mxu1 %v508_v1 }
   0x8   :  { %463 = vmatprep.subr.bf16.mxu0 %v509_v2  ;;  %493 = vmatprep.subr.bf16.mxu1 %v509_v2 }
   0xb   :  { %464 = vmatpush3.bf16.msra.mxu0 %v509_v2  ;;  %501 = vmatpush3.bf16.msra.mxu1 %v509_v2 }
   0xc   :  { %465 = vmatprep.subr.bf16.mxu0 %v510_v3  ;;  %494 = vmatprep.subr.bf16.mxu1 %v510_v3 }
   0xf   :  { %466 = vmatpush3.bf16.msra.mxu0 %v510_v3  ;;  %502 = vmatpush3.bf16.msra.mxu1 %v510_v3 }
  0x10   :  { %467 = vmatprep.subr.bf16.mxu0 %v511_v6  ;;  %495 = vmatprep.subr.bf16.mxu1 %v511_v6 }
  0x13   :  { %468 = vmatpush3.bf16.msra.mxu0 %v511_v6  ;;  %503 = vmatpush3.bf16.msra.mxu1 %v511_v6 }
  0x14   :  { %469 = vmatprep.subr.bf16.mxu0 %v512_v7  ;;  %496 = vmatprep.subr.bf16.mxu1 %v512_v7 }
  0x17   :  { %470 = vmatpush3.bf16.msra.mxu0 %v512_v7  ;;  %504 = vmatpush3.bf16.msra.mxu1 %v512_v7 }
  0x18   :  { %471 = vmatprep.subr.bf16.mxu0 %v513_v8  ;;  %497 = vmatprep.subr.bf16.mxu1 %v513_v8 }
  0x1b   :  { %472 = vmatpush3.bf16.msra.mxu0 %v513_v8  ;;  %505 = vmatpush3.bf16.msra.mxu1 %v513_v8 }
  0x1c   :  { %473 = vmatprep.subr.bf16.mxu0 %v514_v9  ;;  %498 = vmatprep.subr.bf16.mxu1 %v514_v9 }
  0x1f   :  { %474 = vmatpush3.bf16.msra.mxu0 %v514_v9  ;;  %506 = vmatpush3.bf16.msra.mxu1 %v514_v9 }
  0x22   :  { %476 = vmatmul.mubr.bf16.vlgmr.msra.gmra.mrb[0].mxu0 %v517_v10  ;;  %484 = vmatmul.mubr.bf16.vlgmr.msra.gmra.mrb[0].mxu1 %v518_v11 }
  0x23   :  { %479 = vmatprep.mubr.bf16.mxu0 %v519_v12  ;;  %487 = vmatprep.mubr.bf16.mxu1 %v520_v13 }
  0x2a   :  { %480 = vmatmul.mubr.bf16.gmra.mrb[4].mxu0 %v521_v14  ;;  %488 = vmatmul.mubr.bf16.gmra.mrb[4].mxu1 %v522_v15 }
  0xf5   :  { %v477_v17 = vpop.f32.mrb[0].mxu0  ;;  %v485_v18 = vpop.f32.mrb[0].mxu1 }
  0xf6   :  { %v193_v19 = vadd.f32 %v477_v17, %v347_v16  ;;  %v225_v20 = vadd.f32 %v485_v18, %v347_v16  ;;  %v184_v21 = vpop.f32.mrb[1].mxu0  ;;  %v216_v22 = vpop.f32.mrb[1].mxu1 }
  0xf7   :  { %v185_v23 = vadd.f32 %v347_v16, %v184_v21  ;;  %v217_v24 = vadd.f32 %v347_v16, %v216_v22  ;;  %v478_v25 = vpop.f32.mrb[2].mxu0  ;;  %v486_v26 = vpop.f32.mrb[2].mxu1 }
  0xf8   :  { %v196_v27 = vadd.f32 %v478_v25, %v347_v16  ;;  %v228_v28 = vadd.f32 %v486_v26, %v347_v16  ;;  %v187_v29 = vpop.f32.mrb[3].mxu0  ;;  %v219_v30 = vpop.f32.mrb[3].mxu1  ;;  %v249_v33 = vmax.f32 %v193_v19, 0.0  ;;  %v257_v34 = vmax.f32 %v225_v20, 0.0 }
  0xf9   :  { %v188_v31 = vadd.f32 %v347_v16, %v187_v29  ;;  %v220_v32 = vadd.f32 %v347_v16, %v219_v30  ;;  %v247_v37 = vmax.f32 %v185_v23, 0.0  ;;  %v255_v38 = vmax.f32 %v217_v24, 0.0 }
  0xfa   :  { %v250_v35 = vmax.f32 %v196_v27, 0.0  ;;  %v258_v36 = vmax.f32 %v228_v28, 0.0 }
  0xfb   :  { %v248_v39 = vmax.f32 %v188_v31, 0.0  ;;  %v256_v40 = vmax.f32 %v220_v32, 0.0 }
  0xfc   :  { %v404_v41 = vpack.c.bf16 %v250_v35, %v249_v33  ;;  %v424_v42 = vpack.c.bf16 %v258_v36, %v257_v34 }
  0xfd   :  { %v399_v43 = vpack.c.bf16 %v248_v39, %v247_v37  ;;  %v419_v44 = vpack.c.bf16 %v256_v40, %v255_v38  ;;  %v481_v45 = vpop.f32.mrb[4].mxu0  ;;  %v489_v46 = vpop.f32.mrb[4].mxu1 }
  0xfe   :  { %436 = vst [vmem:[%s621_s3 + $0x8] sm:$0xff] %v404_v41   ;;  %440 = vst [vmem:[%s621_s3 + $0x28] sm:$0xff] %v424_v42   ;;  %v209_v47 = vadd.f32 %v481_v45, %v347_v16  ;;  %v241_v48 = vadd.f32 %v489_v46, %v347_v16  ;;  %v200_v49 = vpop.f32.mrb[5].mxu0  ;;  %v232_v50 = vpop.f32.mrb[5].mxu1 }
  0xff   :  { %400 = vst [vmem:[%s621_s3] sm:$0xff] %v399_v43   ;;  %439 = vst [vmem:[%s621_s3 + $0x20] sm:$0xff] %v419_v44   ;;  %v201_v51 = vadd.f32 %v347_v16, %v200_v49  ;;  %v233_v52 = vadd.f32 %v347_v16, %v232_v50  ;;  %v482_v53 = vpop.f32.mrb[6].mxu0  ;;  %v490_v54 = vpop.f32.mrb[6].mxu1 }
 0x100   :  { %v212_v55 = vadd.f32 %v482_v53, %v347_v16  ;;  %v244_v56 = vadd.f32 %v490_v54, %v347_v16  ;;  %v203_v57 = vpop.f32.mrb[7].mxu0  ;;  %v235_v58 = vpop.f32.mrb[7].mxu1  ;;  %v253_v61 = vmax.f32 %v209_v47, 0.0  ;;  %v261_v62 = vmax.f32 %v241_v48, 0.0 }
 0x101   :  { %v204_v59 = vadd.f32 %v347_v16, %v203_v57  ;;  %v236_v60 = vadd.f32 %v347_v16, %v235_v58  ;;  %v251_v1 = vmax.f32 %v201_v51, 0.0  ;;  %v259_v2 = vmax.f32 %v233_v52, 0.0 }
 0x102   :  { %v254_v63 = vmax.f32 %v212_v55, 0.0  ;;  %v262_v0 = vmax.f32 %v244_v56, 0.0 }
 0x103   :  { %v252_v3 = vmax.f32 %v204_v59, 0.0  ;;  %v260_v4 = vmax.f32 %v236_v60, 0.0 }
 0x104   :  { %v414_v5 = vpack.c.bf16 %v254_v63, %v253_v61  ;;  %v434_v6 = vpack.c.bf16 %v262_v0, %v261_v62 }
 0x105   :  { %v409_v7 = vpack.c.bf16 %v252_v3, %v251_v1  ;;  %v429_v8 = vpack.c.bf16 %v260_v4, %v259_v2 }
 0x106   :  { %438 = vst [vmem:[%s621_s3 + $0x18] sm:$0xff] %v414_v5   ;;  %442 = vst [vmem:[%s621_s3 + $0x38] sm:$0xff] %v434_v6  }
 0x107   :  { %437 = vst [vmem:[%s621_s3 + $0x10] sm:$0xff] %v409_v7   ;;  %441 = vst [vmem:[%s621_s3 + $0x30] sm:$0xff] %v429_v8  }

// kernel: _lambda_.15
= control target key start
LH: loop header
LB: loop body
LE: loop exit
PB: predicated region body
PF: predicated region fallthrough
CT: control target
= control target key end

     0   :  { %s739_s1 = inlined_call_operand.vmem [shape: bf16[128,128], index: 1, kind: input, shape index: {}]   ;;  %s740_s0 = inlined_call_operand.vmem [shape: bf16[128,128], index: 0, kind: input, shape index: {}]   ;;  %s741_s3 = inlined_call_operand.vmem [shape: bf16[128,128], index: 3, kind: input, shape index: {}]   ;;  %s742_s2 = inlined_call_operand.vmem [shape: f32[1,128], index: 2, kind: input, shape index: {}]   ;;  %s743_s4 = inlined_call_operand.vmem [shape: bf16[128,128], index: 4, kind: output, shape index: {}]  }
   0x1   :  { %v581_v0 = vld [vmem:[%s739_s1] sm:$0xff]   ;;  %v582_v1 = vld [vmem:[%s739_s1 + $0x8] sm:$0xff]   ;;  %v583_v2 = vld [vmem:[%s739_s1 + $0x10] sm:$0xff]  }
   0x2   :  { %533 = vmatprep.subr.bf16.mxu0 %v581_v0  ;;  %565 = vmatprep.subr.bf16.mxu1 %v581_v0  ;;  %v584_v3 = vld [vmem:[%s739_s1 + $0x18] sm:$0xff]   ;;  %v589_v4 = vld [vmem:[%s740_s0] sm:$0xff]   ;;  %v586_v7 = vld [vmem:[%s739_s1 + $0x28] sm:$0xff]  }
   0x3   :  { %534 = vmatpush3.bf16.msra.mxu0 %v581_v0  ;;  %573 = vmatpush3.bf16.msra.mxu1 %v581_v0  ;;  %v590_v5 = vld [vmem:[%s740_s0 + $0x20] sm:$0xff]   ;;  %v587_v8 = vld [vmem:[%s739_s1 + $0x30] sm:$0xff]   ;;  %v588_v9 = vld [vmem:[%s739_s1 + $0x38] sm:$0xff]  }
   0x4   :  { %535 = vmatprep.subr.bf16.mxu0 %v582_v1  ;;  %566 = vmatprep.subr.bf16.mxu1 %v582_v1  ;;  %v585_v6 = vld [vmem:[%s739_s1 + $0x20] sm:$0xff]   ;;  %v591_v10 = vld [vmem:[%s740_s0 + $0x8] sm:$0xff]   ;;  %v593_v12 = vld [vmem:[%s740_s0 + $0x10] sm:$0xff]  }
   0x5   :  { %549 = vmatprep.mubr.bf16.mxu0 %v589_v4  ;;  %557 = vmatprep.mubr.bf16.mxu1 %v590_v5  ;;  %v592_v11 = vld [vmem:[%s740_s0 + $0x28] sm:$0xff]   ;;  %v594_v13 = vld [vmem:[%s740_s0 + $0x30] sm:$0xff]   ;;  %v595_v14 = vld [vmem:[%s740_s0 + $0x18] sm:$0xff]  }
   0x6   :  { %v596_v15 = vld [vmem:[%s740_s0 + $0x38] sm:$0xff]   ;;  %v503_v16 = vld [vmem:[%s741_s3 + $0x8] sm:$0xff]   ;;  %v432_v18 = vld [vmem:[%s741_s3] sm:$0xff]  }
   0x7   :  { %536 = vmatpush3.bf16.msra.mxu0 %v582_v1  ;;  %574 = vmatpush3.bf16.msra.mxu1 %v582_v1  ;;  %v507_v17 = vld [vmem:[%s741_s3 + $0x28] sm:$0xff]   ;;  %v506_v19 = vld [vmem:[%s741_s3 + $0x20] sm:$0xff]   ;;  %v437_v21 = vunpack.c.l.bf16 %v503_v16  ;;  %v433_v25 = vunpack.c.l.bf16 %v432_v18  ;;  %v438_v31 = vunpack.c.h.bf16 %v503_v16  ;;  %v434_v37 = vunpack.c.h.bf16 %v432_v18  ;;  %v505_v45 = vld [vmem:[%s741_s3 + $0x18] sm:$0xff]  }
   0x8   :  { %537 = vmatprep.subr.bf16.mxu0 %v583_v2  ;;  %567 = vmatprep.subr.bf16.mxu1 %v583_v2  ;;  %v685_v20 = vld [vmem:[%s742_s2] ss:$0 sm:$0xff]  ;;  %v453_v23 = vunpack.c.l.bf16 %v507_v17  ;;  %v449_v26 = vunpack.c.l.bf16 %v506_v19  ;;  %v454_v32 = vunpack.c.h.bf16 %v507_v17  ;;  %v450_v38 = vunpack.c.h.bf16 %v506_v19  ;;  %v509_v46 = vld [vmem:[%s741_s3 + $0x38] sm:$0xff]   ;;  %v504_v51 = vld [vmem:[%s741_s3 + $0x10] sm:$0xff]  }
   0x9   :  { %v508_v52 = vld [vmem:[%s741_s3 + $0x30] sm:$0xff]   ;;  %v445_v59 = vunpack.c.l.bf16 %v505_v45  ;;  %v461_v60 = vunpack.c.l.bf16 %v509_v46  ;;  %v441_v1 = vunpack.c.l.bf16 %v504_v51 }
   0xb   :  { %538 = vmatpush3.bf16.msra.mxu0 %v583_v2  ;;  %575 = vmatpush3.bf16.msra.mxu1 %v583_v2  ;;  %v457_v2 = vunpack.c.l.bf16 %v508_v52 }
   0xc   :  { %539 = vmatprep.subr.bf16.mxu0 %v584_v3  ;;  %568 = vmatprep.subr.bf16.mxu1 %v584_v3 }
   0xf   :  { %540 = vmatpush3.bf16.msra.mxu0 %v584_v3  ;;  %576 = vmatpush3.bf16.msra.mxu1 %v584_v3 }
  0x10   :  { %541 = vmatprep.subr.bf16.mxu0 %v585_v6  ;;  %569 = vmatprep.subr.bf16.mxu1 %v585_v6 }
  0x13   :  { %542 = vmatpush3.bf16.msra.mxu0 %v585_v6  ;;  %577 = vmatpush3.bf16.msra.mxu1 %v585_v6 }
  0x14   :  { %543 = vmatprep.subr.bf16.mxu0 %v586_v7  ;;  %570 = vmatprep.subr.bf16.mxu1 %v586_v7 }
  0x17   :  { %544 = vmatpush3.bf16.msra.mxu0 %v586_v7  ;;  %578 = vmatpush3.bf16.msra.mxu1 %v586_v7  ;;  %v446_v7 = vunpack.c.h.bf16 %v505_v45 }
  0x18   :  { %545 = vmatprep.subr.bf16.mxu0 %v587_v8  ;;  %571 = vmatprep.subr.bf16.mxu1 %v587_v8 }
  0x1b   :  { %546 = vmatpush3.bf16.msra.mxu0 %v587_v8  ;;  %579 = vmatpush3.bf16.msra.mxu1 %v587_v8  ;;  %v462_v8 = vunpack.c.h.bf16 %v509_v46 }
  0x1c   :  { %547 = vmatprep.subr.bf16.mxu0 %v588_v9  ;;  %572 = vmatprep.subr.bf16.mxu1 %v588_v9 }
  0x1f   :  { %548 = vmatpush3.bf16.msra.mxu0 %v588_v9  ;;  %580 = vmatpush3.bf16.msra.mxu1 %v588_v9 }
  0x22   :  { %550 = vmatmul.mubr.bf16.vlgmr.msra.gmra.mrb[0].mxu0 %v591_v10  ;;  %558 = vmatmul.mubr.bf16.vlgmr.msra.gmra.mrb[0].mxu1 %v592_v11 }
  0x23   :  { %553 = vmatprep.mubr.bf16.mxu0 %v593_v12  ;;  %561 = vmatprep.mubr.bf16.mxu1 %v594_v13  ;;  %v442_v13 = vunpack.c.h.bf16 %v504_v51 }
  0x2a   :  { %554 = vmatmul.mubr.bf16.gmra.mrb[4].mxu0 %v595_v14  ;;  %562 = vmatmul.mubr.bf16.gmra.mrb[4].mxu1 %v596_v15  ;;  %v458_v14 = vunpack.c.h.bf16 %v508_v52 }
  0xf5   :  { %v551_v22 = vpop.f32.mrb[0].mxu0  ;;  %v559_v24 = vpop.f32.mrb[0].mxu1 }
  0xf6   :  { %v212_v27 = vadd.f32 %v551_v22, %v685_v20  ;;  %v244_v28 = vadd.f32 %v559_v24, %v685_v20  ;;  %v203_v29 = vpop.f32.mrb[1].mxu0  ;;  %v235_v30 = vpop.f32.mrb[1].mxu1 }
  0xf7   :  { %v204_v33 = vadd.f32 %v685_v20, %v203_v29  ;;  %v236_v34 = vadd.f32 %v685_v20, %v235_v30  ;;  %v552_v35 = vpop.f32.mrb[2].mxu0  ;;  %v560_v36 = vpop.f32.mrb[2].mxu1 }
  0xf8   :  { %v215_v39 = vadd.f32 %v552_v35, %v685_v20  ;;  %v247_v40 = vadd.f32 %v560_v36, %v685_v20  ;;  %v206_v41 = vpop.f32.mrb[3].mxu0  ;;  %v238_v42 = vpop.f32.mrb[3].mxu1  ;;  %v284_v47 = vadd.f32 %v437_v21, %v212_v27  ;;  %v292_v48 = vadd.f32 %v453_v23, %v244_v28 }
  0xf9   :  { %v207_v43 = vadd.f32 %v685_v20, %v206_v41  ;;  %v239_v44 = vadd.f32 %v685_v20, %v238_v42  ;;  %v282_v53 = vadd.f32 %v433_v25, %v204_v33  ;;  %v290_v54 = vadd.f32 %v449_v26, %v236_v34 }
  0xfa   :  { %v285_v49 = vadd.f32 %v438_v31, %v215_v39  ;;  %v293_v50 = vadd.f32 %v454_v32, %v247_v40 }
  0xfb   :  { %v283_v55 = vadd.f32 %v434_v37, %v207_v43  ;;  %v291_v56 = vadd.f32 %v450_v38, %v239_v44 }
  0xfc   :  { %v471_v57 = vpack.c.bf16 %v285_v49, %v284_v47  ;;  %v491_v58 = vpack.c.bf16 %v293_v50, %v292_v48 }
  0xfd   :  { %v466_v61 = vpack.c.bf16 %v283_v55, %v282_v53  ;;  %v486_v62 = vpack.c.bf16 %v291_v56, %v290_v54  ;;  %v555_v63 = vpop.f32.mrb[4].mxu0  ;;  %v563_v0 = vpop.f32.mrb[4].mxu1 }
  0xfe   :  { %510 = vst [vmem:[%s743_s4 + $0x8] sm:$0xff] %v471_v57   ;;  %514 = vst [vmem:[%s743_s4 + $0x28] sm:$0xff] %v491_v58   ;;  %v228_v3 = vadd.f32 %v555_v63, %v685_v20  ;;  %v260_v4 = vadd.f32 %v563_v0, %v685_v20  ;;  %v219_v5 = vpop.f32.mrb[5].mxu0  ;;  %v251_v6 = vpop.f32.mrb[5].mxu1 }
  0xff   :  { %467 = vst [vmem:[%s743_s4] sm:$0xff] %v466_v61   ;;  %513 = vst [vmem:[%s743_s4 + $0x20] sm:$0xff] %v486_v62   ;;  %v220_v9 = vadd.f32 %v685_v20, %v219_v5  ;;  %v252_v10 = vadd.f32 %v685_v20, %v251_v6  ;;  %v556_v11 = vpop.f32.mrb[6].mxu0  ;;  %v564_v12 = vpop.f32.mrb[6].mxu1 }
 0x100   :  { %v231_v15 = vadd.f32 %v556_v11, %v685_v20  ;;  %v263_v16 = vadd.f32 %v564_v12, %v685_v20  ;;  %v222_v17 = vpop.f32.mrb[7].mxu0  ;;  %v254_v18 = vpop.f32.mrb[7].mxu1  ;;  %v288_v22 = vadd.f32 %v445_v59, %v228_v3  ;;  %v296_v23 = vadd.f32 %v461_v60, %v260_v4 }
 0x101   :  { %v223_v19 = vadd.f32 %v685_v20, %v222_v17  ;;  %v255_v21 = vadd.f32 %v685_v20, %v254_v18  ;;  %v286_v26 = vadd.f32 %v441_v1, %v220_v9  ;;  %v294_v27 = vadd.f32 %v457_v2, %v252_v10 }
 0x102   :  { %v289_v24 = vadd.f32 %v446_v7, %v231_v15  ;;  %v297_v25 = vadd.f32 %v462_v8, %v263_v16 }
 0x103   :  { %v287_v28 = vadd.f32 %v442_v13, %v223_v19  ;;  %v295_v29 = vadd.f32 %v458_v14, %v255_v21 }
 0x104   :  { %v481_v30 = vpack.c.bf16 %v289_v24, %v288_v22  ;;  %v501_v31 = vpack.c.bf16 %v297_v25, %v296_v23 }
 0x105   :  { %v476_v32 = vpack.c.bf16 %v287_v28, %v286_v26  ;;  %v496_v33 = vpack.c.bf16 %v295_v29, %v294_v27 }
 0x106   :  { %512 = vst [vmem:[%s743_s4 + $0x18] sm:$0xff] %v481_v30   ;;  %516 = vst [vmem:[%s743_s4 + $0x38] sm:$0xff] %v501_v31  }
 0x107   :  { %511 = vst [vmem:[%s743_s4 + $0x10] sm:$0xff] %v476_v32   ;;  %515 = vst [vmem:[%s743_s4 + $0x30] sm:$0xff] %v496_v33  }

// kernel: _lambda_.16
= control target key start
LH: loop header
LB: loop body
LE: loop exit
PB: predicated region body
PF: predicated region fallthrough
CT: control target
= control target key end

     0   :  { %s602_s1 = inlined_call_operand.vmem [shape: bf16[128,128], index: 1, kind: input, shape index: {}]   ;;  %s603_s0 = inlined_call_operand.vmem [shape: bf16[128,128], index: 0, kind: input, shape index: {}]   ;;  %s604_s2 = inlined_call_operand.vmem [shape: f32[1,128], index: 2, kind: input, shape index: {}]   ;;  %s605_s3 = inlined_call_operand.vmem [shape: bf16[128,128], index: 3, kind: output, shape index: {}]  }
   0x1   :  { %v491_v0 = vld [vmem:[%s602_s1] sm:$0xff]   ;;  %v492_v1 = vld [vmem:[%s602_s1 + $0x8] sm:$0xff]   ;;  %v493_v2 = vld [vmem:[%s602_s1 + $0x10] sm:$0xff]  }
   0x2   :  { %443 = vmatprep.subr.bf16.mxu0 %v491_v0  ;;  %475 = vmatprep.subr.bf16.mxu1 %v491_v0  ;;  %v494_v3 = vld [vmem:[%s602_s1 + $0x18] sm:$0xff]   ;;  %v499_v4 = vld [vmem:[%s603_s0] sm:$0xff]   ;;  %v496_v7 = vld [vmem:[%s602_s1 + $0x28] sm:$0xff]  }
   0x3   :  { %444 = vmatpush3.bf16.msra.mxu0 %v491_v0  ;;  %483 = vmatpush3.bf16.msra.mxu1 %v491_v0  ;;  %v500_v5 = vld [vmem:[%s603_s0 + $0x20] sm:$0xff]   ;;  %v497_v8 = vld [vmem:[%s602_s1 + $0x30] sm:$0xff]   ;;  %v498_v9 = vld [vmem:[%s602_s1 + $0x38] sm:$0xff]  }
   0x4   :  { %445 = vmatprep.subr.bf16.mxu0 %v492_v1  ;;  %476 = vmatprep.subr.bf16.mxu1 %v492_v1  ;;  %v495_v6 = vld [vmem:[%s602_s1 + $0x20] sm:$0xff]   ;;  %v501_v10 = vld [vmem:[%s603_s0 + $0x8] sm:$0xff]   ;;  %v503_v12 = vld [vmem:[%s603_s0 + $0x10] sm:$0xff]  }
   0x5   :  { %459 = vmatprep.mubr.bf16.mxu0 %v499_v4  ;;  %467 = vmatprep.mubr.bf16.mxu1 %v500_v5  ;;  %v502_v11 = vld [vmem:[%s603_s0 + $0x28] sm:$0xff]   ;;  %v504_v13 = vld [vmem:[%s603_s0 + $0x30] sm:$0xff]   ;;  %v505_v14 = vld [vmem:[%s603_s0 + $0x18] sm:$0xff]  }
   0x6   :  { %v506_v15 = vld [vmem:[%s603_s0 + $0x38] sm:$0xff]   ;;  %v331_v17 = vld [vmem:[%s604_s2] ss:$0 sm:$0xff] }
   0x7   :  { %446 = vmatpush3.bf16.msra.mxu0 %v492_v1  ;;  %484 = vmatpush3.bf16.msra.mxu1 %v492_v1 }
   0x8   :  { %447 = vmatprep.subr.bf16.mxu0 %v493_v2  ;;  %477 = vmatprep.subr.bf16.mxu1 %v493_v2 }
   0xb   :  { %448 = vmatpush3.bf16.msra.mxu0 %v493_v2  ;;  %485 = vmatpush3.bf16.msra.mxu1 %v493_v2 }
   0xc   :  { %449 = vmatprep.subr.bf16.mxu0 %v494_v3  ;;  %478 = vmatprep.subr.bf16.mxu1 %v494_v3 }
   0xf   :  { %450 = vmatpush3.bf16.msra.mxu0 %v494_v3  ;;  %486 = vmatpush3.bf16.msra.mxu1 %v494_v3 }
  0x10   :  { %451 = vmatprep.subr.bf16.mxu0 %v495_v6  ;;  %479 = vmatprep.subr.bf16.mxu1 %v495_v6 }
  0x13   :  { %452 = vmatpush3.bf16.msra.mxu0 %v495_v6  ;;  %487 = vmatpush3.bf16.msra.mxu1 %v495_v6 }
  0x14   :  { %453 = vmatprep.subr.bf16.mxu0 %v496_v7  ;;  %480 = vmatprep.subr.bf16.mxu1 %v496_v7 }
  0x17   :  { %454 = vmatpush3.bf16.msra.mxu0 %v496_v7  ;;  %488 = vmatpush3.bf16.msra.mxu1 %v496_v7 }
  0x18   :  { %455 = vmatprep.subr.bf16.mxu0 %v497_v8  ;;  %481 = vmatprep.subr.bf16.mxu1 %v497_v8 }
  0x1b   :  { %456 = vmatpush3.bf16.msra.mxu0 %v497_v8  ;;  %489 = vmatpush3.bf16.msra.mxu1 %v497_v8 }
  0x1c   :  { %457 = vmatprep.subr.bf16.mxu0 %v498_v9  ;;  %482 = vmatprep.subr.bf16.mxu1 %v498_v9 }
  0x1f   :  { %458 = vmatpush3.bf16.msra.mxu0 %v498_v9  ;;  %490 = vmatpush3.bf16.msra.mxu1 %v498_v9 }
  0x22   :  { %460 = vmatmul.mubr.bf16.vlgmr.msra.gmra.mrb[0].mxu0 %v501_v10  ;;  %468 = vmatmul.mubr.bf16.vlgmr.msra.gmra.mrb[0].mxu1 %v502_v11 }
  0x23   :  { %463 = vmatprep.mubr.bf16.mxu0 %v503_v12  ;;  %471 = vmatprep.mubr.bf16.mxu1 %v504_v13 }
  0x2a   :  { %464 = vmatmul.mubr.bf16.gmra.mrb[4].mxu0 %v505_v14  ;;  %472 = vmatmul.mubr.bf16.gmra.mrb[4].mxu1 %v506_v15 }
  0xf5   :  { %v461_v16 = vpop.f32.mrb[0].mxu0  ;;  %v469_v18 = vpop.f32.mrb[0].mxu1 }
  0xf6   :  { %v184_v19 = vpop.f32.mrb[1].mxu0  ;;  %v216_v20 = vpop.f32.mrb[1].mxu1  ;;  %v193_v23 = vadd.f32 %v461_v16, %v331_v17  ;;  %v225_v24 = vadd.f32 %v469_v18, %v331_v17 }
  0xf7   :  { %v462_v21 = vpop.f32.mrb[2].mxu0  ;;  %v470_v22 = vpop.f32.mrb[2].mxu1  ;;  %v185_v29 = vadd.f32 %v331_v17, %v184_v19  ;;  %v217_v30 = vadd.f32 %v331_v17, %v216_v20 }
  0xf8   :  { %v196_v25 = vadd.f32 %v462_v21, %v331_v17  ;;  %v228_v26 = vadd.f32 %v470_v22, %v331_v17  ;;  %v187_v27 = vpop.f32.mrb[3].mxu0  ;;  %v219_v28 = vpop.f32.mrb[3].mxu1 }
  0xf9   :  { %v188_v31 = vadd.f32 %v331_v17, %v187_v27  ;;  %v220_v32 = vadd.f32 %v331_v17, %v219_v28 }
  0xfa   :  { %v388_v33 = vpack.c.bf16 %v196_v25, %v193_v23  ;;  %v408_v34 = vpack.c.bf16 %v228_v26, %v225_v24 }
  0xfb   :  { %v383_v35 = vpack.c.bf16 %v188_v31, %v185_v29  ;;  %v403_v36 = vpack.c.bf16 %v220_v32, %v217_v30 }
  0xfc   :  { %420 = vst [vmem:[%s605_s3 + $0x8] sm:$0xff] %v388_v33   ;;  %424 = vst [vmem:[%s605_s3 + $0x28] sm:$0xff] %v408_v34  }
  0xfd   :  { %384 = vst [vmem:[%s605_s3] sm:$0xff] %v383_v35   ;;  %423 = vst [vmem:[%s605_s3 + $0x20] sm:$0xff] %v403_v36   ;;  %v465_v37 = vpop.f32.mrb[4].mxu0  ;;  %v473_v38 = vpop.f32.mrb[4].mxu1 }
  0xfe   :  { %v200_v39 = vpop.f32.mrb[5].mxu0  ;;  %v232_v40 = vpop.f32.mrb[5].mxu1  ;;  %v209_v43 = vadd.f32 %v465_v37, %v331_v17  ;;  %v241_v44 = vadd.f32 %v473_v38, %v331_v17 }
  0xff   :  { %v466_v41 = vpop.f32.mrb[6].mxu0  ;;  %v474_v42 = vpop.f32.mrb[6].mxu1  ;;  %v201_v49 = vadd.f32 %v331_v17, %v200_v39  ;;  %v233_v50 = vadd.f32 %v331_v17, %v232_v40 }
 0x100   :  { %v212_v45 = vadd.f32 %v466_v41, %v331_v17  ;;  %v244_v46 = vadd.f32 %v474_v42, %v331_v17  ;;  %v203_v47 = vpop.f32.mrb[7].mxu0  ;;  %v235_v48 = vpop.f32.mrb[7].mxu1 }
 0x101   :  { %v204_v51 = vadd.f32 %v331_v17, %v203_v47  ;;  %v236_v52 = vadd.f32 %v331_v17, %v235_v48 }
 0x102   :  { %v398_v53 = vpack.c.bf16 %v212_v45, %v209_v43  ;;  %v418_v54 = vpack.c.bf16 %v244_v46, %v241_v44 }
 0x103   :  { %v393_v55 = vpack.c.bf16 %v204_v51, %v201_v49  ;;  %v413_v56 = vpack.c.bf16 %v236_v52, %v233_v50 }
 0x104   :  { %422 = vst [vmem:[%s605_s3 + $0x18] sm:$0xff] %v398_v53   ;;  %426 = vst [vmem:[%s605_s3 + $0x38] sm:$0xff] %v418_v54  }
 0x105   :  { %421 = vst [vmem:[%s605_s3 + $0x10] sm:$0xff] %v393_v55   ;;  %425 = vst [vmem:[%s605_s3 + $0x30] sm:$0xff] %v413_v56  }

// kernel: _lambda_.18
= control target key start
LH: loop header
LB: loop body
LE: loop exit
PB: predicated region body
PF: predicated region fallthrough
CT: control target
= control target key end

     0   :  { %s939_s1 = inlined_call_operand.vmem [shape: bf16[256,128], index: 1, kind: input, shape index: {}]   ;;  %s940_s0 = inlined_call_operand.vmem [shape: bf16[128,256], index: 0, kind: input, shape index: {}]   ;;  %s941_s3 = inlined_call_operand.vmem [shape: bf16[128,128], index: 3, kind: input, shape index: {}]   ;;  %s942_s2 = inlined_call_operand.vmem [shape: f32[1,128], index: 2, kind: input, shape index: {}]   ;;  %s943_s4 = inlined_call_operand.vmem [shape: bf16[128,128], index: 4, kind: output, shape index: {}]  }
   0x1   :  { %v709_v0 = vld [vmem:[%s939_s1 + $0x40] sm:$0xff]   ;;  %v711_v2 = vld [vmem:[%s939_s1 + $0x48] sm:$0xff]   ;;  %v713_v4 = vld [vmem:[%s939_s1 + $0x50] sm:$0xff]  }
   0x2   :  { %v710_v1 = vld [vmem:[%s939_s1] sm:$0xff]   ;;  %629 = vmatprep.subr.bf16.mxu0 %v709_v0  ;;  %693 = vmatprep.subr.bf16.mxu1 %v709_v0  ;;  %v712_v3 = vld [vmem:[%s939_s1 + $0x8] sm:$0xff]   ;;  %v714_v5 = vld [vmem:[%s939_s1 + $0x10] sm:$0xff]  }
   0x3   :  { %630 = vmatpush3.bf16.msra.mxu0 %v710_v1  ;;  %701 = vmatpush3.bf16.msra.mxu1 %v710_v1  ;;  %v715_v6 = vld [vmem:[%s939_s1 + $0x58] sm:$0xff]   ;;  %v717_v8 = vld [vmem:[%s939_s1 + $0x60] sm:$0xff]   ;;  %v719_v10 = vld [vmem:[%s939_s1 + $0x68] sm:$0xff]  }
   0x4   :  { %631 = vmatprep.subr.bf16.mxu0 %v711_v2  ;;  %694 = vmatprep.subr.bf16.mxu1 %v711_v2  ;;  %v716_v7 = vld [vmem:[%s939_s1 + $0x18] sm:$0xff]   ;;  %v718_v9 = vld [vmem:[%s939_s1 + $0x20] sm:$0xff]   ;;  %v720_v13 = vld [vmem:[%s939_s1 + $0x28] sm:$0xff]  }
   0x5   :  { %v727_v11 = vld [vmem:[%s940_s0 + $0x4] ss:$8 sps:$4 sm:$0xff]   ;;  %v721_v14 = vld [vmem:[%s939_s1 + $0x70] sm:$0xff]   ;;  %v723_v16 = vld [vmem:[%s939_s1 + $0x78] sm:$0xff]  }
   0x6   :  { %v730_v12 = vld [vmem:[%s940_s0 + $0x44] ss:$8 sps:$4 sm:$0xff]   ;;  %297 = vmatprep.mubr.bf16.mxu0 %v727_v11  ;;  %v722_v15 = vld [vmem:[%s939_s1 + $0x30] sm:$0xff]   ;;  %v724_v17 = vld [vmem:[%s939_s1 + $0x38] sm:$0xff]  }
   0x7   :  { %632 = vmatpush3.bf16.msra.mxu0 %v712_v3  ;;  %702 = vmatpush3.bf16.msra.mxu1 %v712_v3  ;;  %v725_v18 = vld [vmem:[%s940_s0] ss:$8 sps:$4 sm:$0xff]   ;;  %v731_v20 = vld [vmem:[%s940_s0 + $0x14] ss:$8 sps:$4 sm:$0xff]   ;;  %v735_v22 = vld [vmem:[%s940_s0 + $0x10] ss:$8 sps:$4 sm:$0xff]  }
   0x8   :  { %633 = vmatprep.subr.bf16.mxu0 %v713_v4  ;;  %695 = vmatprep.subr.bf16.mxu1 %v713_v4  ;;  %v728_v19 = vld [vmem:[%s940_s0 + $0x40] ss:$8 sps:$4 sm:$0xff]   ;;  %v733_v21 = vld [vmem:[%s940_s0 + $0x54] ss:$8 sps:$4 sm:$0xff]   ;;  %v736_v23 = vld [vmem:[%s940_s0 + $0x50] ss:$8 sps:$4 sm:$0xff]  }
   0x9   :  { %329 = vmatprep.mubr.bf16.mxu1 %v730_v12  ;;  %v737_v24 = vld [vmem:[%s940_s0 + $0x24] ss:$8 sps:$4 sm:$0xff]   ;;  %v741_v26 = vld [vmem:[%s940_s0 + $0x20] ss:$8 sps:$4 sm:$0xff]   ;;  %v743_v28 = vld [vmem:[%s940_s0 + $0x34] ss:$8 sps:$4 sm:$0xff]  }
   0xa   :  { %v739_v25 = vld [vmem:[%s940_s0 + $0x64] ss:$8 sps:$4 sm:$0xff]   ;;  %v742_v27 = vld [vmem:[%s940_s0 + $0x60] ss:$8 sps:$4 sm:$0xff]   ;;  %v745_v29 = vld [vmem:[%s940_s0 + $0x74] ss:$8 sps:$4 sm:$0xff]  }
   0xb   :  { %634 = vmatpush3.bf16.msra.mxu0 %v714_v5  ;;  %703 = vmatpush3.bf16.msra.mxu1 %v714_v5  ;;  %v747_v30 = vld [vmem:[%s940_s0 + $0x30] ss:$8 sps:$4 sm:$0xff]   ;;  %v544_v34 = vld [vmem:[%s941_s3] sm:$0xff]   ;;  %v615_v61 = vld [vmem:[%s941_s3 + $0x8] sm:$0xff]  }
   0xc   :  { %635 = vmatprep.subr.bf16.mxu0 %v715_v6  ;;  %696 = vmatprep.subr.bf16.mxu1 %v715_v6  ;;  %v748_v31 = vld [vmem:[%s940_s0 + $0x70] ss:$8 sps:$4 sm:$0xff]   ;;  %v618_v35 = vld [vmem:[%s941_s3 + $0x20] sm:$0xff]   ;;  %v545_v43 = vunpack.c.l.bf16 %v544_v34  ;;  %v546_v45 = vunpack.c.h.bf16 %v544_v34  ;;  %v619_v62 = vld [vmem:[%s941_s3 + $0x28] sm:$0xff]  }
   0xd   :  { %v879_v36 = vld [vmem:[%s942_s2] ss:$0 sm:$0xff]  ;;  %v561_v44 = vunpack.c.l.bf16 %v618_v35  ;;  %v562_v47 = vunpack.c.h.bf16 %v618_v35  ;;  %v566_v11 = vunpack.c.h.bf16 %v619_v62 }
   0xf   :  { %636 = vmatpush3.bf16.msra.mxu0 %v716_v7  ;;  %704 = vmatpush3.bf16.msra.mxu1 %v716_v7  ;;  %v549_v7 = vunpack.c.l.bf16 %v615_v61 }
  0x10   :  { %637 = vmatprep.subr.bf16.mxu0 %v717_v8  ;;  %697 = vmatprep.subr.bf16.mxu1 %v717_v8  ;;  %v565_v8 = vunpack.c.l.bf16 %v619_v62 }
  0x13   :  { %638 = vmatpush3.bf16.msra.mxu0 %v718_v9  ;;  %705 = vmatpush3.bf16.msra.mxu1 %v718_v9  ;;  %v550_v9 = vunpack.c.h.bf16 %v615_v61 }
  0x14   :  { %639 = vmatprep.subr.bf16.mxu0 %v719_v10  ;;  %698 = vmatprep.subr.bf16.mxu1 %v719_v10 }
  0x17   :  { %640 = vmatpush3.bf16.msra.mxu0 %v720_v13  ;;  %706 = vmatpush3.bf16.msra.mxu1 %v720_v13 }
  0x18   :  { %641 = vmatprep.subr.bf16.mxu0 %v721_v14  ;;  %699 = vmatprep.subr.bf16.mxu1 %v721_v14 }
  0x1b   :  { %642 = vmatpush3.bf16.msra.mxu0 %v722_v15  ;;  %707 = vmatpush3.bf16.msra.mxu1 %v722_v15 }
  0x1c   :  { %643 = vmatprep.subr.bf16.mxu0 %v723_v16  ;;  %700 = vmatprep.subr.bf16.mxu1 %v723_v16 }
  0x1f   :  { %644 = vmatpush3.bf16.msra.mxu0 %v724_v17  ;;  %708 = vmatpush3.bf16.msra.mxu1 %v724_v17 }
  0x22   :  { %298 = vmatmul.mubr.bf16.vlgmr.msra.gmra.mrb[0].mxu0 %v725_v18  ;;  %330 = vmatmul.mubr.bf16.vlgmr.msra.gmra.mrb[0].mxu1 %v728_v19 }
  0x23   :  { %305 = vmatprep.mubr.bf16.mxu0 %v731_v20  ;;  %337 = vmatprep.mubr.bf16.mxu1 %v733_v21 }
  0x2a   :  { %306 = vmatmul.mubr.bf16.gmra.mrb[4].mxu0 %v735_v22  ;;  %338 = vmatmul.mubr.bf16.gmra.mrb[4].mxu1 %v736_v23 }
  0x2b   :  { %313 = vmatprep.mubr.bf16.mxu0 %v737_v24  ;;  %345 = vmatprep.mubr.bf16.mxu1 %v739_v25  ;;  %v616_v25 = vld [vmem:[%s941_s3 + $0x10] sm:$0xff]  }
  0x2c   :  { %v553_v35 = vunpack.c.l.bf16 %v616_v25 }
  0x32   :  { %314 = vmatmul.mubr.bf16.gmra.mrb[8].mxu0 %v741_v26  ;;  %346 = vmatmul.mubr.bf16.gmra.mrb[8].mxu1 %v742_v27  ;;  %v620_v26 = vld [vmem:[%s941_s3 + $0x30] sm:$0xff]  }
  0x33   :  { %321 = vmatprep.mubr.bf16.mxu0 %v743_v28  ;;  %353 = vmatprep.mubr.bf16.mxu1 %v745_v29 }
  0x3a   :  { %322 = vmatmul.mubr.bf16.gmra.mrb[12].mxu0 %v747_v30  ;;  %354 = vmatmul.mubr.bf16.gmra.mrb[12].mxu1 %v748_v31 }
  0xf5   :  { %v645_v32 = vpop.f32.mrb[0].mxu0  ;;  %v669_v33 = vpop.f32.mrb[0].mxu1 }
  0xf6   :  { %v646_v37 = vpop.f32.mrb[1].mxu0  ;;  %v670_v38 = vpop.f32.mrb[1].mxu1 }
  0xf7   :  { %v647_v39 = vadd.f32 %v646_v37, %v645_v32  ;;  %v671_v40 = vadd.f32 %v670_v38, %v669_v33  ;;  %v648_v41 = vpop.f32.mrb[2].mxu0  ;;  %v672_v42 = vpop.f32.mrb[2].mxu1  ;;  %v569_v37 = vunpack.c.l.bf16 %v620_v26  ;;  %v554_v38 = vunpack.c.h.bf16 %v616_v25 }
  0xf8   :  { %v649_v46 = vpop.f32.mrb[3].mxu0  ;;  %v673_v48 = vpop.f32.mrb[3].mxu1 }
  0xf9   :  { %v300_v49 = vadd.f32 %v647_v39, %v879_v36  ;;  %v332_v50 = vadd.f32 %v671_v40, %v879_v36  ;;  %v650_v51 = vadd.f32 %v649_v46, %v648_v41  ;;  %v674_v52 = vadd.f32 %v673_v48, %v672_v42 }
  0xfa   :  { %v570_v40 = vunpack.c.h.bf16 %v620_v26 }
  0xfb   :  { %v303_v53 = vadd.f32 %v650_v51, %v879_v36  ;;  %v335_v54 = vadd.f32 %v674_v52, %v879_v36  ;;  %v378_v55 = vadd.f32 %v545_v43, %v300_v49  ;;  %v386_v56 = vadd.f32 %v561_v44, %v332_v50 }
  0xfd   :  { %v379_v57 = vadd.f32 %v546_v45, %v303_v53  ;;  %v387_v58 = vadd.f32 %v562_v47, %v335_v54  ;;  %v651_v59 = vpop.f32.mrb[4].mxu0  ;;  %v675_v60 = vpop.f32.mrb[4].mxu1  ;;  %v617_v54 = vld [vmem:[%s941_s3 + $0x18] sm:$0xff]  }
  0xfe   :  { %v652_v63 = vpop.f32.mrb[5].mxu0  ;;  %v676_v0 = vpop.f32.mrb[5].mxu1 }
  0xff   :  { %v578_v1 = vpack.c.bf16 %v379_v57, %v378_v55  ;;  %v598_v2 = vpack.c.bf16 %v387_v58, %v386_v56  ;;  %v653_v3 = vadd.f32 %v652_v63, %v651_v59  ;;  %v677_v4 = vadd.f32 %v676_v0, %v675_v60  ;;  %v654_v5 = vpop.f32.mrb[6].mxu0  ;;  %v678_v6 = vpop.f32.mrb[6].mxu1  ;;  %v621_v55 = vld [vmem:[%s941_s3 + $0x38] sm:$0xff]  }
 0x100   :  { %v655_v10 = vpop.f32.mrb[7].mxu0  ;;  %v679_v12 = vpop.f32.mrb[7].mxu1  ;;  %v557_v0 = vunpack.c.l.bf16 %v617_v54 }
 0x101   :  { %579 = vst [vmem:[%s943_s4] sm:$0xff] %v578_v1   ;;  %625 = vst [vmem:[%s943_s4 + $0x20] sm:$0xff] %v598_v2   ;;  %v308_v13 = vadd.f32 %v653_v3, %v879_v36  ;;  %v340_v14 = vadd.f32 %v677_v4, %v879_v36  ;;  %v656_v15 = vadd.f32 %v655_v10, %v654_v5  ;;  %v573_v1 = vunpack.c.l.bf16 %v621_v55 }
 0x102   :  { %v680_v16 = vadd.f32 %v679_v12, %v678_v6  ;;  %v558_v2 = vunpack.c.h.bf16 %v617_v54  ;;  %v574_v4 = vunpack.c.h.bf16 %v621_v55 }
 0x103   :  { %v311_v17 = vadd.f32 %v656_v15, %v879_v36  ;;  %v380_v19 = vadd.f32 %v549_v7, %v308_v13  ;;  %v388_v20 = vadd.f32 %v565_v8, %v340_v14 }
 0x104   :  { %v343_v18 = vadd.f32 %v680_v16, %v879_v36 }
 0x105   :  { %v381_v21 = vadd.f32 %v550_v9, %v311_v17  ;;  %v657_v23 = vpop.f32.mrb[8].mxu0  ;;  %v681_v24 = vpop.f32.mrb[8].mxu1 }
 0x106   :  { %v389_v22 = vadd.f32 %v566_v11, %v343_v18  ;;  %v658_v27 = vpop.f32.mrb[9].mxu0  ;;  %v682_v28 = vpop.f32.mrb[9].mxu1 }
 0x107   :  { %v583_v29 = vpack.c.bf16 %v381_v21, %v380_v19  ;;  %v659_v31 = vadd.f32 %v658_v27, %v657_v23  ;;  %v683_v32 = vadd.f32 %v682_v28, %v681_v24  ;;  %v660_v33 = vpop.f32.mrb[10].mxu0  ;;  %v684_v34 = vpop.f32.mrb[10].mxu1 }
 0x108   :  { %v603_v30 = vpack.c.bf16 %v389_v22, %v388_v20  ;;  %v661_v39 = vpop.f32.mrb[11].mxu0  ;;  %v685_v41 = vpop.f32.mrb[11].mxu1 }
 0x109   :  { %622 = vst [vmem:[%s943_s4 + $0x8] sm:$0xff] %v583_v29   ;;  %v316_v42 = vadd.f32 %v659_v31, %v879_v36  ;;  %v348_v43 = vadd.f32 %v683_v32, %v879_v36  ;;  %v662_v44 = vadd.f32 %v661_v39, %v660_v33  ;;  %v686_v45 = vadd.f32 %v685_v41, %v684_v34 }
 0x10a   :  { %626 = vst [vmem:[%s943_s4 + $0x28] sm:$0xff] %v603_v30  }
 0x10b   :  { %v319_v46 = vadd.f32 %v662_v44, %v879_v36  ;;  %v351_v47 = vadd.f32 %v686_v45, %v879_v36  ;;  %v382_v48 = vadd.f32 %v553_v35, %v316_v42  ;;  %v390_v49 = vadd.f32 %v569_v37, %v348_v43 }
 0x10d   :  { %v383_v50 = vadd.f32 %v554_v38, %v319_v46  ;;  %v391_v51 = vadd.f32 %v570_v40, %v351_v47  ;;  %v663_v52 = vpop.f32.mrb[12].mxu0  ;;  %v687_v53 = vpop.f32.mrb[12].mxu1 }
 0x10e   :  { %v664_v56 = vpop.f32.mrb[13].mxu0  ;;  %v688_v57 = vpop.f32.mrb[13].mxu1 }
 0x10f   :  { %v588_v58 = vpack.c.bf16 %v383_v50, %v382_v48  ;;  %v608_v59 = vpack.c.bf16 %v391_v51, %v390_v49  ;;  %v665_v60 = vadd.f32 %v664_v56, %v663_v52  ;;  %v689_v61 = vadd.f32 %v688_v57, %v687_v53  ;;  %v666_v62 = vpop.f32.mrb[14].mxu0  ;;  %v690_v63 = vpop.f32.mrb[14].mxu1 }
 0x110   :  { %v667_v3 = vpop.f32.mrb[15].mxu0  ;;  %v691_v5 = vpop.f32.mrb[15].mxu1 }
 0x111   :  { %623 = vst [vmem:[%s943_s4 + $0x10] sm:$0xff] %v588_v58   ;;  %627 = vst [vmem:[%s943_s4 + $0x30] sm:$0xff] %v608_v59   ;;  %v324_v6 = vadd.f32 %v665_v60, %v879_v36  ;;  %v356_v7 = vadd.f32 %v689_v61, %v879_v36  ;;  %v668_v8 = vadd.f32 %v667_v3, %v666_v62 }
 0x112   :  { %v692_v9 = vadd.f32 %v691_v5, %v690_v63 }
 0x113   :  { %v327_v10 = vadd.f32 %v668_v8, %v879_v36  ;;  %v384_v12 = vadd.f32 %v557_v0, %v324_v6  ;;  %v392_v13 = vadd.f32 %v573_v1, %v356_v7 }
 0x114   :  { %v359_v11 = vadd.f32 %v692_v9, %v879_v36 }
 0x115   :  { %v385_v14 = vadd.f32 %v558_v2, %v327_v10 }
 0x116   :  { %v393_v15 = vadd.f32 %v574_v4, %v359_v11 }
 0x117   :  { %v593_v16 = vpack.c.bf16 %v385_v14, %v384_v12 }
 0x118   :  { %v613_v17 = vpack.c.bf16 %v393_v15, %v392_v13 }
 0x119   :  { %624 = vst [vmem:[%s943_s4 + $0x18] sm:$0xff] %v593_v16  }
 0x11a   :  { %628 = vst [vmem:[%s943_s4 + $0x38] sm:$0xff] %v613_v17  }

// kernel: _lambda_.20
= control target key start
LH: loop header
LB: loop body
LE: loop exit
PB: predicated region body
PF: predicated region fallthrough
CT: control target
= control target key end

     0   :  { %s836_s1 = inlined_call_operand.vmem [shape: bf16[256,128], index: 1, kind: input, shape index: {}]   ;;  %s837_s0 = inlined_call_operand.vmem [shape: bf16[128,256], index: 0, kind: input, shape index: {}]   ;;  %s838_s2 = inlined_call_operand.vmem [shape: f32[1,128], index: 2, kind: input, shape index: {}]   ;;  %s839_s3 = inlined_call_operand.vmem [shape: bf16[128,128], index: 3, kind: output, shape index: {}]  }
   0x1   :  { %v635_v0 = vld [vmem:[%s836_s1 + $0x40] sm:$0xff]   ;;  %v637_v2 = vld [vmem:[%s836_s1 + $0x48] sm:$0xff]   ;;  %v639_v4 = vld [vmem:[%s836_s1 + $0x50] sm:$0xff]  }
   0x2   :  { %v636_v1 = vld [vmem:[%s836_s1] sm:$0xff]   ;;  %555 = vmatprep.subr.bf16.mxu0 %v635_v0  ;;  %619 = vmatprep.subr.bf16.mxu1 %v635_v0  ;;  %v638_v3 = vld [vmem:[%s836_s1 + $0x8] sm:$0xff]   ;;  %v640_v5 = vld [vmem:[%s836_s1 + $0x10] sm:$0xff]  }
   0x3   :  { %556 = vmatpush3.bf16.msra.mxu0 %v636_v1  ;;  %627 = vmatpush3.bf16.msra.mxu1 %v636_v1  ;;  %v641_v6 = vld [vmem:[%s836_s1 + $0x58] sm:$0xff]   ;;  %v643_v8 = vld [vmem:[%s836_s1 + $0x60] sm:$0xff]   ;;  %v645_v10 = vld [vmem:[%s836_s1 + $0x68] sm:$0xff]  }
   0x4   :  { %557 = vmatprep.subr.bf16.mxu0 %v637_v2  ;;  %620 = vmatprep.subr.bf16.mxu1 %v637_v2  ;;  %v642_v7 = vld [vmem:[%s836_s1 + $0x18] sm:$0xff]   ;;  %v644_v9 = vld [vmem:[%s836_s1 + $0x20] sm:$0xff]   ;;  %v646_v13 = vld [vmem:[%s836_s1 + $0x28] sm:$0xff]  }
   0x5   :  { %v653_v11 = vld [vmem:[%s837_s0 + $0x4] ss:$8 sps:$4 sm:$0xff]   ;;  %v647_v14 = vld [vmem:[%s836_s1 + $0x70] sm:$0xff]   ;;  %v649_v16 = vld [vmem:[%s836_s1 + $0x78] sm:$0xff]  }
   0x6   :  { %v656_v12 = vld [vmem:[%s837_s0 + $0x44] ss:$8 sps:$4 sm:$0xff]   ;;  %278 = vmatprep.mubr.bf16.mxu0 %v653_v11  ;;  %v648_v15 = vld [vmem:[%s836_s1 + $0x30] sm:$0xff]   ;;  %v650_v17 = vld [vmem:[%s836_s1 + $0x38] sm:$0xff]  }
   0x7   :  { %558 = vmatpush3.bf16.msra.mxu0 %v638_v3  ;;  %628 = vmatpush3.bf16.msra.mxu1 %v638_v3  ;;  %v651_v18 = vld [vmem:[%s837_s0] ss:$8 sps:$4 sm:$0xff]   ;;  %v657_v20 = vld [vmem:[%s837_s0 + $0x14] ss:$8 sps:$4 sm:$0xff]   ;;  %v661_v22 = vld [vmem:[%s837_s0 + $0x10] ss:$8 sps:$4 sm:$0xff]  }
   0x8   :  { %559 = vmatprep.subr.bf16.mxu0 %v639_v4  ;;  %621 = vmatprep.subr.bf16.mxu1 %v639_v4  ;;  %v654_v19 = vld [vmem:[%s837_s0 + $0x40] ss:$8 sps:$4 sm:$0xff]   ;;  %v659_v21 = vld [vmem:[%s837_s0 + $0x54] ss:$8 sps:$4 sm:$0xff]   ;;  %v662_v23 = vld [vmem:[%s837_s0 + $0x50] ss:$8 sps:$4 sm:$0xff]  }
   0x9   :  { %310 = vmatprep.mubr.bf16.mxu1 %v656_v12  ;;  %v663_v24 = vld [vmem:[%s837_s0 + $0x24] ss:$8 sps:$4 sm:$0xff]   ;;  %v667_v26 = vld [vmem:[%s837_s0 + $0x20] ss:$8 sps:$4 sm:$0xff]   ;;  %v669_v28 = vld [vmem:[%s837_s0 + $0x34] ss:$8 sps:$4 sm:$0xff]  }
   0xa   :  { %v665_v25 = vld [vmem:[%s837_s0 + $0x64] ss:$8 sps:$4 sm:$0xff]   ;;  %v668_v27 = vld [vmem:[%s837_s0 + $0x60] ss:$8 sps:$4 sm:$0xff]   ;;  %v671_v29 = vld [vmem:[%s837_s0 + $0x74] ss:$8 sps:$4 sm:$0xff]  }
   0xb   :  { %560 = vmatpush3.bf16.msra.mxu0 %v640_v5  ;;  %629 = vmatpush3.bf16.msra.mxu1 %v640_v5  ;;  %v673_v30 = vld [vmem:[%s837_s0 + $0x30] ss:$8 sps:$4 sm:$0xff]   ;;  %v794_v34 = vld [vmem:[%s838_s2] ss:$0 sm:$0xff] }
   0xc   :  { %561 = vmatprep.subr.bf16.mxu0 %v641_v6  ;;  %622 = vmatprep.subr.bf16.mxu1 %v641_v6  ;;  %v674_v31 = vld [vmem:[%s837_s0 + $0x70] ss:$8 sps:$4 sm:$0xff]  }
   0xf   :  { %562 = vmatpush3.bf16.msra.mxu0 %v642_v7  ;;  %630 = vmatpush3.bf16.msra.mxu1 %v642_v7 }
  0x10   :  { %563 = vmatprep.subr.bf16.mxu0 %v643_v8  ;;  %623 = vmatprep.subr.bf16.mxu1 %v643_v8 }
  0x13   :  { %564 = vmatpush3.bf16.msra.mxu0 %v644_v9  ;;  %631 = vmatpush3.bf16.msra.mxu1 %v644_v9 }
  0x14   :  { %565 = vmatprep.subr.bf16.mxu0 %v645_v10  ;;  %624 = vmatprep.subr.bf16.mxu1 %v645_v10 }
  0x17   :  { %566 = vmatpush3.bf16.msra.mxu0 %v646_v13  ;;  %632 = vmatpush3.bf16.msra.mxu1 %v646_v13 }
  0x18   :  { %567 = vmatprep.subr.bf16.mxu0 %v647_v14  ;;  %625 = vmatprep.subr.bf16.mxu1 %v647_v14 }
  0x1b   :  { %568 = vmatpush3.bf16.msra.mxu0 %v648_v15  ;;  %633 = vmatpush3.bf16.msra.mxu1 %v648_v15 }
  0x1c   :  { %569 = vmatprep.subr.bf16.mxu0 %v649_v16  ;;  %626 = vmatprep.subr.bf16.mxu1 %v649_v16 }
  0x1f   :  { %570 = vmatpush3.bf16.msra.mxu0 %v650_v17  ;;  %634 = vmatpush3.bf16.msra.mxu1 %v650_v17 }
  0x22   :  { %279 = vmatmul.mubr.bf16.vlgmr.msra.gmra.mrb[0].mxu0 %v651_v18  ;;  %311 = vmatmul.mubr.bf16.vlgmr.msra.gmra.mrb[0].mxu1 %v654_v19 }
  0x23   :  { %286 = vmatprep.mubr.bf16.mxu0 %v657_v20  ;;  %318 = vmatprep.mubr.bf16.mxu1 %v659_v21 }
  0x2a   :  { %287 = vmatmul.mubr.bf16.gmra.mrb[4].mxu0 %v661_v22  ;;  %319 = vmatmul.mubr.bf16.gmra.mrb[4].mxu1 %v662_v23 }
  0x2b   :  { %294 = vmatprep.mubr.bf16.mxu0 %v663_v24  ;;  %326 = vmatprep.mubr.bf16.mxu1 %v665_v25 }
  0x32   :  { %295 = vmatmul.mubr.bf16.gmra.mrb[8].mxu0 %v667_v26  ;;  %327 = vmatmul.mubr.bf16.gmra.mrb[8].mxu1 %v668_v27 }
  0x33   :  { %302 = vmatprep.mubr.bf16.mxu0 %v669_v28  ;;  %334 = vmatprep.mubr.bf16.mxu1 %v671_v29 }
  0x3a   :  { %303 = vmatmul.mubr.bf16.gmra.mrb[12].mxu0 %v673_v30  ;;  %335 = vmatmul.mubr.bf16.gmra.mrb[12].mxu1 %v674_v31 }
  0xf5   :  { %v571_v32 = vpop.f32.mrb[0].mxu0  ;;  %v595_v33 = vpop.f32.mrb[0].mxu1 }
  0xf6   :  { %v572_v35 = vpop.f32.mrb[1].mxu0  ;;  %v596_v36 = vpop.f32.mrb[1].mxu1 }
  0xf7   :  { %v573_v37 = vadd.f32 %v572_v35, %v571_v32  ;;  %v597_v38 = vadd.f32 %v596_v36, %v595_v33  ;;  %v574_v39 = vpop.f32.mrb[2].mxu0  ;;  %v598_v40 = vpop.f32.mrb[2].mxu1 }
  0xf8   :  { %v575_v41 = vpop.f32.mrb[3].mxu0  ;;  %v599_v42 = vpop.f32.mrb[3].mxu1 }
  0xf9   :  { %v281_v43 = vadd.f32 %v573_v37, %v794_v34  ;;  %v313_v44 = vadd.f32 %v597_v38, %v794_v34  ;;  %v576_v45 = vadd.f32 %v575_v41, %v574_v39  ;;  %v600_v46 = vadd.f32 %v599_v42, %v598_v40 }
  0xfb   :  { %v284_v47 = vadd.f32 %v576_v45, %v794_v34  ;;  %v316_v48 = vadd.f32 %v600_v46, %v794_v34  ;;  %v343_v49 = vmax.f32 %v281_v43, 0.0  ;;  %v351_v50 = vmax.f32 %v313_v44, 0.0 }
  0xfd   :  { %v344_v51 = vmax.f32 %v284_v47, 0.0  ;;  %v352_v52 = vmax.f32 %v316_v48, 0.0  ;;  %v577_v53 = vpop.f32.mrb[4].mxu0  ;;  %v601_v54 = vpop.f32.mrb[4].mxu1 }
  0xfe   :  { %v578_v55 = vpop.f32.mrb[5].mxu0  ;;  %v602_v56 = vpop.f32.mrb[5].mxu1 }
  0xff   :  { %v511_v57 = vpack.c.bf16 %v344_v51, %v343_v49  ;;  %v531_v58 = vpack.c.bf16 %v352_v52, %v351_v50  ;;  %v579_v59 = vadd.f32 %v578_v55, %v577_v53  ;;  %v603_v60 = vadd.f32 %v602_v56, %v601_v54  ;;  %v580_v61 = vpop.f32.mrb[6].mxu0  ;;  %v604_v62 = vpop.f32.mrb[6].mxu1 }
 0x100   :  { %v581_v63 = vpop.f32.mrb[7].mxu0  ;;  %v605_v0 = vpop.f32.mrb[7].mxu1 }
 0x101   :  { %512 = vst [vmem:[%s839_s3] sm:$0xff] %v511_v57   ;;  %551 = vst [vmem:[%s839_s3 + $0x20] sm:$0xff] %v531_v58   ;;  %v289_v1 = vadd.f32 %v579_v59, %v794_v34  ;;  %v321_v2 = vadd.f32 %v603_v60, %v794_v34  ;;  %v582_v3 = vadd.f32 %v581_v63, %v580_v61 }
 0x102   :  { %v606_v4 = vadd.f32 %v605_v0, %v604_v62 }
 0x103   :  { %v292_v5 = vadd.f32 %v582_v3, %v794_v34  ;;  %v345_v7 = vmax.f32 %v289_v1, 0.0  ;;  %v353_v8 = vmax.f32 %v321_v2, 0.0 }
 0x104   :  { %v324_v6 = vadd.f32 %v606_v4, %v794_v34 }
 0x105   :  { %v346_v9 = vmax.f32 %v292_v5, 0.0  ;;  %v583_v11 = vpop.f32.mrb[8].mxu0  ;;  %v607_v12 = vpop.f32.mrb[8].mxu1 }
 0x106   :  { %v354_v10 = vmax.f32 %v324_v6, 0.0  ;;  %v584_v13 = vpop.f32.mrb[9].mxu0  ;;  %v608_v14 = vpop.f32.mrb[9].mxu1 }
 0x107   :  { %v516_v15 = vpack.c.bf16 %v346_v9, %v345_v7  ;;  %v585_v17 = vadd.f32 %v584_v13, %v583_v11  ;;  %v609_v18 = vadd.f32 %v608_v14, %v607_v12  ;;  %v586_v19 = vpop.f32.mrb[10].mxu0  ;;  %v610_v20 = vpop.f32.mrb[10].mxu1 }
 0x108   :  { %v536_v16 = vpack.c.bf16 %v354_v10, %v353_v8  ;;  %v587_v21 = vpop.f32.mrb[11].mxu0  ;;  %v611_v22 = vpop.f32.mrb[11].mxu1 }
 0x109   :  { %548 = vst [vmem:[%s839_s3 + $0x8] sm:$0xff] %v516_v15   ;;  %v297_v23 = vadd.f32 %v585_v17, %v794_v34  ;;  %v329_v24 = vadd.f32 %v609_v18, %v794_v34  ;;  %v588_v25 = vadd.f32 %v587_v21, %v586_v19  ;;  %v612_v26 = vadd.f32 %v611_v22, %v610_v20 }
 0x10a   :  { %552 = vst [vmem:[%s839_s3 + $0x28] sm:$0xff] %v536_v16  }
 0x10b   :  { %v300_v27 = vadd.f32 %v588_v25, %v794_v34  ;;  %v332_v28 = vadd.f32 %v612_v26, %v794_v34  ;;  %v347_v29 = vmax.f32 %v297_v23, 0.0  ;;  %v355_v30 = vmax.f32 %v329_v24, 0.0 }
 0x10d   :  { %v348_v31 = vmax.f32 %v300_v27, 0.0  ;;  %v356_v32 = vmax.f32 %v332_v28, 0.0  ;;  %v589_v33 = vpop.f32.mrb[12].mxu0  ;;  %v613_v35 = vpop.f32.mrb[12].mxu1 }
 0x10e   :  { %v590_v36 = vpop.f32.mrb[13].mxu0  ;;  %v614_v37 = vpop.f32.mrb[13].mxu1 }
 0x10f   :  { %v521_v38 = vpack.c.bf16 %v348_v31, %v347_v29  ;;  %v541_v39 = vpack.c.bf16 %v356_v32, %v355_v30  ;;  %v591_v40 = vadd.f32 %v590_v36, %v589_v33  ;;  %v615_v41 = vadd.f32 %v614_v37, %v613_v35  ;;  %v592_v42 = vpop.f32.mrb[14].mxu0  ;;  %v616_v43 = vpop.f32.mrb[14].mxu1 }
 0x110   :  { %v593_v44 = vpop.f32.mrb[15].mxu0  ;;  %v617_v45 = vpop.f32.mrb[15].mxu1 }
 0x111   :  { %549 = vst [vmem:[%s839_s3 + $0x10] sm:$0xff] %v521_v38   ;;  %553 = vst [vmem:[%s839_s3 + $0x30] sm:$0xff] %v541_v39   ;;  %v305_v46 = vadd.f32 %v591_v40, %v794_v34  ;;  %v337_v47 = vadd.f32 %v615_v41, %v794_v34  ;;  %v594_v48 = vadd.f32 %v593_v44, %v592_v42 }
 0x112   :  { %v618_v49 = vadd.f32 %v617_v45, %v616_v43 }
 0x113   :  { %v308_v50 = vadd.f32 %v594_v48, %v794_v34  ;;  %v349_v52 = vmax.f32 %v305_v46, 0.0  ;;  %v357_v53 = vmax.f32 %v337_v47, 0.0 }
 0x114   :  { %v340_v51 = vadd.f32 %v618_v49, %v794_v34 }
 0x115   :  { %v350_v54 = vmax.f32 %v308_v50, 0.0 }
 0x116   :  { %v358_v55 = vmax.f32 %v340_v51, 0.0 }
 0x117   :  { %v526_v56 = vpack.c.bf16 %v350_v54, %v349_v52 }
 0x118   :  { %v546_v57 = vpack.c.bf16 %v358_v55, %v357_v53 }
 0x119   :  { %550 = vst [vmem:[%s839_s3 + $0x18] sm:$0xff] %v526_v56  }
 0x11a   :  { %554 = vst [vmem:[%s839_s3 + $0x38] sm:$0xff] %v546_v57  }

// kernel: _lambda_.23
= control target key start
LH: loop header
LB: loop body
LE: loop exit
PB: predicated region body
PF: predicated region fallthrough
CT: control target
= control target key end

     0   :  { %s1176_s1 = inlined_call_operand.vmem [shape: bf16[384,128], index: 1, kind: input, shape index: {}]   ;;  %s1177_s0 = inlined_call_operand.vmem [shape: bf16[128,384], index: 0, kind: input, shape index: {}]   ;;  %s1178_s2 = inlined_call_operand.vmem [shape: f32[1,128], index: 2, kind: input, shape index: {}]   ;;  %s1179_s3 = inlined_call_operand.vmem [shape: bf16[128,128], index: 3, kind: output, shape index: {}]  }
   0x1   :  { %v908_v0 = vld [vmem:[%s1176_s1 + $0x40] sm:$0xff]   ;;  %v910_v2 = vld [vmem:[%s1176_s1 + $0x48] sm:$0xff]   ;;  %v913_v5 = vld [vmem:[%s1176_s1 + $0x50] sm:$0xff]  }
   0x2   :  { %v909_v1 = vld [vmem:[%s1176_s1] sm:$0xff]   ;;  %796 = vmatprep.subr.bf16.mxu0 %v908_v0  ;;  %v912_v4 = vld [vmem:[%s1176_s1 + $0x8] sm:$0xff]   ;;  %v915_v7 = vld [vmem:[%s1176_s1 + $0x10] sm:$0xff]  }
   0x3   :  { %797 = vmatpush3.bf16.msra.mxu0 %v909_v1  ;;  %v911_v3 = vld [vmem:[%s1176_s1 + $0x80] sm:$0xff]   ;;  %v914_v6 = vld [vmem:[%s1176_s1 + $0x88] sm:$0xff]   ;;  %v916_v8 = vld [vmem:[%s1176_s1 + $0x58] sm:$0xff]  }
   0x4   :  { %798 = vmatprep.subr.bf16.mxu0 %v910_v2  ;;  %876 = vmatprep.subr.bf16.mxu1 %v911_v3  ;;  %v917_v9 = vld [vmem:[%s1176_s1 + $0x90] sm:$0xff]   ;;  %v918_v10 = vld [vmem:[%s1176_s1 + $0x18] sm:$0xff]   ;;  %v919_v11 = vld [vmem:[%s1176_s1 + $0x60] sm:$0xff]  }
   0x5   :  { %877 = vmatpush3.bf16.msra.mxu1 %v911_v3  ;;  %v920_v12 = vld [vmem:[%s1176_s1 + $0x98] sm:$0xff]   ;;  %v921_v13 = vld [vmem:[%s1176_s1 + $0x20] sm:$0xff]   ;;  %v922_v15 = vld [vmem:[%s1176_s1 + $0x68] sm:$0xff]  }
   0x6   :  { %878 = vmatprep.subr.bf16.mxu1 %v914_v6  ;;  %v923_v14 = vld [vmem:[%s1176_s1 + $0xa0] sm:$0xff]   ;;  %v924_v16 = vld [vmem:[%s1176_s1 + $0x28] sm:$0xff]   ;;  %v925_v18 = vld [vmem:[%s1176_s1 + $0x70] sm:$0xff]  }
   0x7   :  { %799 = vmatpush3.bf16.msra.mxu0 %v912_v4  ;;  %v926_v17 = vld [vmem:[%s1176_s1 + $0xa8] sm:$0xff]   ;;  %v927_v19 = vld [vmem:[%s1176_s1 + $0x30] sm:$0xff]   ;;  %v928_v20 = vld [vmem:[%s1176_s1 + $0x78] sm:$0xff]  }
   0x8   :  { %800 = vmatprep.subr.bf16.mxu0 %v913_v5  ;;  %v929_v21 = vld [vmem:[%s1176_s1 + $0xb0] sm:$0xff]   ;;  %v930_v23 = vld [vmem:[%s1176_s1 + $0x38] sm:$0xff]   ;;  %v931_v26 = vld [vmem:[%s1177_s0] ss:$12 sps:$4 sm:$0xff]  }
   0x9   :  { %879 = vmatpush3.bf16.msra.mxu1 %v914_v6  ;;  %v933_v22 = vld [vmem:[%s1177_s0 + $0x4] ss:$12 sps:$4 sm:$0xff]   ;;  %v935_v24 = vld [vmem:[%s1177_s0 + $0x8] ss:$12 sps:$4 sm:$0xff]   ;;  %v934_v25 = vld [vmem:[%s1176_s1 + $0xb8] sm:$0xff]  }
   0xa   :  { %880 = vmatprep.subr.bf16.mxu1 %v917_v9  ;;  %406 = vmatprep.mubr.bf16.mxu0 %v933_v22  ;;  %v937_v27 = vld [vmem:[%s1177_s0 + $0x1c] ss:$12 sps:$4 sm:$0xff]   ;;  %v936_v28 = vld [vmem:[%s1177_s0 + $0x20] ss:$12 sps:$4 sm:$0xff]   ;;  %v943_v29 = vld [vmem:[%s1177_s0 + $0x38] ss:$12 sps:$4 sm:$0xff]  }
   0xb   :  { %801 = vmatpush3.bf16.msra.mxu0 %v915_v7  ;;  %892 = vmatprep.mubr.bf16.mxu1 %v935_v24  ;;  %v939_v30 = vld [vmem:[%s1177_s0 + $0x18] ss:$12 sps:$4 sm:$0xff]   ;;  %v940_v31 = vld [vmem:[%s1177_s0 + $0x34] ss:$12 sps:$4 sm:$0xff]   ;;  %v944_v32 = vld [vmem:[%s1177_s0 + $0x50] ss:$12 sps:$4 sm:$0xff]  }
   0xc   :  { %802 = vmatprep.subr.bf16.mxu0 %v916_v8  ;;  %v951_v33 = vld [vmem:[%s1177_s0 + $0x68] ss:$12 sps:$4 sm:$0xff]   ;;  %v942_v34 = vld [vmem:[%s1177_s0 + $0x30] ss:$12 sps:$4 sm:$0xff]   ;;  %v945_v35 = vld [vmem:[%s1177_s0 + $0x4c] ss:$12 sps:$4 sm:$0xff]  }
   0xd   :  { %881 = vmatpush3.bf16.msra.mxu1 %v917_v9  ;;  %v952_v36 = vld [vmem:[%s1177_s0 + $0x80] ss:$12 sps:$4 sm:$0xff]   ;;  %v959_v37 = vld [vmem:[%s1177_s0 + $0x98] ss:$12 sps:$4 sm:$0xff]   ;;  %v947_v38 = vld [vmem:[%s1177_s0 + $0x48] ss:$12 sps:$4 sm:$0xff]  }
   0xe   :  { %882 = vmatprep.subr.bf16.mxu1 %v920_v12  ;;  %v948_v39 = vld [vmem:[%s1177_s0 + $0x64] ss:$12 sps:$4 sm:$0xff]   ;;  %v950_v41 = vld [vmem:[%s1177_s0 + $0x60] ss:$12 sps:$4 sm:$0xff]   ;;  %v953_v42 = vld [vmem:[%s1177_s0 + $0x7c] ss:$12 sps:$4 sm:$0xff]  }
   0xf   :  { %803 = vmatpush3.bf16.msra.mxu0 %v918_v10  ;;  %v960_v40 = vld [vmem:[%s1177_s0 + $0xb0] ss:$12 sps:$4 sm:$0xff]   ;;  %v955_v43 = vld [vmem:[%s1177_s0 + $0x78] ss:$12 sps:$4 sm:$0xff]   ;;  %v956_v44 = vld [vmem:[%s1177_s0 + $0x94] ss:$12 sps:$4 sm:$0xff]  }
  0x10   :  { %804 = vmatprep.subr.bf16.mxu0 %v919_v11  ;;  %v958_v45 = vld [vmem:[%s1177_s0 + $0x90] ss:$12 sps:$4 sm:$0xff]   ;;  %v961_v46 = vld [vmem:[%s1177_s0 + $0xac] ss:$12 sps:$4 sm:$0xff]   ;;  %v963_v47 = vld [vmem:[%s1177_s0 + $0xa8] ss:$12 sps:$4 sm:$0xff]  }
  0x11   :  { %883 = vmatpush3.bf16.msra.mxu1 %v920_v12  ;;  %v1131_v50 = vld [vmem:[%s1178_s2] ss:$0 sm:$0xff] }
  0x12   :  { %884 = vmatprep.subr.bf16.mxu1 %v923_v14 }
  0x13   :  { %805 = vmatpush3.bf16.msra.mxu0 %v921_v13 }
  0x14   :  { %806 = vmatprep.subr.bf16.mxu0 %v922_v15 }
  0x15   :  { %885 = vmatpush3.bf16.msra.mxu1 %v923_v14 }
  0x16   :  { %886 = vmatprep.subr.bf16.mxu1 %v926_v17 }
  0x17   :  { %807 = vmatpush3.bf16.msra.mxu0 %v924_v16 }
  0x18   :  { %808 = vmatprep.subr.bf16.mxu0 %v925_v18 }
  0x19   :  { %887 = vmatpush3.bf16.msra.mxu1 %v926_v17 }
  0x1a   :  { %888 = vmatprep.subr.bf16.mxu1 %v929_v21 }
  0x1b   :  { %809 = vmatpush3.bf16.msra.mxu0 %v927_v19 }
  0x1c   :  { %810 = vmatprep.subr.bf16.mxu0 %v928_v20 }
  0x1d   :  { %889 = vmatpush3.bf16.msra.mxu1 %v929_v21 }
  0x1e   :  { %890 = vmatprep.subr.bf16.mxu1 %v934_v25 }
  0x1f   :  { %811 = vmatpush3.bf16.msra.mxu0 %v930_v23 }
  0x21   :  { %891 = vmatpush3.bf16.msra.mxu1 %v934_v25 }
  0x22   :  { %407 = vmatmul.mubr.bf16.vlgmr.msra.gmra.mrb[0].mxu0 %v931_v26 }
  0x23   :  { %414 = vmatprep.mubr.bf16.mxu0 %v937_v27 }
  0x24   :  { %893 = vmatmul.mubr.bf16.vlgmr.msra.gmra.mrb[0].mxu1 %v936_v28 }
  0x25   :  { %896 = vmatprep.mubr.bf16.mxu1 %v943_v29 }
  0x2a   :  { %415 = vmatmul.mubr.bf16.gmra.mrb[4].mxu0 %v939_v30 }
  0x2b   :  { %422 = vmatprep.mubr.bf16.mxu0 %v940_v31 }
  0x2c   :  { %897 = vmatmul.mubr.bf16.gmra.mrb[4].mxu1 %v944_v32 }
  0x2d   :  { %900 = vmatprep.mubr.bf16.mxu1 %v951_v33 }
  0x32   :  { %423 = vmatmul.mubr.bf16.gmra.mrb[8].mxu0 %v942_v34 }
  0x33   :  { %430 = vmatprep.mubr.bf16.mxu0 %v945_v35 }
  0x34   :  { %901 = vmatmul.mubr.bf16.gmra.mrb[8].mxu1 %v952_v36 }
  0x35   :  { %904 = vmatprep.mubr.bf16.mxu1 %v959_v37 }
  0x3a   :  { %431 = vmatmul.mubr.bf16.gmra.mrb[12].mxu0 %v947_v38 }
  0x3b   :  { %438 = vmatprep.mubr.bf16.mxu0 %v948_v39 }
  0x3c   :  { %905 = vmatmul.mubr.bf16.gmra.mrb[12].mxu1 %v960_v40 }
  0x42   :  { %439 = vmatmul.mubr.bf16.gmra.mrb[16].mxu0 %v950_v41 }
  0x43   :  { %446 = vmatprep.mubr.bf16.mxu0 %v953_v42 }
  0x4a   :  { %447 = vmatmul.mubr.bf16.gmra.mrb[20].mxu0 %v955_v43 }
  0x4b   :  { %454 = vmatprep.mubr.bf16.mxu0 %v956_v44 }
  0x52   :  { %455 = vmatmul.mubr.bf16.gmra.mrb[24].mxu0 %v958_v45 }
  0x53   :  { %462 = vmatprep.mubr.bf16.mxu0 %v961_v46 }
  0x5a   :  { %463 = vmatmul.mubr.bf16.gmra.mrb[28].mxu0 %v963_v47 }
  0xf5   :  { %v812_v48 = vpop.f32.mrb[0].mxu0 }
  0xf6   :  { %v813_v49 = vpop.f32.mrb[1].mxu0 }
  0xf7   :  { %v814_v51 = vadd.f32 %v813_v49, %v812_v48  ;;  %v815_v52 = vpop.f32.mrb[2].mxu0  ;;  %v894_v54 = vpop.f32.mrb[0].mxu1 }
  0xf8   :  { %v816_v53 = vpop.f32.mrb[3].mxu0  ;;  %v505_v57 = vpop.f32.mrb[1].mxu1 }
  0xf9   :  { %v817_v55 = vadd.f32 %v816_v53, %v815_v52  ;;  %v409_v56 = vadd.f32 %v814_v51, %v1131_v50  ;;  %v895_v58 = vpop.f32.mrb[2].mxu1 }
  0xfa   :  { %v508_v61 = vpop.f32.mrb[3].mxu1 }
  0xfb   :  { %v506_v59 = vadd.f32 %v505_v57, %v409_v56  ;;  %v412_v60 = vadd.f32 %v817_v55, %v1131_v50 }
  0xfd   :  { %v509_v62 = vadd.f32 %v508_v61, %v412_v60  ;;  %v818_v63 = vpop.f32.mrb[4].mxu0  ;;  %v568_v1 = vmax.f32 %v506_v59, 0.0 }
  0xfe   :  { %v819_v0 = vpop.f32.mrb[5].mxu0 }
  0xff   :  { %v569_v2 = vmax.f32 %v509_v62, 0.0  ;;  %v820_v3 = vadd.f32 %v819_v0, %v818_v63  ;;  %v821_v4 = vpop.f32.mrb[6].mxu0  ;;  %v898_v6 = vpop.f32.mrb[4].mxu1 }
 0x100   :  { %v822_v5 = vpop.f32.mrb[7].mxu0  ;;  %v521_v10 = vpop.f32.mrb[5].mxu1 }
 0x101   :  { %v752_v7 = vpack.c.bf16 %v569_v2, %v568_v1  ;;  %v417_v8 = vadd.f32 %v820_v3, %v1131_v50  ;;  %v823_v9 = vadd.f32 %v822_v5, %v821_v4  ;;  %v899_v11 = vpop.f32.mrb[6].mxu1 }
 0x102   :  { %v524_v14 = vpop.f32.mrb[7].mxu1 }
 0x103   :  { %753 = vst [vmem:[%s1179_s3] sm:$0xff] %v752_v7   ;;  %v514_v12 = vadd.f32 %v894_v54, %v417_v8  ;;  %v420_v13 = vadd.f32 %v823_v9, %v1131_v50 }
 0x105   :  { %v517_v15 = vadd.f32 %v895_v58, %v420_v13  ;;  %v824_v16 = vpop.f32.mrb[8].mxu0  ;;  %v570_v18 = vmax.f32 %v514_v12, 0.0 }
 0x106   :  { %v825_v17 = vpop.f32.mrb[9].mxu0 }
 0x107   :  { %v571_v19 = vmax.f32 %v517_v15, 0.0  ;;  %v826_v20 = vadd.f32 %v825_v17, %v824_v16  ;;  %v827_v21 = vpop.f32.mrb[10].mxu0  ;;  %v902_v23 = vpop.f32.mrb[8].mxu1 }
 0x108   :  { %v828_v22 = vpop.f32.mrb[11].mxu0  ;;  %v537_v27 = vpop.f32.mrb[9].mxu1 }
 0x109   :  { %v757_v24 = vpack.c.bf16 %v571_v19, %v570_v18  ;;  %v829_v25 = vadd.f32 %v828_v22, %v827_v21  ;;  %v425_v26 = vadd.f32 %v826_v20, %v1131_v50  ;;  %v903_v28 = vpop.f32.mrb[10].mxu1 }
 0x10a   :  { %v540_v31 = vpop.f32.mrb[11].mxu1 }
 0x10b   :  { %789 = vst [vmem:[%s1179_s3 + $0x8] sm:$0xff] %v757_v24   ;;  %v522_v29 = vadd.f32 %v521_v10, %v425_v26  ;;  %v428_v30 = vadd.f32 %v829_v25, %v1131_v50 }
 0x10d   :  { %v525_v32 = vadd.f32 %v524_v14, %v428_v30  ;;  %v830_v33 = vpop.f32.mrb[12].mxu0  ;;  %v572_v35 = vmax.f32 %v522_v29, 0.0 }
 0x10e   :  { %v831_v34 = vpop.f32.mrb[13].mxu0 }
 0x10f   :  { %v573_v36 = vmax.f32 %v525_v32, 0.0  ;;  %v832_v37 = vadd.f32 %v831_v34, %v830_v33  ;;  %v833_v38 = vpop.f32.mrb[14].mxu0  ;;  %v1145_v40 = vpop.f32.mrb[12].mxu1 }
 0x110   :  { %v834_v39 = vpop.f32.mrb[15].mxu0  ;;  %v553_v44 = vpop.f32.mrb[13].mxu1 }
 0x111   :  { %v762_v41 = vpack.c.bf16 %v573_v36, %v572_v35  ;;  %v433_v42 = vadd.f32 %v832_v37, %v1131_v50  ;;  %v835_v43 = vadd.f32 %v834_v39, %v833_v38  ;;  %v907_v45 = vpop.f32.mrb[14].mxu1 }
 0x112   :  { %v556_v48 = vpop.f32.mrb[15].mxu1 }
 0x113   :  { %790 = vst [vmem:[%s1179_s3 + $0x10] sm:$0xff] %v762_v41   ;;  %v530_v46 = vadd.f32 %v898_v6, %v433_v42  ;;  %v436_v47 = vadd.f32 %v835_v43, %v1131_v50 }
 0x115   :  { %v533_v49 = vadd.f32 %v899_v11, %v436_v47  ;;  %v836_v51 = vpop.f32.mrb[16].mxu0  ;;  %v574_v53 = vmax.f32 %v530_v46, 0.0 }
 0x116   :  { %v837_v52 = vpop.f32.mrb[17].mxu0 }
 0x117   :  { %v575_v54 = vmax.f32 %v533_v49, 0.0  ;;  %v838_v55 = vadd.f32 %v837_v52, %v836_v51  ;;  %v839_v56 = vpop.f32.mrb[18].mxu0 }
 0x118   :  { %v840_v57 = vpop.f32.mrb[19].mxu0 }
 0x119   :  { %v767_v58 = vpack.c.bf16 %v575_v54, %v574_v53  ;;  %v841_v59 = vadd.f32 %v840_v57, %v839_v56  ;;  %v441_v60 = vadd.f32 %v838_v55, %v1131_v50 }
 0x11b   :  { %791 = vst [vmem:[%s1179_s3 + $0x18] sm:$0xff] %v767_v58   ;;  %v538_v61 = vadd.f32 %v537_v27, %v441_v60  ;;  %v444_v62 = vadd.f32 %v841_v59, %v1131_v50 }
 0x11d   :  { %v541_v63 = vadd.f32 %v540_v31, %v444_v62  ;;  %v842_v0 = vpop.f32.mrb[20].mxu0  ;;  %v576_v2 = vmax.f32 %v538_v61, 0.0 }
 0x11e   :  { %v843_v1 = vpop.f32.mrb[21].mxu0 }
 0x11f   :  { %v577_v3 = vmax.f32 %v541_v63, 0.0  ;;  %v844_v4 = vadd.f32 %v843_v1, %v842_v0  ;;  %v845_v5 = vpop.f32.mrb[22].mxu0 }
 0x120   :  { %v846_v6 = vpop.f32.mrb[23].mxu0 }
 0x121   :  { %v772_v7 = vpack.c.bf16 %v577_v3, %v576_v2  ;;  %v449_v8 = vadd.f32 %v844_v4, %v1131_v50  ;;  %v847_v9 = vadd.f32 %v846_v6, %v845_v5 }
 0x123   :  { %792 = vst [vmem:[%s1179_s3 + $0x20] sm:$0xff] %v772_v7   ;;  %v546_v10 = vadd.f32 %v902_v23, %v449_v8  ;;  %v452_v11 = vadd.f32 %v847_v9, %v1131_v50 }
 0x125   :  { %v549_v12 = vadd.f32 %v903_v28, %v452_v11  ;;  %v848_v13 = vpop.f32.mrb[24].mxu0  ;;  %v578_v15 = vmax.f32 %v546_v10, 0.0 }
 0x126   :  { %v849_v14 = vpop.f32.mrb[25].mxu0 }
 0x127   :  { %v579_v16 = vmax.f32 %v549_v12, 0.0  ;;  %v850_v17 = vadd.f32 %v849_v14, %v848_v13  ;;  %v851_v18 = vpop.f32.mrb[26].mxu0 }
 0x128   :  { %v852_v19 = vpop.f32.mrb[27].mxu0 }
 0x129   :  { %v777_v20 = vpack.c.bf16 %v579_v16, %v578_v15  ;;  %v853_v21 = vadd.f32 %v852_v19, %v851_v18  ;;  %v457_v22 = vadd.f32 %v850_v17, %v1131_v50 }
 0x12b   :  { %793 = vst [vmem:[%s1179_s3 + $0x28] sm:$0xff] %v777_v20   ;;  %v554_v24 = vadd.f32 %v553_v44, %v457_v22  ;;  %v460_v23 = vadd.f32 %v853_v21, %v1131_v50 }
 0x12d   :  { %v557_v25 = vadd.f32 %v556_v48, %v460_v23  ;;  %v854_v26 = vpop.f32.mrb[28].mxu0  ;;  %v580_v28 = vmax.f32 %v554_v24, 0.0 }
 0x12e   :  { %v855_v27 = vpop.f32.mrb[29].mxu0 }
 0x12f   :  { %v581_v29 = vmax.f32 %v557_v25, 0.0  ;;  %v856_v30 = vadd.f32 %v855_v27, %v854_v26  ;;  %v857_v31 = vpop.f32.mrb[30].mxu0 }
 0x130   :  { %v858_v32 = vpop.f32.mrb[31].mxu0 }
 0x131   :  { %v782_v33 = vpack.c.bf16 %v581_v29, %v580_v28  ;;  %v465_v34 = vadd.f32 %v856_v30, %v1131_v50  ;;  %v859_v35 = vadd.f32 %v858_v32, %v857_v31 }
 0x133   :  { %794 = vst [vmem:[%s1179_s3 + $0x30] sm:$0xff] %v782_v33   ;;  %v562_v36 = vadd.f32 %v1145_v40, %v465_v34  ;;  %v468_v37 = vadd.f32 %v859_v35, %v1131_v50 }
 0x135   :  { %v565_v38 = vadd.f32 %v907_v45, %v468_v37  ;;  %v582_v39 = vmax.f32 %v562_v36, 0.0 }
 0x137   :  { %v583_v41 = vmax.f32 %v565_v38, 0.0 }
 0x139   :  { %v787_v42 = vpack.c.bf16 %v583_v41, %v582_v39 }
 0x13b   :  { %795 = vst [vmem:[%s1179_s3 + $0x38] sm:$0xff] %v787_v42  }

// kernel: _lambda_.24
= control target key start
LH: loop header
LB: loop body
LE: loop exit
PB: predicated region body
PF: predicated region fallthrough
CT: control target
= control target key end

     0   :  { %s1884_s1 = inlined_call_operand.vmem [shape: bf16[640,128], index: 1, kind: input, shape index: {}]   ;;  %s1885_s0 = inlined_call_operand.vmem [shape: bf16[128,640], index: 0, kind: input, shape index: {}]   ;;  %s1886_s2 = inlined_call_operand.vmem [shape: f32[1,128], index: 2, kind: input, shape index: {}]   ;;  %s1887_s3 = inlined_call_operand.vmem [shape: bf16[128,128], index: 3, kind: input, shape index: {}]   ;;  %s1888_s4 = inlined_call_operand.vmem [shape: bf16[128,128], index: 4, kind: output, shape index: {}]  }
   0x1   :  { %v1415_v0 = vld [vmem:[%s1884_s1 + $0x40] sm:$0xff]   ;;  %v1419_v4 = vld [vmem:[%s1884_s1 + $0x48] sm:$0xff]   ;;  %v1423_v8 = vld [vmem:[%s1884_s1 + $0x50] sm:$0xff]  }
   0x2   :  { %v1416_v1 = vld [vmem:[%s1884_s1 + $0xc0] sm:$0xff]   ;;  %1223 = vmatprep.subr.bf16.mxu0 %v1415_v0  ;;  %v1420_v5 = vld [vmem:[%s1884_s1 + $0xc8] sm:$0xff]   ;;  %v1424_v9 = vld [vmem:[%s1884_s1 + $0xd0] sm:$0xff]  }
   0x3   :  { %v1417_v2 = vld [vmem:[%s1884_s1] sm:$0xff]   ;;  %1287 = vmatprep.subr.bf16.mxu1 %v1416_v1  ;;  %v1421_v6 = vld [vmem:[%s1884_s1 + $0x8] sm:$0xff]   ;;  %v1425_v10 = vld [vmem:[%s1884_s1 + $0x10] sm:$0xff]  }
   0x4   :  { %v1418_v3 = vld [vmem:[%s1884_s1 + $0x80] sm:$0xff]   ;;  %1224 = vmatpush3.bf16.msra.mxu0 %v1417_v2  ;;  %v1422_v7 = vld [vmem:[%s1884_s1 + $0x88] sm:$0xff]   ;;  %v1426_v11 = vld [vmem:[%s1884_s1 + $0x90] sm:$0xff]  }
   0x5   :  { %1288 = vmatpush3.bf16.msra.mxu1 %v1418_v3  ;;  %1225 = vmatprep.subr.bf16.mxu0 %v1419_v4  ;;  %v1427_v12 = vld [vmem:[%s1884_s1 + $0x58] sm:$0xff]   ;;  %v1431_v16 = vld [vmem:[%s1884_s1 + $0x60] sm:$0xff]   ;;  %v1435_v20 = vld [vmem:[%s1884_s1 + $0x68] sm:$0xff]  }
   0x6   :  { %1289 = vmatprep.subr.bf16.mxu1 %v1420_v5  ;;  %v1428_v13 = vld [vmem:[%s1884_s1 + $0xd8] sm:$0xff]   ;;  %v1432_v17 = vld [vmem:[%s1884_s1 + $0xe0] sm:$0xff]   ;;  %v1436_v21 = vld [vmem:[%s1884_s1 + $0xe8] sm:$0xff]  }
   0x7   :  { %v1429_v14 = vld [vmem:[%s1884_s1 + $0x18] sm:$0xff]   ;;  %v1433_v18 = vld [vmem:[%s1884_s1 + $0x20] sm:$0xff]   ;;  %v1437_v22 = vld [vmem:[%s1884_s1 + $0x28] sm:$0xff]  }
   0x8   :  { %1226 = vmatpush3.bf16.msra.mxu0 %v1421_v6  ;;  %v1430_v15 = vld [vmem:[%s1884_s1 + $0x98] sm:$0xff]   ;;  %v1434_v19 = vld [vmem:[%s1884_s1 + $0xa0] sm:$0xff]   ;;  %v1438_v23 = vld [vmem:[%s1884_s1 + $0xa8] sm:$0xff]  }
   0x9   :  { %1290 = vmatpush3.bf16.msra.mxu1 %v1422_v7  ;;  %1227 = vmatprep.subr.bf16.mxu0 %v1423_v8  ;;  %v1439_v24 = vld [vmem:[%s1884_s1 + $0x70] sm:$0xff]   ;;  %v1443_v28 = vld [vmem:[%s1884_s1 + $0x78] sm:$0xff]   ;;  %v1452_v35 = vld [vmem:[%s1885_s0 + $0xc] ss:$20 sps:$4 sm:$0xff]  }
   0xa   :  { %1291 = vmatprep.subr.bf16.mxu1 %v1424_v9  ;;  %v1440_v25 = vld [vmem:[%s1884_s1 + $0xf0] sm:$0xff]   ;;  %v1444_v29 = vld [vmem:[%s1884_s1 + $0xf8] sm:$0xff]   ;;  %v1453_v36 = vld [vmem:[%s1884_s1 + $0x100] sm:$0xff]   ;;  %746 = vmatprep.mubr.bf16.mxu1 %v1452_v35 }
   0xb   :  { %v1441_v26 = vld [vmem:[%s1884_s1 + $0x30] sm:$0xff]   ;;  %v1445_v30 = vld [vmem:[%s1884_s1 + $0x38] sm:$0xff]   ;;  %v1454_v37 = vld [vmem:[%s1885_s0 + $0x2c] ss:$20 sps:$4 sm:$0xff]  }
   0xc   :  { %1228 = vmatpush3.bf16.msra.mxu0 %v1425_v10  ;;  %v1442_v27 = vld [vmem:[%s1884_s1 + $0xb0] sm:$0xff]   ;;  %v1446_v31 = vld [vmem:[%s1884_s1 + $0xb8] sm:$0xff]   ;;  %v1460_v39 = vld [vmem:[%s1884_s1 + $0x108] sm:$0xff]  }
   0xd   :  { %1292 = vmatpush3.bf16.msra.mxu1 %v1426_v11  ;;  %1229 = vmatprep.subr.bf16.mxu0 %v1427_v12  ;;  %v1447_v32 = vld [vmem:[%s1885_s0] ss:$20 sps:$4 sm:$0xff]   ;;  %v1449_v33 = vld [vmem:[%s1885_s0 + $0x4] ss:$20 sps:$4 sm:$0xff]   ;;  %v1450_v34 = vld [vmem:[%s1885_s0 + $0x8] ss:$20 sps:$4 sm:$0xff]  }
   0xe   :  { %1293 = vmatprep.subr.bf16.mxu1 %v1428_v13  ;;  %649 = vmatprep.mubr.bf16.mxu0 %v1449_v33  ;;  %v1456_v38 = vld [vmem:[%s1885_s0 + $0x34] ss:$20 sps:$4 sm:$0xff]   ;;  %v1459_v41 = vld [vmem:[%s1885_s0 + $0x30] ss:$20 sps:$4 sm:$0xff]   ;;  %v1474_v45 = vld [vmem:[%s1884_s1 + $0x118] sm:$0xff]  }
   0xf   :  { %v1458_v40 = vld [vmem:[%s1885_s0 + $0x28] ss:$20 sps:$4 sm:$0xff]   ;;  %v1467_v44 = vld [vmem:[%s1884_s1 + $0x110] sm:$0xff]   ;;  %v1466_v47 = vld [vmem:[%s1885_s0 + $0x58] ss:$20 sps:$4 sm:$0xff]  }
  0x10   :  { %1230 = vmatpush3.bf16.msra.mxu0 %v1429_v14  ;;  %v1461_v42 = vld [vmem:[%s1885_s0 + $0x54] ss:$20 sps:$4 sm:$0xff]   ;;  %v1463_v43 = vld [vmem:[%s1885_s0 + $0x5c] ss:$20 sps:$4 sm:$0xff]   ;;  %v1470_v49 = vld [vmem:[%s1885_s0 + $0x84] ss:$20 sps:$4 sm:$0xff]  }
  0x11   :  { %1294 = vmatpush3.bf16.msra.mxu1 %v1430_v15  ;;  %1231 = vmatprep.subr.bf16.mxu0 %v1431_v16  ;;  %v1465_v46 = vld [vmem:[%s1885_s0 + $0x50] ss:$20 sps:$4 sm:$0xff]   ;;  %v1488_v51 = vld [vmem:[%s1884_s1 + $0x128] sm:$0xff]   ;;  %v1473_v53 = vld [vmem:[%s1885_s0 + $0x80] ss:$20 sps:$4 sm:$0xff]  }
  0x12   :  { %1295 = vmatprep.subr.bf16.mxu1 %v1432_v17  ;;  %v1468_v48 = vld [vmem:[%s1885_s0 + $0x7c] ss:$20 sps:$4 sm:$0xff]   ;;  %v1481_v50 = vld [vmem:[%s1884_s1 + $0x120] sm:$0xff]   ;;  %v1472_v52 = vld [vmem:[%s1885_s0 + $0x78] ss:$20 sps:$4 sm:$0xff]  }
  0x13   :  { %v1475_v54 = vld [vmem:[%s1885_s0 + $0xa4] ss:$20 sps:$4 sm:$0xff]   ;;  %v1495_v55 = vld [vmem:[%s1884_s1 + $0x130] sm:$0xff]   ;;  %v1477_v56 = vld [vmem:[%s1885_s0 + $0xac] ss:$20 sps:$4 sm:$0xff]  }
  0x14   :  { %1232 = vmatpush3.bf16.msra.mxu0 %v1433_v18  ;;  %v1502_v57 = vld [vmem:[%s1884_s1 + $0x138] sm:$0xff]   ;;  %v1479_v58 = vld [vmem:[%s1885_s0 + $0xa0] ss:$20 sps:$4 sm:$0xff]   ;;  %v1487_v63 = vld [vmem:[%s1885_s0 + $0xd0] ss:$20 sps:$4 sm:$0xff]  }
  0x15   :  { %1296 = vmatpush3.bf16.msra.mxu1 %v1434_v19  ;;  %1233 = vmatprep.subr.bf16.mxu0 %v1435_v20  ;;  %v1480_v59 = vld [vmem:[%s1885_s0 + $0xa8] ss:$20 sps:$4 sm:$0xff]   ;;  %v1482_v60 = vld [vmem:[%s1885_s0 + $0xcc] ss:$20 sps:$4 sm:$0xff]   ;;  %v1493_v2 = vld [vmem:[%s1885_s0 + $0xf0] ss:$20 sps:$4 sm:$0xff]  }
  0x16   :  { %1297 = vmatprep.subr.bf16.mxu1 %v1436_v21  ;;  %v1484_v61 = vld [vmem:[%s1885_s0 + $0xd4] ss:$20 sps:$4 sm:$0xff]   ;;  %v1491_v1 = vld [vmem:[%s1885_s0 + $0xfc] ss:$20 sps:$4 sm:$0xff]   ;;  %v1494_v3 = vld [vmem:[%s1885_s0 + $0xf8] ss:$20 sps:$4 sm:$0xff]  }
  0x17   :  { %v1486_v62 = vld [vmem:[%s1885_s0 + $0xc8] ss:$20 sps:$4 sm:$0xff]   ;;  %v1498_v5 = vld [vmem:[%s1885_s0 + $0x124] ss:$20 sps:$4 sm:$0xff]   ;;  %v1501_v7 = vld [vmem:[%s1885_s0 + $0x120] ss:$20 sps:$4 sm:$0xff]  }
  0x18   :  { %1234 = vmatpush3.bf16.msra.mxu0 %v1437_v22  ;;  %v1489_v0 = vld [vmem:[%s1885_s0 + $0xf4] ss:$20 sps:$4 sm:$0xff]   ;;  %v1496_v4 = vld [vmem:[%s1885_s0 + $0x11c] ss:$20 sps:$4 sm:$0xff]   ;;  %v1500_v6 = vld [vmem:[%s1885_s0 + $0x118] ss:$20 sps:$4 sm:$0xff]  }
  0x19   :  { %1298 = vmatpush3.bf16.msra.mxu1 %v1438_v23  ;;  %1235 = vmatprep.subr.bf16.mxu0 %v1439_v24  ;;  %v1503_v8 = vld [vmem:[%s1885_s0 + $0x10] ss:$20 sps:$4 sm:$0xff]   ;;  %v1505_v10 = vld [vmem:[%s1885_s0 + $0x38] ss:$20 sps:$4 sm:$0xff]   ;;  %v1507_v12 = vld [vmem:[%s1885_s0 + $0x60] ss:$20 sps:$4 sm:$0xff]  }
  0x1a   :  { %1299 = vmatprep.subr.bf16.mxu1 %v1440_v25  ;;  %v1504_v9 = vld [vmem:[%s1885_s0 + $0xb0] ss:$20 sps:$4 sm:$0xff]   ;;  %v1506_v11 = vld [vmem:[%s1885_s0 + $0xd8] ss:$20 sps:$4 sm:$0xff]   ;;  %v1508_v13 = vld [vmem:[%s1885_s0 + $0x100] ss:$20 sps:$4 sm:$0xff]  }
  0x1b   :  { %v1509_v14 = vld [vmem:[%s1885_s0 + $0x88] ss:$20 sps:$4 sm:$0xff]   ;;  %v1779_v18 = vld [vmem:[%s1886_s2] ss:$0 sm:$0xff] }
  0x1c   :  { %1236 = vmatpush3.bf16.msra.mxu0 %v1441_v26  ;;  %v1510_v15 = vld [vmem:[%s1885_s0 + $0x128] ss:$20 sps:$4 sm:$0xff]  }
  0x1d   :  { %1300 = vmatpush3.bf16.msra.mxu1 %v1442_v27  ;;  %1237 = vmatprep.subr.bf16.mxu0 %v1443_v28 }
  0x1e   :  { %1301 = vmatprep.subr.bf16.mxu1 %v1444_v29 }
  0x20   :  { %1238 = vmatpush3.bf16.msra.mxu0 %v1445_v30 }
  0x21   :  { %1302 = vmatpush3.bf16.msra.mxu1 %v1446_v31  ;;  %1367 = vmatprep.subr.bf16.mxu0 %v1453_v36 }
  0x22   :  { %1399 = vmatprep.subr.bf16.mxu1 %v1453_v36 }
  0x23   :  { %650 = vmatmul.mubr.bf16.vlgmr.msra.gmra.mrb[0].mxu0 %v1447_v32 }
  0x24   :  { %747 = vmatmul.mubr.bf16.vlgmr.msra.gmra.mrb[0].mxu1 %v1450_v34  ;;  %1368 = vmatpush3.bf16.msra.mxu0 %v1453_v36 }
  0x25   :  { %1407 = vmatpush3.bf16.msra.mxu1 %v1453_v36  ;;  %657 = vmatprep.mubr.bf16.mxu0 %v1454_v37 }
  0x26   :  { %754 = vmatprep.mubr.bf16.mxu1 %v1456_v38  ;;  %1369 = vmatprep.subr.bf16.mxu0 %v1460_v39 }
  0x27   :  { %1400 = vmatprep.subr.bf16.mxu1 %v1460_v39 }
  0x28   :  { %1370 = vmatpush3.bf16.msra.mxu0 %v1460_v39 }
  0x29   :  { %1408 = vmatpush3.bf16.msra.mxu1 %v1460_v39  ;;  %1371 = vmatprep.subr.bf16.mxu0 %v1467_v44 }
  0x2a   :  { %1401 = vmatprep.subr.bf16.mxu1 %v1467_v44 }
  0x2b   :  { %658 = vmatmul.mubr.bf16.gmra.mrb[4].mxu0 %v1458_v40 }
  0x2c   :  { %755 = vmatmul.mubr.bf16.gmra.mrb[4].mxu1 %v1459_v41  ;;  %665 = vmatprep.mubr.bf16.mxu0 %v1461_v42 }
  0x2d   :  { %762 = vmatprep.mubr.bf16.mxu1 %v1463_v43  ;;  %1372 = vmatpush3.bf16.msra.mxu0 %v1467_v44 }
  0x2e   :  { %1409 = vmatpush3.bf16.msra.mxu1 %v1467_v44  ;;  %1373 = vmatprep.subr.bf16.mxu0 %v1474_v45 }
  0x2f   :  { %1402 = vmatprep.subr.bf16.mxu1 %v1474_v45 }
  0x31   :  { %1374 = vmatpush3.bf16.msra.mxu0 %v1474_v45 }
  0x32   :  { %1410 = vmatpush3.bf16.msra.mxu1 %v1474_v45  ;;  %1375 = vmatprep.subr.bf16.mxu0 %v1481_v50 }
  0x33   :  { %666 = vmatmul.mubr.bf16.gmra.mrb[8].mxu0 %v1465_v46  ;;  %1403 = vmatprep.subr.bf16.mxu1 %v1481_v50 }
  0x34   :  { %763 = vmatmul.mubr.bf16.gmra.mrb[8].mxu1 %v1466_v47  ;;  %673 = vmatprep.mubr.bf16.mxu0 %v1468_v48 }
  0x35   :  { %770 = vmatprep.mubr.bf16.mxu1 %v1470_v49  ;;  %1376 = vmatpush3.bf16.msra.mxu0 %v1481_v50 }
  0x36   :  { %1411 = vmatpush3.bf16.msra.mxu1 %v1481_v50  ;;  %1377 = vmatprep.subr.bf16.mxu0 %v1488_v51 }
  0x37   :  { %1404 = vmatprep.subr.bf16.mxu1 %v1488_v51 }
  0x39   :  { %1378 = vmatpush3.bf16.msra.mxu0 %v1488_v51 }
  0x3a   :  { %1412 = vmatpush3.bf16.msra.mxu1 %v1488_v51  ;;  %1379 = vmatprep.subr.bf16.mxu0 %v1495_v55 }
  0x3b   :  { %674 = vmatmul.mubr.bf16.gmra.mrb[12].mxu0 %v1472_v52  ;;  %1405 = vmatprep.subr.bf16.mxu1 %v1495_v55 }
  0x3c   :  { %771 = vmatmul.mubr.bf16.gmra.mrb[12].mxu1 %v1473_v53  ;;  %681 = vmatprep.mubr.bf16.mxu0 %v1475_v54 }
  0x3d   :  { %778 = vmatprep.mubr.bf16.mxu1 %v1477_v56  ;;  %1380 = vmatpush3.bf16.msra.mxu0 %v1495_v55 }
  0x3e   :  { %1413 = vmatpush3.bf16.msra.mxu1 %v1495_v55  ;;  %1381 = vmatprep.subr.bf16.mxu0 %v1502_v57 }
  0x3f   :  { %1406 = vmatprep.subr.bf16.mxu1 %v1502_v57 }
  0x41   :  { %1382 = vmatpush3.bf16.msra.mxu0 %v1502_v57 }
  0x42   :  { %1414 = vmatpush3.bf16.msra.mxu1 %v1502_v57 }
  0x43   :  { %682 = vmatmul.mubr.bf16.gmra.mrb[16].mxu0 %v1479_v58 }
  0x44   :  { %779 = vmatmul.mubr.bf16.gmra.mrb[16].mxu1 %v1480_v59  ;;  %689 = vmatprep.mubr.bf16.mxu0 %v1482_v60 }
  0x45   :  { %786 = vmatprep.mubr.bf16.mxu1 %v1484_v61 }
  0x4b   :  { %690 = vmatmul.mubr.bf16.gmra.mrb[20].mxu0 %v1486_v62 }
  0x4c   :  { %787 = vmatmul.mubr.bf16.gmra.mrb[20].mxu1 %v1487_v63  ;;  %697 = vmatprep.mubr.bf16.mxu0 %v1489_v0 }
  0x4d   :  { %794 = vmatprep.mubr.bf16.mxu1 %v1491_v1 }
  0x53   :  { %698 = vmatmul.mubr.bf16.gmra.mrb[24].mxu0 %v1493_v2 }
  0x54   :  { %795 = vmatmul.mubr.bf16.gmra.mrb[24].mxu1 %v1494_v3  ;;  %705 = vmatprep.mubr.bf16.mxu0 %v1496_v4 }
  0x55   :  { %802 = vmatprep.mubr.bf16.mxu1 %v1498_v5 }
  0x5b   :  { %706 = vmatmul.mubr.bf16.gmra.mrb[28].mxu0 %v1500_v6 }
  0x5c   :  { %803 = vmatmul.mubr.bf16.gmra.mrb[28].mxu1 %v1501_v7  ;;  %1383 = vmatprep.mubr.bf16.mxu0 %v1503_v8 }
  0x5d   :  { %1391 = vmatprep.mubr.bf16.mxu1 %v1504_v9 }
  0x63   :  { %1384 = vmatmul.mubr.bf16.vlgmr.msra.gmra.mrb[32].mxu0 %v1505_v10 }
  0x64   :  { %1392 = vmatmul.mubr.bf16.vlgmr.msra.gmra.mrb[32].mxu1 %v1506_v11  ;;  %1387 = vmatprep.mubr.bf16.mxu0 %v1507_v12 }
  0x65   :  { %1395 = vmatprep.mubr.bf16.mxu1 %v1508_v13 }
  0x6b   :  { %1388 = vmatmul.mubr.bf16.gmra.mrb[36].mxu0 %v1509_v14 }
  0x6c   :  { %1396 = vmatmul.mubr.bf16.gmra.mrb[36].mxu1 %v1510_v15 }
  0xf6   :  { %v1239_v16 = vpop.f32.mrb[0].mxu0 }
  0xf7   :  { %v1303_v17 = vpop.f32.mrb[0].mxu1  ;;  %v1240_v19 = vpop.f32.mrb[1].mxu0 }
  0xf8   :  { %v1241_v20 = vadd.f32 %v1240_v19, %v1239_v16  ;;  %v1304_v21 = vpop.f32.mrb[1].mxu1  ;;  %v1242_v22 = vpop.f32.mrb[2].mxu0 }
  0xf9   :  { %v1305_v23 = vadd.f32 %v1304_v21, %v1303_v17  ;;  %v1306_v24 = vpop.f32.mrb[2].mxu1  ;;  %v1243_v25 = vpop.f32.mrb[3].mxu0 }
  0xfa   :  { %v652_v26 = vadd.f32 %v1241_v20, %v1779_v18  ;;  %v1244_v27 = vadd.f32 %v1243_v25, %v1242_v22  ;;  %v1307_v28 = vpop.f32.mrb[3].mxu1 }
  0xfb   :  { %v1308_v29 = vadd.f32 %v1307_v28, %v1306_v24 }
  0xfc   :  { %v655_v30 = vadd.f32 %v1244_v27, %v1779_v18  ;;  %v1783_v31 = vadd.f32 %v1305_v23, %v652_v26 }
  0xfe   :  { %v1245_v32 = vpop.f32.mrb[4].mxu0  ;;  %v1785_v33 = vadd.f32 %v1308_v29, %v655_v30 }
  0xff   :  { %v1309_v34 = vpop.f32.mrb[4].mxu1  ;;  %v1246_v35 = vpop.f32.mrb[5].mxu0 }
 0x100   :  { %v1247_v36 = vadd.f32 %v1246_v35, %v1245_v32  ;;  %v1310_v37 = vpop.f32.mrb[5].mxu1  ;;  %v1248_v38 = vpop.f32.mrb[6].mxu0 }
 0x101   :  { %v1311_v39 = vadd.f32 %v1310_v37, %v1309_v34  ;;  %v1312_v40 = vpop.f32.mrb[6].mxu1  ;;  %v1249_v41 = vpop.f32.mrb[7].mxu0 }
 0x102   :  { %v660_v42 = vadd.f32 %v1247_v36, %v1779_v18  ;;  %v1250_v43 = vadd.f32 %v1249_v41, %v1248_v38  ;;  %v1313_v44 = vpop.f32.mrb[7].mxu1 }
 0x103   :  { %v1314_v45 = vadd.f32 %v1313_v44, %v1312_v40 }
 0x104   :  { %v663_v46 = vadd.f32 %v1250_v43, %v1779_v18  ;;  %v1789_v47 = vadd.f32 %v1311_v39, %v660_v42 }
 0x106   :  { %v1251_v48 = vpop.f32.mrb[8].mxu0  ;;  %v1791_v49 = vadd.f32 %v1314_v45, %v663_v46 }
 0x107   :  { %v1315_v50 = vpop.f32.mrb[8].mxu1  ;;  %v1252_v51 = vpop.f32.mrb[9].mxu0 }
 0x108   :  { %v1253_v52 = vadd.f32 %v1252_v51, %v1251_v48  ;;  %v1316_v53 = vpop.f32.mrb[9].mxu1  ;;  %v1254_v54 = vpop.f32.mrb[10].mxu0 }
 0x109   :  { %v1317_v55 = vadd.f32 %v1316_v53, %v1315_v50  ;;  %v1318_v56 = vpop.f32.mrb[10].mxu1  ;;  %v1255_v57 = vpop.f32.mrb[11].mxu0 }
 0x10a   :  { %v668_v58 = vadd.f32 %v1253_v52, %v1779_v18  ;;  %v1256_v59 = vadd.f32 %v1255_v57, %v1254_v54  ;;  %v1319_v60 = vpop.f32.mrb[11].mxu1 }
 0x10b   :  { %v1320_v61 = vadd.f32 %v1319_v60, %v1318_v56 }
 0x10c   :  { %v671_v62 = vadd.f32 %v1256_v59, %v1779_v18  ;;  %v1795_v63 = vadd.f32 %v1317_v55, %v668_v58 }
 0x10e   :  { %v1257_v0 = vpop.f32.mrb[12].mxu0  ;;  %v1797_v1 = vadd.f32 %v1320_v61, %v671_v62 }
 0x10f   :  { %v1321_v2 = vpop.f32.mrb[12].mxu1  ;;  %v1258_v3 = vpop.f32.mrb[13].mxu0 }
 0x110   :  { %v1259_v4 = vadd.f32 %v1258_v3, %v1257_v0  ;;  %v1322_v5 = vpop.f32.mrb[13].mxu1  ;;  %v1260_v6 = vpop.f32.mrb[14].mxu0 }
 0x111   :  { %v1323_v7 = vadd.f32 %v1322_v5, %v1321_v2  ;;  %v1324_v8 = vpop.f32.mrb[14].mxu1  ;;  %v1261_v9 = vpop.f32.mrb[15].mxu0 }
 0x112   :  { %v676_v10 = vadd.f32 %v1259_v4, %v1779_v18  ;;  %v1262_v11 = vadd.f32 %v1261_v9, %v1260_v6  ;;  %v1325_v12 = vpop.f32.mrb[15].mxu1 }
 0x113   :  { %v1326_v13 = vadd.f32 %v1325_v12, %v1324_v8 }
 0x114   :  { %v679_v14 = vadd.f32 %v1262_v11, %v1779_v18  ;;  %v1801_v15 = vadd.f32 %v1323_v7, %v676_v10 }
 0x116   :  { %v1263_v16 = vpop.f32.mrb[16].mxu0  ;;  %v1803_v17 = vadd.f32 %v1326_v13, %v679_v14 }
 0x117   :  { %v1327_v19 = vpop.f32.mrb[16].mxu1  ;;  %v1264_v20 = vpop.f32.mrb[17].mxu0 }
 0x118   :  { %v1265_v21 = vadd.f32 %v1264_v20, %v1263_v16  ;;  %v1328_v22 = vpop.f32.mrb[17].mxu1  ;;  %v1266_v23 = vpop.f32.mrb[18].mxu0 }
 0x119   :  { %v1329_v24 = vadd.f32 %v1328_v22, %v1327_v19  ;;  %v1330_v25 = vpop.f32.mrb[18].mxu1  ;;  %v1267_v26 = vpop.f32.mrb[19].mxu0 }
 0x11a   :  { %v684_v27 = vadd.f32 %v1265_v21, %v1779_v18  ;;  %v1268_v28 = vadd.f32 %v1267_v26, %v1266_v23  ;;  %v1331_v29 = vpop.f32.mrb[19].mxu1  ;;  %v1213_v26 = vld [vmem:[%s1887_s3 + $0x28] sm:$0xff]  }
 0x11b   :  { %v1332_v30 = vadd.f32 %v1331_v29, %v1330_v25 }
 0x11c   :  { %v687_v32 = vadd.f32 %v1268_v28, %v1779_v18  ;;  %v1807_v34 = vadd.f32 %v1329_v24, %v684_v27  ;;  %v1209_v24 = vld [vmem:[%s1887_s3 + $0x8] sm:$0xff]   ;;  %v1138_v27 = vld [vmem:[%s1887_s3] sm:$0xff]  }
 0x11d   :  { %v1143_v29 = vunpack.c.l.bf16 %v1209_v24 }
 0x11e   :  { %v1269_v35 = vpop.f32.mrb[20].mxu0  ;;  %v1809_v36 = vadd.f32 %v1332_v30, %v687_v32  ;;  %v1212_v32 = vld [vmem:[%s1887_s3 + $0x20] sm:$0xff]  }
 0x11f   :  { %v1333_v37 = vpop.f32.mrb[20].mxu1  ;;  %v1270_v38 = vpop.f32.mrb[21].mxu0 }
 0x120   :  { %v1271_v39 = vadd.f32 %v1270_v38, %v1269_v35  ;;  %v1334_v40 = vpop.f32.mrb[21].mxu1  ;;  %v1272_v41 = vpop.f32.mrb[22].mxu0 }
 0x121   :  { %v1335_v42 = vadd.f32 %v1334_v40, %v1333_v37  ;;  %v1336_v43 = vpop.f32.mrb[22].mxu1  ;;  %v1273_v44 = vpop.f32.mrb[23].mxu0 }
 0x122   :  { %v692_v45 = vadd.f32 %v1271_v39, %v1779_v18  ;;  %v1274_v46 = vadd.f32 %v1273_v44, %v1272_v41  ;;  %v1337_v48 = vpop.f32.mrb[23].mxu1  ;;  %v1139_v39 = vunpack.c.l.bf16 %v1138_v27  ;;  %v1144_v41 = vunpack.c.h.bf16 %v1209_v24 }
 0x123   :  { %v1338_v50 = vadd.f32 %v1337_v48, %v1336_v43  ;;  %v1140_v48 = vunpack.c.h.bf16 %v1138_v27 }
 0x124   :  { %v695_v51 = vadd.f32 %v1274_v46, %v1779_v18  ;;  %v789_v52 = vadd.f32 %v1335_v42, %v692_v45  ;;  %v1160_v46 = vunpack.c.h.bf16 %v1213_v26 }
 0x126   :  { %v1275_v53 = vpop.f32.mrb[24].mxu0  ;;  %v792_v54 = vadd.f32 %v1338_v50, %v695_v51  ;;  %v1155_v50 = vunpack.c.l.bf16 %v1212_v32 }
 0x127   :  { %v1339_v55 = vpop.f32.mrb[24].mxu1  ;;  %v1276_v56 = vpop.f32.mrb[25].mxu0 }
 0x128   :  { %v1277_v57 = vadd.f32 %v1276_v56, %v1275_v53  ;;  %v1340_v58 = vpop.f32.mrb[25].mxu1  ;;  %v1278_v59 = vpop.f32.mrb[26].mxu0 }
 0x129   :  { %v1341_v60 = vadd.f32 %v1340_v58, %v1339_v55  ;;  %v1342_v61 = vpop.f32.mrb[26].mxu1  ;;  %v1279_v62 = vpop.f32.mrb[27].mxu0 }
 0x12a   :  { %v700_v0 = vadd.f32 %v1277_v57, %v1779_v18  ;;  %v1280_v2 = vadd.f32 %v1279_v62, %v1278_v59  ;;  %v1343_v3 = vpop.f32.mrb[27].mxu1 }
 0x12b   :  { %v1344_v4 = vadd.f32 %v1343_v3, %v1342_v61  ;;  %v1211_v61 = vld [vmem:[%s1887_s3 + $0x18] sm:$0xff]  }
 0x12c   :  { %v703_v5 = vadd.f32 %v1280_v2, %v1779_v18  ;;  %v1815_v6 = vadd.f32 %v1341_v60, %v700_v0 }
 0x12e   :  { %v1281_v7 = vpop.f32.mrb[28].mxu0  ;;  %v1817_v8 = vadd.f32 %v1344_v4, %v703_v5 }
 0x12f   :  { %v1345_v9 = vpop.f32.mrb[28].mxu1  ;;  %v1282_v10 = vpop.f32.mrb[29].mxu0 }
 0x130   :  { %v1283_v11 = vadd.f32 %v1282_v10, %v1281_v7  ;;  %v1346_v12 = vpop.f32.mrb[29].mxu1  ;;  %v1284_v13 = vpop.f32.mrb[30].mxu0  ;;  %v1151_v7 = vunpack.c.l.bf16 %v1211_v61 }
 0x131   :  { %v1347_v14 = vadd.f32 %v1346_v12, %v1345_v9  ;;  %v1348_v16 = vpop.f32.mrb[30].mxu1  ;;  %v1285_v19 = vpop.f32.mrb[31].mxu0 }
 0x132   :  { %v708_v20 = vadd.f32 %v1283_v11, %v1779_v18  ;;  %v1286_v21 = vadd.f32 %v1285_v19, %v1284_v13  ;;  %v1349_v22 = vpop.f32.mrb[31].mxu1  ;;  %v1214_v11 = vld [vmem:[%s1887_s3 + $0x30] sm:$0xff]  }
 0x133   :  { %v1350_v23 = vadd.f32 %v1349_v22, %v1348_v16 }
 0x134   :  { %v711_v25 = vadd.f32 %v1286_v21, %v1779_v18  ;;  %v805_v28 = vadd.f32 %v1347_v14, %v708_v20  ;;  %v1159_v18 = vunpack.c.l.bf16 %v1213_v26  ;;  %v1152_v20 = vunpack.c.h.bf16 %v1211_v61 }
 0x136   :  { %v1385_v30 = vpop.f32.mrb[32].mxu0  ;;  %v1833_v35 = vadd.f32 %v1350_v23, %v711_v25 }
 0x137   :  { %v854_v37 = vadd.f32 %v1385_v30, %v1789_v47  ;;  %v1393_v38 = vpop.f32.mrb[32].mxu1  ;;  %v845_v40 = vpop.f32.mrb[33].mxu0  ;;  %v1156_v47 = vunpack.c.h.bf16 %v1212_v32 }
 0x138   :  { %v886_v42 = vadd.f32 %v1393_v38, %v789_v52  ;;  %v846_v43 = vadd.f32 %v845_v40, %v1783_v31  ;;  %v877_v44 = vpop.f32.mrb[33].mxu1  ;;  %v1386_v45 = vpop.f32.mrb[34].mxu0 }
 0x139   :  { %v878_v51 = vadd.f32 %v877_v44, %v1807_v34  ;;  %v857_v53 = vadd.f32 %v1386_v45, %v1791_v49  ;;  %v1394_v55 = vpop.f32.mrb[34].mxu1  ;;  %v848_v56 = vpop.f32.mrb[35].mxu0  ;;  %v926_v60 = vadd.f32 %v1143_v29, %v854_v37  ;;  %v1215_v34 = vld [vmem:[%s1887_s3 + $0x38] sm:$0xff]   ;;  %v1164_v37 = vunpack.c.h.bf16 %v1214_v11 }
 0x13a   :  { %v889_v57 = vadd.f32 %v1394_v55, %v792_v54  ;;  %v849_v58 = vadd.f32 %v848_v56, %v1785_v33  ;;  %v880_v59 = vpop.f32.mrb[35].mxu1  ;;  %v934_v49 = vadd.f32 %v1159_v18, %v886_v42  ;;  %v924_v62 = vadd.f32 %v1139_v39, %v846_v43  ;;  %v1210_v33 = vld [vmem:[%s1887_s3 + $0x10] sm:$0xff]  }
 0x13b   :  { %v927_v52 = vadd.f32 %v1144_v41, %v857_v53  ;;  %v881_v31 = vadd.f32 %v880_v59, %v1809_v36  ;;  %v932_v54 = vadd.f32 %v1155_v50, %v878_v51  ;;  %v1167_v10 = vunpack.c.l.bf16 %v1215_v34 }
 0x13c   :  { %v935_v0 = vadd.f32 %v1160_v46, %v889_v57  ;;  %v925_v2 = vadd.f32 %v1140_v48, %v849_v58  ;;  %v1147_v16 = vunpack.c.l.bf16 %v1210_v33  ;;  %v1168_v25 = vunpack.c.h.bf16 %v1215_v34 }
 0x13d   :  { %v1177_v3 = vpack.c.bf16 %v927_v52, %v926_v60  ;;  %v933_v4 = vadd.f32 %v1156_v47, %v881_v31  ;;  %v1148_v26 = vunpack.c.h.bf16 %v1210_v33 }
 0x13e   :  { %v1197_v36 = vpack.c.bf16 %v935_v0, %v934_v49  ;;  %v1172_v5 = vpack.c.bf16 %v925_v2, %v924_v62  ;;  %v1389_v9 = vpop.f32.mrb[36].mxu0 }
 0x13f   :  { %1216 = vst [vmem:[%s1888_s4 + $0x8] sm:$0xff] %v1177_v3   ;;  %v1192_v12 = vpack.c.bf16 %v933_v4, %v932_v54  ;;  %v870_v13 = vadd.f32 %v1389_v9, %v1801_v15  ;;  %v1397_v14 = vpop.f32.mrb[36].mxu1  ;;  %v861_v19 = vpop.f32.mrb[37].mxu0  ;;  %v1163_v15 = vunpack.c.l.bf16 %v1214_v11 }
 0x140   :  { %1220 = vst [vmem:[%s1888_s4 + $0x28] sm:$0xff] %v1197_v36   ;;  %1173 = vst [vmem:[%s1888_s4] sm:$0xff] %v1172_v5   ;;  %v902_v21 = vadd.f32 %v1397_v14, %v805_v28  ;;  %v862_v22 = vadd.f32 %v861_v19, %v1795_v63  ;;  %v893_v23 = vpop.f32.mrb[37].mxu1  ;;  %v1390_v24 = vpop.f32.mrb[38].mxu0 }
 0x141   :  { %1219 = vst [vmem:[%s1888_s4 + $0x20] sm:$0xff] %v1192_v12   ;;  %v894_v27 = vadd.f32 %v893_v23, %v1815_v6  ;;  %v873_v29 = vadd.f32 %v1390_v24, %v1803_v17  ;;  %v1398_v30 = vpop.f32.mrb[38].mxu1  ;;  %v864_v32 = vpop.f32.mrb[39].mxu0  ;;  %v930_v38 = vadd.f32 %v1151_v7, %v870_v13 }
 0x142   :  { %v905_v28 = vadd.f32 %v1398_v30, %v1833_v35  ;;  %v865_v63 = vadd.f32 %v864_v32, %v1797_v1  ;;  %v896_v18 = vpop.f32.mrb[39].mxu1  ;;  %v938_v41 = vadd.f32 %v1167_v10, %v902_v21  ;;  %v928_v42 = vadd.f32 %v1147_v16, %v862_v22 }
 0x143   :  { %v931_v39 = vadd.f32 %v1152_v20, %v873_v29  ;;  %v897_v40 = vadd.f32 %v896_v18, %v1817_v8  ;;  %v936_v45 = vadd.f32 %v1163_v15, %v894_v27 }
 0x144   :  { %v939_v43 = vadd.f32 %v1168_v25, %v905_v28  ;;  %v929_v44 = vadd.f32 %v1148_v26, %v865_v63 }
 0x145   :  { %v1187_v6 = vpack.c.bf16 %v931_v39, %v930_v38  ;;  %v937_v46 = vadd.f32 %v1164_v37, %v897_v40 }
 0x146   :  { %v1207_v17 = vpack.c.bf16 %v939_v43, %v938_v41  ;;  %v1182_v48 = vpack.c.bf16 %v929_v44, %v928_v42 }
 0x147   :  { %1218 = vst [vmem:[%s1888_s4 + $0x18] sm:$0xff] %v1187_v6   ;;  %v1202_v35 = vpack.c.bf16 %v937_v46, %v936_v45 }
 0x148   :  { %1222 = vst [vmem:[%s1888_s4 + $0x38] sm:$0xff] %v1207_v17   ;;  %1217 = vst [vmem:[%s1888_s4 + $0x10] sm:$0xff] %v1182_v48  }
 0x149   :  { %1221 = vst [vmem:[%s1888_s4 + $0x30] sm:$0xff] %v1202_v35  }

// kernel: _lambda_.21
= control target key start
LH: loop header
LB: loop body
LE: loop exit
PB: predicated region body
PF: predicated region fallthrough
CT: control target
= control target key end

     0   :  { %s1285_s1 = inlined_call_operand.vmem [shape: bf16[384,128], index: 1, kind: input, shape index: {}]   ;;  %s1286_s0 = inlined_call_operand.vmem [shape: bf16[128,384], index: 0, kind: input, shape index: {}]   ;;  %s1287_s2 = inlined_call_operand.vmem [shape: f32[1,128], index: 2, kind: input, shape index: {}]   ;;  %s1288_s3 = inlined_call_operand.vmem [shape: bf16[128,128], index: 3, kind: input, shape index: {}]   ;;  %s1289_s4 = inlined_call_operand.vmem [shape: bf16[128,128], index: 4, kind: output, shape index: {}]  }
   0x1   :  { %v982_v0 = vld [vmem:[%s1285_s1 + $0x40] sm:$0xff]   ;;  %v984_v2 = vld [vmem:[%s1285_s1 + $0x48] sm:$0xff]   ;;  %v987_v5 = vld [vmem:[%s1285_s1 + $0x50] sm:$0xff]  }
   0x2   :  { %v983_v1 = vld [vmem:[%s1285_s1] sm:$0xff]   ;;  %870 = vmatprep.subr.bf16.mxu0 %v982_v0  ;;  %v986_v4 = vld [vmem:[%s1285_s1 + $0x8] sm:$0xff]   ;;  %v989_v7 = vld [vmem:[%s1285_s1 + $0x10] sm:$0xff]  }
   0x3   :  { %871 = vmatpush3.bf16.msra.mxu0 %v983_v1  ;;  %v985_v3 = vld [vmem:[%s1285_s1 + $0x80] sm:$0xff]   ;;  %v988_v6 = vld [vmem:[%s1285_s1 + $0x88] sm:$0xff]   ;;  %v990_v8 = vld [vmem:[%s1285_s1 + $0x58] sm:$0xff]  }
   0x4   :  { %872 = vmatprep.subr.bf16.mxu0 %v984_v2  ;;  %950 = vmatprep.subr.bf16.mxu1 %v985_v3  ;;  %v991_v9 = vld [vmem:[%s1285_s1 + $0x90] sm:$0xff]   ;;  %v992_v10 = vld [vmem:[%s1285_s1 + $0x18] sm:$0xff]   ;;  %v993_v11 = vld [vmem:[%s1285_s1 + $0x60] sm:$0xff]  }
   0x5   :  { %951 = vmatpush3.bf16.msra.mxu1 %v985_v3  ;;  %v994_v12 = vld [vmem:[%s1285_s1 + $0x98] sm:$0xff]   ;;  %v995_v13 = vld [vmem:[%s1285_s1 + $0x20] sm:$0xff]   ;;  %v996_v15 = vld [vmem:[%s1285_s1 + $0x68] sm:$0xff]  }
   0x6   :  { %952 = vmatprep.subr.bf16.mxu1 %v988_v6  ;;  %v997_v14 = vld [vmem:[%s1285_s1 + $0xa0] sm:$0xff]   ;;  %v998_v16 = vld [vmem:[%s1285_s1 + $0x28] sm:$0xff]   ;;  %v999_v18 = vld [vmem:[%s1285_s1 + $0x70] sm:$0xff]  }
   0x7   :  { %873 = vmatpush3.bf16.msra.mxu0 %v986_v4  ;;  %v1000_v17 = vld [vmem:[%s1285_s1 + $0xa8] sm:$0xff]   ;;  %v1001_v19 = vld [vmem:[%s1285_s1 + $0x30] sm:$0xff]   ;;  %v1002_v20 = vld [vmem:[%s1285_s1 + $0x78] sm:$0xff]  }
   0x8   :  { %874 = vmatprep.subr.bf16.mxu0 %v987_v5  ;;  %v1003_v21 = vld [vmem:[%s1285_s1 + $0xb0] sm:$0xff]   ;;  %v1004_v23 = vld [vmem:[%s1285_s1 + $0x38] sm:$0xff]   ;;  %v1005_v26 = vld [vmem:[%s1286_s0] ss:$12 sps:$4 sm:$0xff]  }
   0x9   :  { %953 = vmatpush3.bf16.msra.mxu1 %v988_v6  ;;  %v1007_v22 = vld [vmem:[%s1286_s0 + $0x4] ss:$12 sps:$4 sm:$0xff]   ;;  %v1009_v24 = vld [vmem:[%s1286_s0 + $0x8] ss:$12 sps:$4 sm:$0xff]   ;;  %v1008_v25 = vld [vmem:[%s1285_s1 + $0xb8] sm:$0xff]  }
   0xa   :  { %954 = vmatprep.subr.bf16.mxu1 %v991_v9  ;;  %425 = vmatprep.mubr.bf16.mxu0 %v1007_v22  ;;  %v1011_v27 = vld [vmem:[%s1286_s0 + $0x1c] ss:$12 sps:$4 sm:$0xff]   ;;  %v1010_v28 = vld [vmem:[%s1286_s0 + $0x20] ss:$12 sps:$4 sm:$0xff]   ;;  %v1017_v29 = vld [vmem:[%s1286_s0 + $0x38] ss:$12 sps:$4 sm:$0xff]  }
   0xb   :  { %875 = vmatpush3.bf16.msra.mxu0 %v989_v7  ;;  %966 = vmatprep.mubr.bf16.mxu1 %v1009_v24  ;;  %v1013_v30 = vld [vmem:[%s1286_s0 + $0x18] ss:$12 sps:$4 sm:$0xff]   ;;  %v1014_v31 = vld [vmem:[%s1286_s0 + $0x34] ss:$12 sps:$4 sm:$0xff]   ;;  %v1018_v32 = vld [vmem:[%s1286_s0 + $0x50] ss:$12 sps:$4 sm:$0xff]  }
   0xc   :  { %876 = vmatprep.subr.bf16.mxu0 %v990_v8  ;;  %v1025_v33 = vld [vmem:[%s1286_s0 + $0x68] ss:$12 sps:$4 sm:$0xff]   ;;  %v1016_v34 = vld [vmem:[%s1286_s0 + $0x30] ss:$12 sps:$4 sm:$0xff]   ;;  %v1019_v35 = vld [vmem:[%s1286_s0 + $0x4c] ss:$12 sps:$4 sm:$0xff]  }
   0xd   :  { %955 = vmatpush3.bf16.msra.mxu1 %v991_v9  ;;  %v1026_v36 = vld [vmem:[%s1286_s0 + $0x80] ss:$12 sps:$4 sm:$0xff]   ;;  %v1033_v37 = vld [vmem:[%s1286_s0 + $0x98] ss:$12 sps:$4 sm:$0xff]   ;;  %v1021_v38 = vld [vmem:[%s1286_s0 + $0x48] ss:$12 sps:$4 sm:$0xff]  }
   0xe   :  { %956 = vmatprep.subr.bf16.mxu1 %v994_v12  ;;  %v1022_v39 = vld [vmem:[%s1286_s0 + $0x64] ss:$12 sps:$4 sm:$0xff]   ;;  %v1024_v41 = vld [vmem:[%s1286_s0 + $0x60] ss:$12 sps:$4 sm:$0xff]   ;;  %v1027_v42 = vld [vmem:[%s1286_s0 + $0x7c] ss:$12 sps:$4 sm:$0xff]  }
   0xf   :  { %877 = vmatpush3.bf16.msra.mxu0 %v992_v10  ;;  %v1034_v40 = vld [vmem:[%s1286_s0 + $0xb0] ss:$12 sps:$4 sm:$0xff]   ;;  %v1029_v43 = vld [vmem:[%s1286_s0 + $0x78] ss:$12 sps:$4 sm:$0xff]   ;;  %v1030_v44 = vld [vmem:[%s1286_s0 + $0x94] ss:$12 sps:$4 sm:$0xff]  }
  0x10   :  { %878 = vmatprep.subr.bf16.mxu0 %v993_v11  ;;  %v1032_v45 = vld [vmem:[%s1286_s0 + $0x90] ss:$12 sps:$4 sm:$0xff]   ;;  %v1035_v46 = vld [vmem:[%s1286_s0 + $0xac] ss:$12 sps:$4 sm:$0xff]   ;;  %v1037_v47 = vld [vmem:[%s1286_s0 + $0xa8] ss:$12 sps:$4 sm:$0xff]  }
  0x11   :  { %957 = vmatpush3.bf16.msra.mxu1 %v994_v12  ;;  %v1210_v50 = vld [vmem:[%s1287_s2] ss:$0 sm:$0xff]  ;;  %v856_v8 = vld [vmem:[%s1288_s3 + $0x8] sm:$0xff]  }
  0x12   :  { %958 = vmatprep.subr.bf16.mxu1 %v997_v14  ;;  %v785_v55 = vld [vmem:[%s1288_s3] sm:$0xff]  }
  0x13   :  { %879 = vmatpush3.bf16.msra.mxu0 %v995_v13  ;;  %v786_v60 = vunpack.c.l.bf16 %v785_v55  ;;  %v787_v62 = vunpack.c.h.bf16 %v785_v55 }
  0x14   :  { %880 = vmatprep.subr.bf16.mxu0 %v996_v15 }
  0x15   :  { %959 = vmatpush3.bf16.msra.mxu1 %v997_v14 }
  0x16   :  { %960 = vmatprep.subr.bf16.mxu1 %v1000_v17 }
  0x17   :  { %881 = vmatpush3.bf16.msra.mxu0 %v998_v16  ;;  %v790_v16 = vunpack.c.l.bf16 %v856_v8 }
  0x18   :  { %882 = vmatprep.subr.bf16.mxu0 %v999_v18  ;;  %v791_v18 = vunpack.c.h.bf16 %v856_v8 }
  0x19   :  { %961 = vmatpush3.bf16.msra.mxu1 %v1000_v17 }
  0x1a   :  { %962 = vmatprep.subr.bf16.mxu1 %v1003_v21 }
  0x1b   :  { %883 = vmatpush3.bf16.msra.mxu0 %v1001_v19 }
  0x1c   :  { %884 = vmatprep.subr.bf16.mxu0 %v1002_v20 }
  0x1d   :  { %963 = vmatpush3.bf16.msra.mxu1 %v1003_v21 }
  0x1e   :  { %964 = vmatprep.subr.bf16.mxu1 %v1008_v25 }
  0x1f   :  { %885 = vmatpush3.bf16.msra.mxu0 %v1004_v23 }
  0x21   :  { %965 = vmatpush3.bf16.msra.mxu1 %v1008_v25 }
  0x22   :  { %426 = vmatmul.mubr.bf16.vlgmr.msra.gmra.mrb[0].mxu0 %v1005_v26 }
  0x23   :  { %433 = vmatprep.mubr.bf16.mxu0 %v1011_v27 }
  0x24   :  { %967 = vmatmul.mubr.bf16.vlgmr.msra.gmra.mrb[0].mxu1 %v1010_v28 }
  0x25   :  { %970 = vmatprep.mubr.bf16.mxu1 %v1017_v29  ;;  %v857_v29 = vld [vmem:[%s1288_s3 + $0x10] sm:$0xff]  }
  0x2a   :  { %434 = vmatmul.mubr.bf16.gmra.mrb[4].mxu0 %v1013_v30 }
  0x2b   :  { %441 = vmatprep.mubr.bf16.mxu0 %v1014_v31 }
  0x2c   :  { %971 = vmatmul.mubr.bf16.gmra.mrb[4].mxu1 %v1018_v32 }
  0x2d   :  { %974 = vmatprep.mubr.bf16.mxu1 %v1025_v33 }
  0x32   :  { %442 = vmatmul.mubr.bf16.gmra.mrb[8].mxu0 %v1016_v34 }
  0x33   :  { %449 = vmatprep.mubr.bf16.mxu0 %v1019_v35 }
  0x34   :  { %975 = vmatmul.mubr.bf16.gmra.mrb[8].mxu1 %v1026_v36  ;;  %v794_v36 = vunpack.c.l.bf16 %v857_v29 }
  0x35   :  { %978 = vmatprep.mubr.bf16.mxu1 %v1033_v37 }
  0x3a   :  { %450 = vmatmul.mubr.bf16.gmra.mrb[12].mxu0 %v1021_v38  ;;  %v795_v38 = vunpack.c.h.bf16 %v857_v29 }
  0x3b   :  { %457 = vmatprep.mubr.bf16.mxu0 %v1022_v39 }
  0x3c   :  { %979 = vmatmul.mubr.bf16.gmra.mrb[12].mxu1 %v1034_v40 }
  0x42   :  { %458 = vmatmul.mubr.bf16.gmra.mrb[16].mxu0 %v1024_v41 }
  0x43   :  { %465 = vmatprep.mubr.bf16.mxu0 %v1027_v42 }
  0x4a   :  { %466 = vmatmul.mubr.bf16.gmra.mrb[20].mxu0 %v1029_v43 }
  0x4b   :  { %473 = vmatprep.mubr.bf16.mxu0 %v1030_v44 }
  0x52   :  { %474 = vmatmul.mubr.bf16.gmra.mrb[24].mxu0 %v1032_v45 }
  0x53   :  { %481 = vmatprep.mubr.bf16.mxu0 %v1035_v46 }
  0x5a   :  { %482 = vmatmul.mubr.bf16.gmra.mrb[28].mxu0 %v1037_v47 }
  0xf5   :  { %v886_v48 = vpop.f32.mrb[0].mxu0 }
  0xf6   :  { %v887_v49 = vpop.f32.mrb[1].mxu0 }
  0xf7   :  { %v888_v51 = vadd.f32 %v887_v49, %v886_v48  ;;  %v889_v52 = vpop.f32.mrb[2].mxu0  ;;  %v968_v54 = vpop.f32.mrb[0].mxu1  ;;  %v858_v48 = vld [vmem:[%s1288_s3 + $0x18] sm:$0xff]  }
  0xf8   :  { %v890_v53 = vpop.f32.mrb[3].mxu0  ;;  %v524_v58 = vpop.f32.mrb[1].mxu1 }
  0xf9   :  { %v891_v56 = vadd.f32 %v890_v53, %v889_v52  ;;  %v428_v57 = vadd.f32 %v888_v51, %v1210_v50  ;;  %v969_v59 = vpop.f32.mrb[2].mxu1 }
  0xfa   :  { %v527_v0 = vpop.f32.mrb[3].mxu1 }
  0xfb   :  { %v525_v61 = vadd.f32 %v524_v58, %v428_v57  ;;  %v431_v63 = vadd.f32 %v891_v56, %v1210_v50  ;;  %v798_v57 = vunpack.c.l.bf16 %v858_v48 }
  0xfd   :  { %v528_v1 = vadd.f32 %v527_v0, %v431_v63  ;;  %v892_v2 = vpop.f32.mrb[4].mxu0  ;;  %v603_v4 = vadd.f32 %v786_v60, %v525_v61 }
  0xfe   :  { %v893_v3 = vpop.f32.mrb[5].mxu0 }
  0xff   :  { %v604_v5 = vadd.f32 %v787_v62, %v528_v1  ;;  %v894_v6 = vadd.f32 %v893_v3, %v892_v2  ;;  %v895_v7 = vpop.f32.mrb[6].mxu0  ;;  %v972_v10 = vpop.f32.mrb[4].mxu1 }
 0x100   :  { %v896_v9 = vpop.f32.mrb[7].mxu0  ;;  %v540_v14 = vpop.f32.mrb[5].mxu1 }
 0x101   :  { %v819_v11 = vpack.c.bf16 %v604_v5, %v603_v4  ;;  %v436_v12 = vadd.f32 %v894_v6, %v1210_v50  ;;  %v897_v13 = vadd.f32 %v896_v9, %v895_v7  ;;  %v973_v15 = vpop.f32.mrb[6].mxu1  ;;  %v859_v6 = vld [vmem:[%s1288_s3 + $0x20] sm:$0xff]  }
 0x102   :  { %v543_v20 = vpop.f32.mrb[7].mxu1 }
 0x103   :  { %820 = vst [vmem:[%s1289_s4] sm:$0xff] %v819_v11   ;;  %v533_v17 = vadd.f32 %v968_v54, %v436_v12  ;;  %v439_v19 = vadd.f32 %v897_v13, %v1210_v50  ;;  %v803_v12 = vunpack.c.h.bf16 %v859_v6 }
 0x105   :  { %v536_v21 = vadd.f32 %v969_v59, %v439_v19  ;;  %v898_v22 = vpop.f32.mrb[8].mxu0  ;;  %v605_v24 = vadd.f32 %v790_v16, %v533_v17  ;;  %v799_v59 = vunpack.c.h.bf16 %v858_v48 }
 0x106   :  { %v899_v23 = vpop.f32.mrb[9].mxu0 }
 0x107   :  { %v606_v25 = vadd.f32 %v791_v18, %v536_v21  ;;  %v900_v26 = vadd.f32 %v899_v23, %v898_v22  ;;  %v901_v27 = vpop.f32.mrb[10].mxu0  ;;  %v1228_v30 = vpop.f32.mrb[8].mxu1  ;;  %v860_v21 = vld [vmem:[%s1288_s3 + $0x28] sm:$0xff]  }
 0x108   :  { %v902_v28 = vpop.f32.mrb[11].mxu0  ;;  %v556_v34 = vpop.f32.mrb[9].mxu1 }
 0x109   :  { %v824_v31 = vpack.c.bf16 %v606_v25, %v605_v24  ;;  %v903_v32 = vadd.f32 %v902_v28, %v901_v27  ;;  %v444_v33 = vadd.f32 %v900_v26, %v1210_v50  ;;  %v977_v35 = vpop.f32.mrb[10].mxu1  ;;  %v806_v26 = vunpack.c.l.bf16 %v860_v21 }
 0x10a   :  { %v559_v40 = vpop.f32.mrb[11].mxu1  ;;  %v807_v28 = vunpack.c.h.bf16 %v860_v21 }
 0x10b   :  { %863 = vst [vmem:[%s1289_s4 + $0x8] sm:$0xff] %v824_v31   ;;  %v541_v37 = vadd.f32 %v540_v14, %v444_v33  ;;  %v447_v39 = vadd.f32 %v903_v32, %v1210_v50 }
 0x10d   :  { %v544_v41 = vadd.f32 %v543_v20, %v447_v39  ;;  %v904_v42 = vpop.f32.mrb[12].mxu0  ;;  %v607_v44 = vadd.f32 %v794_v36, %v541_v37 }
 0x10e   :  { %v905_v43 = vpop.f32.mrb[13].mxu0 }
 0x10f   :  { %v608_v45 = vadd.f32 %v795_v38, %v544_v41  ;;  %v906_v46 = vadd.f32 %v905_v43, %v904_v42  ;;  %v907_v47 = vpop.f32.mrb[14].mxu0  ;;  %v1238_v51 = vpop.f32.mrb[12].mxu1 }
 0x110   :  { %v908_v49 = vpop.f32.mrb[15].mxu0  ;;  %v572_v55 = vpop.f32.mrb[13].mxu1 }
 0x111   :  { %v829_v52 = vpack.c.bf16 %v608_v45, %v607_v44  ;;  %v452_v53 = vadd.f32 %v906_v46, %v1210_v50  ;;  %v909_v54 = vadd.f32 %v908_v49, %v907_v47  ;;  %v1241_v56 = vpop.f32.mrb[14].mxu1 }
 0x112   :  { %v575_v61 = vpop.f32.mrb[15].mxu1 }
 0x113   :  { %864 = vst [vmem:[%s1289_s4 + $0x10] sm:$0xff] %v829_v52   ;;  %v549_v58 = vadd.f32 %v972_v10, %v452_v53  ;;  %v455_v60 = vadd.f32 %v909_v54, %v1210_v50  ;;  %v802_v10 = vunpack.c.l.bf16 %v859_v6 }
 0x115   :  { %v552_v62 = vadd.f32 %v973_v15, %v455_v60  ;;  %v910_v63 = vpop.f32.mrb[16].mxu0  ;;  %v609_v1 = vadd.f32 %v798_v57, %v549_v58  ;;  %v862_v57 = vld [vmem:[%s1288_s3 + $0x38] sm:$0xff]  }
 0x116   :  { %v911_v0 = vpop.f32.mrb[17].mxu0 }
 0x117   :  { %v610_v2 = vadd.f32 %v799_v59, %v552_v62  ;;  %v912_v3 = vadd.f32 %v911_v0, %v910_v63  ;;  %v913_v4 = vpop.f32.mrb[18].mxu0  ;;  %v815_v63 = vunpack.c.h.bf16 %v862_v57 }
 0x118   :  { %v914_v5 = vpop.f32.mrb[19].mxu0 }
 0x119   :  { %v834_v7 = vpack.c.bf16 %v610_v2, %v609_v1  ;;  %v915_v8 = vadd.f32 %v914_v5, %v913_v4  ;;  %v460_v9 = vadd.f32 %v912_v3, %v1210_v50 }
 0x11b   :  { %865 = vst [vmem:[%s1289_s4 + $0x18] sm:$0xff] %v834_v7   ;;  %v557_v11 = vadd.f32 %v556_v34, %v460_v9  ;;  %v463_v13 = vadd.f32 %v915_v8, %v1210_v50 }
 0x11d   :  { %v560_v14 = vadd.f32 %v559_v40, %v463_v13  ;;  %v916_v15 = vpop.f32.mrb[20].mxu0  ;;  %v611_v17 = vadd.f32 %v802_v10, %v557_v11  ;;  %v861_v40 = vld [vmem:[%s1288_s3 + $0x30] sm:$0xff]  }
 0x11e   :  { %v917_v16 = vpop.f32.mrb[21].mxu0  ;;  %v811_v44 = vunpack.c.h.bf16 %v861_v40 }
 0x11f   :  { %v612_v18 = vadd.f32 %v803_v12, %v560_v14  ;;  %v918_v19 = vadd.f32 %v917_v16, %v916_v15  ;;  %v919_v20 = vpop.f32.mrb[22].mxu0 }
 0x120   :  { %v920_v22 = vpop.f32.mrb[23].mxu0 }
 0x121   :  { %v839_v23 = vpack.c.bf16 %v612_v18, %v611_v17  ;;  %v468_v24 = vadd.f32 %v918_v19, %v1210_v50  ;;  %v921_v25 = vadd.f32 %v920_v22, %v919_v20 }
 0x123   :  { %866 = vst [vmem:[%s1289_s4 + $0x20] sm:$0xff] %v839_v23   ;;  %v565_v27 = vadd.f32 %v1228_v30, %v468_v24  ;;  %v471_v29 = vadd.f32 %v921_v25, %v1210_v50  ;;  %v810_v30 = vunpack.c.l.bf16 %v861_v40 }
 0x125   :  { %v568_v31 = vadd.f32 %v977_v35, %v471_v29  ;;  %v922_v32 = vpop.f32.mrb[24].mxu0  ;;  %v613_v34 = vadd.f32 %v806_v26, %v565_v27 }
 0x126   :  { %v923_v33 = vpop.f32.mrb[25].mxu0 }
 0x127   :  { %v614_v36 = vadd.f32 %v807_v28, %v568_v31  ;;  %v924_v37 = vadd.f32 %v923_v33, %v922_v32  ;;  %v925_v38 = vpop.f32.mrb[26].mxu0 }
 0x128   :  { %v926_v39 = vpop.f32.mrb[27].mxu0 }
 0x129   :  { %v844_v41 = vpack.c.bf16 %v614_v36, %v613_v34  ;;  %v927_v42 = vadd.f32 %v926_v39, %v925_v38  ;;  %v476_v43 = vadd.f32 %v924_v37, %v1210_v50 }
 0x12b   :  { %867 = vst [vmem:[%s1289_s4 + $0x28] sm:$0xff] %v844_v41   ;;  %v573_v35 = vadd.f32 %v572_v55, %v476_v43  ;;  %v479_v45 = vadd.f32 %v927_v42, %v1210_v50  ;;  %v814_v55 = vunpack.c.l.bf16 %v862_v57 }
 0x12d   :  { %v576_v46 = vadd.f32 %v575_v61, %v479_v45  ;;  %v928_v47 = vpop.f32.mrb[28].mxu0  ;;  %v615_v49 = vadd.f32 %v810_v30, %v573_v35 }
 0x12e   :  { %v929_v48 = vpop.f32.mrb[29].mxu0 }
 0x12f   :  { %v616_v52 = vadd.f32 %v811_v44, %v576_v46  ;;  %v930_v53 = vadd.f32 %v929_v48, %v928_v47  ;;  %v931_v54 = vpop.f32.mrb[30].mxu0 }
 0x130   :  { %v932_v58 = vpop.f32.mrb[31].mxu0 }
 0x131   :  { %v849_v59 = vpack.c.bf16 %v616_v52, %v615_v49  ;;  %v484_v60 = vadd.f32 %v930_v53, %v1210_v50  ;;  %v933_v62 = vadd.f32 %v932_v58, %v931_v54 }
 0x133   :  { %868 = vst [vmem:[%s1289_s4 + $0x30] sm:$0xff] %v849_v59   ;;  %v581_v61 = vadd.f32 %v1238_v51, %v484_v60  ;;  %v487_v0 = vadd.f32 %v933_v62, %v1210_v50 }
 0x135   :  { %v584_v1 = vadd.f32 %v1241_v56, %v487_v0  ;;  %v617_v2 = vadd.f32 %v814_v55, %v581_v61 }
 0x137   :  { %v618_v3 = vadd.f32 %v815_v63, %v584_v1 }
 0x139   :  { %v854_v4 = vpack.c.bf16 %v618_v3, %v617_v2 }
 0x13b   :  { %869 = vst [vmem:[%s1289_s4 + $0x38] sm:$0xff] %v854_v4  }

// kernel: _lambda_.25
= control target key start
LH: loop header
LB: loop body
LE: loop exit
PB: predicated region body
PF: predicated region fallthrough
CT: control target
= control target key end

     0   :  { %v272_v0 = vmov 0.0   ;;  %vm273_vm0 = vmmov 0   ;;  %vm87_vm1 = vcmask 1041409   ;;  %vm90_vm2 = vcmask 1042434   ;;  %s358_s1 = inlined_call_operand.vmem [shape: bf16[128,128], index: 1, kind: input, shape index: {}]   ;;  %s359_s0 = inlined_call_operand.vmem [shape: bf16[8,1,128], index: 0, kind: input, shape index: {}]   ;;  %s360_s2 = inlined_call_operand.vmem [shape: f32[1,128], index: 2, kind: input, shape index: {}]   ;;  %s361_s3 = inlined_call_operand.vmem [shape: f32[8,128], index: 3, kind: output, shape index: {}]  }
   0x1   :  { %232 = vmatprep.subr.bf16.mxu0 %v272_v0  ;;  %v254_v1 = vld [vmem:[%s358_s1] sm:$0xff]   ;;  %248 = vmatprep.mubr.msk.bf16.mxu0 %vm273_vm0, %v272_v0  ;;  %v255_v2 = vld [vmem:[%s358_s1 + $0x8] sm:$0xff]   ;;  %v256_v3 = vld [vmem:[%s358_s1 + $0x10] sm:$0xff]   ;;  %vm93_vm3 = vcmask 1043459   ;;  %vm96_vm4 = vcmask 1044484   ;;  %vm99_vm5 = vcmask 1045509  }
   0x2   :  { %233 = vmatpush3.bf16.msra.mxu0 %v254_v1  ;;  %v257_v4 = vld [vmem:[%s358_s1 + $0x18] sm:$0xff]   ;;  %v262_v5 = vld [vmem:[%s359_s0] ss:$0 sps:$4 sm:$0x11]   ;;  %v259_v27 = vld [vmem:[%s358_s1 + $0x28] sm:$0xff]   ;;  %vm102_vm6 = vcmask 1046534  }
   0x3   :  { %234 = vmatprep.subr.bf16.mxu0 %v272_v0  ;;  %v263_v6 = vld [vmem:[%s359_s0 + $0x1] ss:$0 sps:$4 sm:$0x11]   ;;  %v264_v8 = vld [vmem:[%s359_s0 + $0x2] ss:$0 sps:$4 sm:$0x11]   ;;  %v78_v12 = vunpack.c.l.b16 %v262_v5 }
   0x4   :  { %v258_v7 = vld [vmem:[%s358_s1 + $0x20] sm:$0xff]   ;;  %v79_v13 = vunpack.c.l.b16 %v263_v6  ;;  %v80_v16 = vunpack.c.l.b16 %v264_v8  ;;  %v260_v34 = vld [vmem:[%s358_s1 + $0x30] sm:$0xff]   ;;  %vm105_vm7 = vcmask 1047559   ;;  %v261_v37 = vld [vmem:[%s358_s1 + $0x38] sm:$0xff]  }
   0x5   :  { %v265_v9 = vld [vmem:[%s359_s0 + $0x3] ss:$0 sps:$4 sm:$0x11]   ;;  %v266_v10 = vld [vmem:[%s359_s0 + $0x4] ss:$0 sps:$4 sm:$0x11]  }
   0x6   :  { %235 = vmatpush3.bf16.msra.mxu0 %v255_v2  ;;  %v267_v11 = vld [vmem:[%s359_s0 + $0x5] ss:$0 sps:$4 sm:$0x11]   ;;  %v268_v14 = vld [vmem:[%s359_s0 + $0x6] ss:$0 sps:$4 sm:$0x11]   ;;  %v81_v17 = vunpack.c.l.b16 %v265_v9  ;;  %v82_v18 = vunpack.c.l.b16 %v266_v10 }
   0x7   :  { %236 = vmatprep.subr.bf16.mxu0 %v272_v0  ;;  %v269_v15 = vld [vmem:[%s359_s0 + $0x7] ss:$0 sps:$4 sm:$0x11]   ;;  %v83_v19 = vunpack.c.l.b16 %v267_v11  ;;  %v86_v20 = vrot.slane %v79_v13, 7  ;;  %v84_v21 = vunpack.c.l.b16 %v268_v14  ;;  %v89_v22 = vrot.slane %v80_v16, 6 }
   0x8   :  { %v92_v23 = vrot.slane %v81_v17, 5  ;;  %v95_v25 = vrot.slane %v82_v18, 4  ;;  %v85_v28 = vunpack.c.l.b16 %v269_v15  ;;  %v214_v40 = vld [vmem:[%s360_s2] ss:$0 sm:$0xff] }
   0x9   :  { %v88_v24 = vsel %vm87_vm1, %v86_v20, %v78_v12  ;;  %v98_v26 = vrot.slane %v83_v19, 3  ;;  %v101_v31 = vrot.slane %v84_v21, 2 }
   0xa   :  { %237 = vmatpush3.bf16.msra.mxu0 %v256_v3  ;;  %v91_v29 = vsel %vm90_vm2, %v89_v22, %v88_v24  ;;  %v104_v35 = vrot.slane %v85_v28, 1 }
   0xb   :  { %238 = vmatprep.subr.bf16.mxu0 %v272_v0  ;;  %v94_v30 = vsel %vm93_vm3, %v92_v23, %v91_v29 }
   0xc   :  { %v97_v32 = vsel %vm96_vm4, %v95_v25, %v94_v30 }
   0xd   :  { %v100_v33 = vsel %vm99_vm5, %v98_v26, %v97_v32 }
   0xe   :  { %239 = vmatpush3.bf16.msra.mxu0 %v257_v4  ;;  %v103_v36 = vsel %vm102_vm6, %v101_v31, %v100_v33 }
   0xf   :  { %240 = vmatprep.subr.bf16.mxu0 %v272_v0  ;;  %v106_v38 = vsel %vm105_vm7, %v104_v35, %v103_v36 }
  0x10   :  { %v107_v39 = vpack.c.b16 %v106_v38, %v106_v38 }
  0x12   :  { %241 = vmatpush3.bf16.msra.mxu0 %v258_v7 }
  0x13   :  { %242 = vmatprep.subr.bf16.mxu0 %v272_v0 }
  0x16   :  { %243 = vmatpush3.bf16.msra.mxu0 %v259_v27 }
  0x17   :  { %244 = vmatprep.subr.bf16.mxu0 %v272_v0 }
  0x1a   :  { %245 = vmatpush3.bf16.msra.mxu0 %v260_v34 }
  0x1b   :  { %246 = vmatprep.subr.bf16.mxu0 %v272_v0 }
  0x1e   :  { %247 = vmatpush3.bf16.msra.mxu0 %v261_v37 }
  0x21   :  { %249 = vmatmul.mubr.bf16.vlgmr.msra.gmra.mrb[0].mxu0 %v107_v39 }
  0xf4   :  { %v191_v41 = vpop.f32.mrb[0].mxu0 }
  0xf5   :  { %v192_v42 = vadd.f32 %v214_v40, %v191_v41  ;;  %v250_v43 = vpop.f32.mrb[1].mxu0 }
  0xf6   :  { %v194_v44 = vpop.f32.mrb[2].mxu0 }
  0xf7   :  { %v197_v45 = vmul.f32 0.5, %v192_v42  ;;  %v251_v46 = vpop.f32.mrb[3].mxu0 }
  0xf9   :  { %270 = vtanh.f32 %v197_v45 }
 0x103   :  { %v271_v47 = vpop.eup %270 }
 0x104   :  { %v199_v48 = vmul.f32 0.5, %v271_v47 }
 0x106   :  { %v200_v49 = vadd.f32 0.5, %v199_v48 }
 0x108   :  { %201 = vst [vmem:[%s361_s3] sm:$0xff] %v200_v49 }

</bundles_post_ra>
